<compile_context>
chip_gen: v7x
topology: tpu7x:2x2x1
jax: 0.10.0
libtpu: 0.0.40
codegen_flags: <defaults>
</compile_context>

<pallas_src>
import jax
import jax.numpy as jnp
from jax.experimental import pallas as pl
from jax.experimental.pallas import tpu as pltpu


# --------------------------------------------------------------------------
# Fused kernel: all LSTM layers + last-timestep select + FC in one kernel.
# --------------------------------------------------------------------------
def _make_fused_kernel(num_layers, T, Bp, Hp):
    def _run_layer(x2d, wih_ref, whh_ref, b_ref, keep_seq):
        # x2d: (T*Bp, D_layer) f32 value, time-major row blocks of Bp rows.
        # One big matmul for the whole sequence's input projection, bias fused.
        pre = (jnp.dot(x2d, wih_ref[...], preferred_element_type=jnp.float32)
               + b_ref[...])                               # (T*Bp, 4Hp)
        whh = whh_ref[...]                                 # (Hp, 4Hp), hoisted load
        h = jnp.zeros((Bp, Hp), jnp.float32)
        c = jnp.zeros((Bp, Hp), jnp.float32)
        hs = []
        for t in range(T):                                 # static unroll (short T)
            gates = (pre[t * Bp:(t + 1) * Bp, :]           # aligned 8-sublane block
                     + jnp.dot(h, whh, preferred_element_type=jnp.float32))
            # Each gate slice is a full, aligned Hp(=128k)-lane block.
            i_g = jax.nn.sigmoid(gates[:, 0 * Hp:1 * Hp])
            f_g = jax.nn.sigmoid(gates[:, 1 * Hp:2 * Hp])
            g_g = jnp.tanh(gates[:, 2 * Hp:3 * Hp])
            o_g = jax.nn.sigmoid(gates[:, 3 * Hp:4 * Hp])
            c = f_g * c + i_g * g_g
            h = o_g * jnp.tanh(c)
            if keep_seq:
                hs.append(h)
        seq = jnp.concatenate(hs, axis=0) if keep_seq else None  # (T*Bp, Hp)
        return h, seq

    def kernel(*refs):
        x_ref = refs[0]
        layer_refs = refs[1:1 + 3 * num_layers]
        wfc_ref = refs[1 + 3 * num_layers]
        bfc_ref = refs[2 + 3 * num_layers]
        out_ref = refs[3 + 3 * num_layers]

        x2d = x_ref[...].astype(jnp.float32)               # (T*Bp, D_in)
        h_last = None
        for layer in range(num_layers):
            wih_ref, whh_ref, b_ref = layer_refs[3 * layer:3 * layer + 3]
            last = layer == num_layers - 1
            h_last, seq = _run_layer(x2d, wih_ref, whh_ref, b_ref, not last)
            if not last:
                # TODO(synk): inter-layer LSTM dropout (p=0.2) is train-only; eval identity.
                x2d = seq

        # out[:, -1, :] -> dropout (identity) -> fc, all fused here.
        out_ref[...] = (jnp.dot(h_last, wfc_ref[...],
                                preferred_element_type=jnp.float32)
                        + bfc_ref[...]).astype(out_ref.dtype)

    return kernel


def price_prediction_forward(packed, x):
    """x: (B, T, input_size) batch-first, like the PyTorch module."""
    B, T, D = x.shape
    Bp = ((B + 7) // 8) * 8                               # sublane-aligned batch
    lstm = packed["lstm"]                                 # [(wih_t, whh_t, b), ...]
    wfc, bfc = packed["fc"]
    num_layers = len(lstm)
    Hp = lstm[0][1].shape[0]
    O = wfc.shape[1]

    # Time-major, batch-padded, flattened OUTSIDE the kernel (fuses into the
    # input DMA; keeps every in-kernel access a full-tile access).
    x_tm = jnp.transpose(x, (1, 0, 2)).astype(jnp.float32)  # (T, B, D)
    if Bp != B:
        x_tm = jnp.pad(x_tm, ((0, 0), (0, Bp - B), (0, 0)))
    x2d = x_tm.reshape(T * Bp, D)

    inputs = [x2d]
    for wih, whh, b in lstm:
        inputs += [wih, whh, b]
    inputs += [wfc, bfc]

    out_p = pl.pallas_call(
        _make_fused_kernel(num_layers, T, Bp, Hp),
        out_shape=jax.ShapeDtypeStruct((Bp, O), x.dtype),
        in_specs=[pl.BlockSpec(memory_space=pltpu.MemorySpace.VMEM)] * len(inputs),
        out_specs=pl.BlockSpec(memory_space=pltpu.MemorySpace.VMEM),
    )(*inputs)
    return out_p[:B]


# --------------------------------------------------------------------------
# Parameters: PyTorch-layout init + one-time packing to the kernel layout.
# --------------------------------------------------------------------------
def init_params(key, input_size, hidden_size, num_layers, output_size):
    """PyTorch-layout params: U(-1/sqrt(H), 1/sqrt(H)), nn.LSTM / nn.Linear shapes."""
    k = 1.0 / jnp.sqrt(jnp.float32(hidden_size))
    params = {"lstm": [], "fc": None}
    for layer in range(num_layers):
        d_in = input_size if layer == 0 else hidden_size
        key, k1, k2, k3, k4 = jax.random.split(key, 5)
        w_ih = jax.random.uniform(k1, (4 * hidden_size, d_in), jnp.float32, -k, k)
        w_hh = jax.random.uniform(k2, (4 * hidden_size, hidden_size), jnp.float32, -k, k)
        b_ih = jax.random.uniform(k3, (4 * hidden_size,), jnp.float32, -k, k)
        b_hh = jax.random.uniform(k4, (4 * hidden_size,), jnp.float32, -k, k)
        params["lstm"].append((w_ih, w_hh, b_ih, b_hh))
    key, k1, k2 = jax.random.split(key, 3)
    w_fc = jax.random.uniform(k1, (output_size, hidden_size), jnp.float32, -k, k)
    b_fc = jax.random.uniform(k2, (output_size,), jnp.float32, -k, k)
    params["fc"] = (w_fc, b_fc)
    return params


def _pad_gate_cols(w_t, H, Hp):
    """(D, 4H) gate-major columns -> (D, 4Hp); padded lanes are zero."""
    d = w_t.shape[0]
    w4 = w_t.reshape(d, 4, H)
    return jnp.zeros((d, 4, Hp), w_t.dtype).at[:, :, :H].set(w4).reshape(d, 4 * Hp)


def _pad_rows(w, rows_to):
    return jnp.zeros((rows_to, w.shape[1]), w.dtype).at[:w.shape[0], :].set(w)


def pack_params(params, hidden_size):
    """One-time conversion to kernel layout: transposed, gate-padded, bias fused."""
    H = hidden_size
    Hp = ((H + 127) // 128) * 128
    packed = {"lstm": [], "fc": None}
    for layer, (w_ih, w_hh, b_ih, b_hh) in enumerate(params["lstm"]):
        wih_t = _pad_gate_cols(jnp.transpose(w_ih), H, Hp)          # (Din, 4Hp)
        if layer > 0:                                               # input is padded h
            wih_t = _pad_rows(wih_t, Hp)                            # (Hp, 4Hp)
        whh_t = _pad_rows(_pad_gate_cols(jnp.transpose(w_hh), H, Hp), Hp)
        b = _pad_gate_cols((b_ih + b_hh).reshape(1, 4 * H), H, Hp)  # (1, 4Hp)
        packed["lstm"].append((wih_t, whh_t, b))
    w_fc, b_fc = params["fc"]
    packed["fc"] = (_pad_rows(jnp.transpose(w_fc), Hp),             # (Hp, O)
                    b_fc.reshape(1, -1))                            # (1, O)
    return packed


# --------------------------------------------------------------------------
# Pure-JAX reference (PyTorch-layout params) for a numerical sanity check.
# --------------------------------------------------------------------------
def reference_forward(params, x):
    x_tm = jnp.transpose(x, (1, 0, 2))                    # (T, B, D)
    T, B, _ = x_tm.shape
    H = params["lstm"][0][1].shape[1]
    seq = x_tm
    for (w_ih, w_hh, b_ih, b_hh) in params["lstm"]:
        h = jnp.zeros((B, H), jnp.float32)
        c = jnp.zeros((B, H), jnp.float32)
        hs = []
        for t in range(T):
            gates = seq[t] @ w_ih.T + h @ w_hh.T + b_ih + b_hh
            i = jax.nn.sigmoid(gates[:, 0 * H:1 * H])
            f = jax.nn.sigmoid(gates[:, 1 * H:2 * H])
            g = jnp.tanh(gates[:, 2 * H:3 * H])
            o = jax.nn.sigmoid(gates[:, 3 * H:4 * H])
            c = f * c + i * g
            h = o * jnp.tanh(c)
            hs.append(h)
        seq = jnp.stack(hs, axis=0)
    w_fc, b_fc = params["fc"]
    return seq[-1] @ w_fc.T + b_fc


if __name__ == "__main__":
    input_size, hidden_size, num_layers, output_size = 4, 32, 2, 1
    batch, seq = 2, 8

    key = jax.random.PRNGKey(0)
    key, pkey, xkey = jax.random.split(key, 3)
    params = init_params(pkey, input_size, hidden_size, num_layers, output_size)
    packed = pack_params(params, hidden_size)
    x = jax.random.normal(xkey, (batch, seq, input_size), jnp.float32)

    out = jax.jit(price_prediction_forward)(packed, x)
    jax.block_until_ready(out)
    assert out.shape == (batch, output_size), out.shape

    ref = reference_forward(params, x)
    assert jnp.allclose(out, ref, atol=1e-3, rtol=1e-3), (out, ref)
    print("KERNEL_OK")
</pallas_src>

<mosaic_0001>
module attributes {stable_mosaic.version = 11 : i64} {
  func.func @kernel(%arg0: memref<64x4xf32, #tpu.memory_space<vmem>>, %arg1: memref<4x512xf32, #tpu.memory_space<vmem>>, %arg2: memref<128x512xf32, #tpu.memory_space<vmem>>, %arg3: memref<1x512xf32, #tpu.memory_space<vmem>>, %arg4: memref<128x512xf32, #tpu.memory_space<vmem>>, %arg5: memref<128x512xf32, #tpu.memory_space<vmem>>, %arg6: memref<1x512xf32, #tpu.memory_space<vmem>>, %arg7: memref<128x1xf32, #tpu.memory_space<vmem>>, %arg8: memref<1x1xf32, #tpu.memory_space<vmem>>, %arg9: memref<8x1xf32, #tpu.memory_space<vmem>>) attributes {dimension_semantics = [], scalar_prefetch = 0 : i64, scratch_operands = 0 : i64, tpu.core_type = #tpu.core_type<tc>} {
    %c0 = arith.constant 0 : index
    %c0_0 = arith.constant 0 : index
    %0 = vector.load %arg0[%c0, %c0_0] : memref<64x4xf32, #tpu.memory_space<vmem>>, vector<64x4xf32>
    %c0_1 = arith.constant 0 : index
    %c0_2 = arith.constant 0 : index
    %1 = vector.load %arg1[%c0_1, %c0_2] : memref<4x512xf32, #tpu.memory_space<vmem>>, vector<4x512xf32>
    %cst = arith.constant dense<0.000000e+00> : vector<64x512xf32>
    %2 = tpu.matmul %0, %1, %cst {dimension_numbers = #tpu.dot_dimension_numbers<[1], [0], [0], [1], [0, 0, 1, 1], [], []>} : vector<64x4xf32>, vector<4x512xf32>, vector<64x512xf32> -> vector<64x512xf32>
    %c0_3 = arith.constant 0 : index
    %c0_4 = arith.constant 0 : index
    %3 = vector.load %arg3[%c0_3, %c0_4] : memref<1x512xf32, #tpu.memory_space<vmem>>, vector<1x512xf32>
    %4 = vector.broadcast %3 : vector<1x512xf32> to vector<64x512xf32>
    %5 = arith.addf %2, %4 : vector<64x512xf32>
    %c0_5 = arith.constant 0 : index
    %c0_6 = arith.constant 0 : index
    %6 = vector.load %arg2[%c0_5, %c0_6] : memref<128x512xf32, #tpu.memory_space<vmem>>, vector<128x512xf32>
    %cst_7 = arith.constant 0.000000e+00 : f32
    %7 = vector.broadcast %cst_7 : f32 to vector<8x128xf32>
    %cst_8 = arith.constant 0.000000e+00 : f32
    %8 = vector.broadcast %cst_8 : f32 to vector<8x128xf32>
    %9 = vector.extract_strided_slice %5 {offsets = [0, 0], sizes = [8, 512], strides = [1, 1]} : vector<64x512xf32> to vector<8x512xf32>
    %cst_9 = arith.constant dense<0.000000e+00> : vector<8x512xf32>
    %10 = tpu.matmul %7, %6, %cst_9 {dimension_numbers = #tpu.dot_dimension_numbers<[1], [0], [0], [1], [0, 0, 1, 1], [], []>} : vector<8x128xf32>, vector<128x512xf32>, vector<8x512xf32> -> vector<8x512xf32>
    %11 = arith.addf %9, %10 : vector<8x512xf32>
    %12 = vector.extract_strided_slice %11 {offsets = [0, 0], sizes = [8, 128], strides = [1, 1]} : vector<8x512xf32> to vector<8x128xf32>
    %13 = arith.negf %12 : vector<8x128xf32>
    %14 = math.exp %13 : vector<8x128xf32>
    %cst_10 = arith.constant 1.000000e+00 : f32
    %15 = vector.broadcast %cst_10 : f32 to vector<8x128xf32>
    %16 = arith.addf %15, %14 : vector<8x128xf32>
    %17 = arith.divf %15, %16 : vector<8x128xf32>
    %18 = vector.extract_strided_slice %11 {offsets = [0, 128], sizes = [8, 128], strides = [1, 1]} : vector<8x512xf32> to vector<8x128xf32>
    %19 = arith.negf %18 : vector<8x128xf32>
    %20 = math.exp %19 : vector<8x128xf32>
    %cst_11 = arith.constant 1.000000e+00 : f32
    %21 = vector.broadcast %cst_11 : f32 to vector<8x128xf32>
    %22 = arith.addf %21, %20 : vector<8x128xf32>
    %23 = arith.divf %21, %22 : vector<8x128xf32>
    %24 = vector.extract_strided_slice %11 {offsets = [0, 256], sizes = [8, 128], strides = [1, 1]} : vector<8x512xf32> to vector<8x128xf32>
    %25 = math.tanh %24 : vector<8x128xf32>
    %26 = vector.extract_strided_slice %11 {offsets = [0, 384], sizes = [8, 128], strides = [1, 1]} : vector<8x512xf32> to vector<8x128xf32>
    %27 = arith.negf %26 : vector<8x128xf32>
    %28 = math.exp %27 : vector<8x128xf32>
    %cst_12 = arith.constant 1.000000e+00 : f32
    %29 = vector.broadcast %cst_12 : f32 to vector<8x128xf32>
    %30 = arith.addf %29, %28 : vector<8x128xf32>
    %31 = arith.divf %29, %30 : vector<8x128xf32>
    %32 = arith.mulf %23, %8 : vector<8x128xf32>
    %33 = arith.mulf %17, %25 : vector<8x128xf32>
    %34 = arith.addf %32, %33 : vector<8x128xf32>
    %35 = math.tanh %34 : vector<8x128xf32>
    %36 = arith.mulf %31, %35 : vector<8x128xf32>
    %37 = vector.extract_strided_slice %5 {offsets = [8, 0], sizes = [8, 512], strides = [1, 1]} : vector<64x512xf32> to vector<8x512xf32>
    %cst_13 = arith.constant dense<0.000000e+00> : vector<8x512xf32>
    %38 = tpu.matmul %36, %6, %cst_13 {dimension_numbers = #tpu.dot_dimension_numbers<[1], [0], [0], [1], [0, 0, 1, 1], [], []>} : vector<8x128xf32>, vector<128x512xf32>, vector<8x512xf32> -> vector<8x512xf32>
    %39 = arith.addf %37, %38 : vector<8x512xf32>
    %40 = vector.extract_strided_slice %39 {offsets = [0, 0], sizes = [8, 128], strides = [1, 1]} : vector<8x512xf32> to vector<8x128xf32>
    %41 = arith.negf %40 : vector<8x128xf32>
    %42 = math.exp %41 : vector<8x128xf32>
    %cst_14 = arith.constant 1.000000e+00 : f32
    %43 = vector.broadcast %cst_14 : f32 to vector<8x128xf32>
    %44 = arith.addf %43, %42 : vector<8x128xf32>
    %45 = arith.divf %43, %44 : vector<8x128xf32>
    %46 = vector.extract_strided_slice %39 {offsets = [0, 128], sizes = [8, 128], strides = [1, 1]} : vector<8x512xf32> to vector<8x128xf32>
    %47 = arith.negf %46 : vector<8x128xf32>
    %48 = math.exp %47 : vector<8x128xf32>
    %cst_15 = arith.constant 1.000000e+00 : f32
    %49 = vector.broadcast %cst_15 : f32 to vector<8x128xf32>
    %50 = arith.addf %49, %48 : vector<8x128xf32>
    %51 = arith.divf %49, %50 : vector<8x128xf32>
    %52 = vector.extract_strided_slice %39 {offsets = [0, 256], sizes = [8, 128], strides = [1, 1]} : vector<8x512xf32> to vector<8x128xf32>
    %53 = math.tanh %52 : vector<8x128xf32>
    %54 = vector.extract_strided_slice %39 {offsets = [0, 384], sizes = [8, 128], strides = [1, 1]} : vector<8x512xf32> to vector<8x128xf32>
    %55 = arith.negf %54 : vector<8x128xf32>
    %56 = math.exp %55 : vector<8x128xf32>
    %cst_16 = arith.constant 1.000000e+00 : f32
    %57 = vector.broadcast %cst_16 : f32 to vector<8x128xf32>
    %58 = arith.addf %57, %56 : vector<8x128xf32>
    %59 = arith.divf %57, %58 : vector<8x128xf32>
    %60 = arith.mulf %51, %34 : vector<8x128xf32>
    %61 = arith.mulf %45, %53 : vector<8x128xf32>
    %62 = arith.addf %60, %61 : vector<8x128xf32>
    %63 = math.tanh %62 : vector<8x128xf32>
    %64 = arith.mulf %59, %63 : vector<8x128xf32>
    %65 = vector.extract_strided_slice %5 {offsets = [16, 0], sizes = [8, 512], strides = [1, 1]} : vector<64x512xf32> to vector<8x512xf32>
    %cst_17 = arith.constant dense<0.000000e+00> : vector<8x512xf32>
    %66 = tpu.matmul %64, %6, %cst_17 {dimension_numbers = #tpu.dot_dimension_numbers<[1], [0], [0], [1], [0, 0, 1, 1], [], []>} : vector<8x128xf32>, vector<128x512xf32>, vector<8x512xf32> -> vector<8x512xf32>
    %67 = arith.addf %65, %66 : vector<8x512xf32>
    %68 = vector.extract_strided_slice %67 {offsets = [0, 0], sizes = [8, 128], strides = [1, 1]} : vector<8x512xf32> to vector<8x128xf32>
    %69 = arith.negf %68 : vector<8x128xf32>
    %70 = math.exp %69 : vector<8x128xf32>
    %cst_18 = arith.constant 1.000000e+00 : f32
    %71 = vector.broadcast %cst_18 : f32 to vector<8x128xf32>
    %72 = arith.addf %71, %70 : vector<8x128xf32>
    %73 = arith.divf %71, %72 : vector<8x128xf32>
    %74 = vector.extract_strided_slice %67 {offsets = [0, 128], sizes = [8, 128], strides = [1, 1]} : vector<8x512xf32> to vector<8x128xf32>
    %75 = arith.negf %74 : vector<8x128xf32>
    %76 = math.exp %75 : vector<8x128xf32>
    %cst_19 = arith.constant 1.000000e+00 : f32
    %77 = vector.broadcast %cst_19 : f32 to vector<8x128xf32>
    %78 = arith.addf %77, %76 : vector<8x128xf32>
    %79 = arith.divf %77, %78 : vector<8x128xf32>
    %80 = vector.extract_strided_slice %67 {offsets = [0, 256], sizes = [8, 128], strides = [1, 1]} : vector<8x512xf32> to vector<8x128xf32>
    %81 = math.tanh %80 : vector<8x128xf32>
    %82 = vector.extract_strided_slice %67 {offsets = [0, 384], sizes = [8, 128], strides = [1, 1]} : vector<8x512xf32> to vector<8x128xf32>
    %83 = arith.negf %82 : vector<8x128xf32>
    %84 = math.exp %83 : vector<8x128xf32>
    %cst_20 = arith.constant 1.000000e+00 : f32
    %85 = vector.broadcast %cst_20 : f32 to vector<8x128xf32>
    %86 = arith.addf %85, %84 : vector<8x128xf32>
    %87 = arith.divf %85, %86 : vector<8x128xf32>
    %88 = arith.mulf %79, %62 : vector<8x128xf32>
    %89 = arith.mulf %73, %81 : vector<8x128xf32>
    %90 = arith.addf %88, %89 : vector<8x128xf32>
    %91 = math.tanh %90 : vector<8x128xf32>
    %92 = arith.mulf %87, %91 : vector<8x128xf32>
    %93 = vector.extract_strided_slice %5 {offsets = [24, 0], sizes = [8, 512], strides = [1, 1]} : vector<64x512xf32> to vector<8x512xf32>
    %cst_21 = arith.constant dense<0.000000e+00> : vector<8x512xf32>
    %94 = tpu.matmul %92, %6, %cst_21 {dimension_numbers = #tpu.dot_dimension_numbers<[1], [0], [0], [1], [0, 0, 1, 1], [], []>} : vector<8x128xf32>, vector<128x512xf32>, vector<8x512xf32> -> vector<8x512xf32>
    %95 = arith.addf %93, %94 : vector<8x512xf32>
    %96 = vector.extract_strided_slice %95 {offsets = [0, 0], sizes = [8, 128], strides = [1, 1]} : vector<8x512xf32> to vector<8x128xf32>
    %97 = arith.negf %96 : vector<8x128xf32>
    %98 = math.exp %97 : vector<8x128xf32>
    %cst_22 = arith.constant 1.000000e+00 : f32
    %99 = vector.broadcast %cst_22 : f32 to vector<8x128xf32>
    %100 = arith.addf %99, %98 : vector<8x128xf32>
    %101 = arith.divf %99, %100 : vector<8x128xf32>
    %102 = vector.extract_strided_slice %95 {offsets = [0, 128], sizes = [8, 128], strides = [1, 1]} : vector<8x512xf32> to vector<8x128xf32>
    %103 = arith.negf %102 : vector<8x128xf32>
    %104 = math.exp %103 : vector<8x128xf32>
    %cst_23 = arith.constant 1.000000e+00 : f32
    %105 = vector.broadcast %cst_23 : f32 to vector<8x128xf32>
    %106 = arith.addf %105, %104 : vector<8x128xf32>
    %107 = arith.divf %105, %106 : vector<8x128xf32>
    %108 = vector.extract_strided_slice %95 {offsets = [0, 256], sizes = [8, 128], strides = [1, 1]} : vector<8x512xf32> to vector<8x128xf32>
    %109 = math.tanh %108 : vector<8x128xf32>
    %110 = vector.extract_strided_slice %95 {offsets = [0, 384], sizes = [8, 128], strides = [1, 1]} : vector<8x512xf32> to vector<8x128xf32>
    %111 = arith.negf %110 : vector<8x128xf32>
    %112 = math.exp %111 : vector<8x128xf32>
    %cst_24 = arith.constant 1.000000e+00 : f32
    %113 = vector.broadcast %cst_24 : f32 to vector<8x128xf32>
    %114 = arith.addf %113, %112 : vector<8x128xf32>
    %115 = arith.divf %113, %114 : vector<8x128xf32>
    %116 = arith.mulf %107, %90 : vector<8x128xf32>
    %117 = arith.mulf %101, %109 : vector<8x128xf32>
    %118 = arith.addf %116, %117 : vector<8x128xf32>
    %119 = math.tanh %118 : vector<8x128xf32>
    %120 = arith.mulf %115, %119 : vector<8x128xf32>
    %121 = vector.extract_strided_slice %5 {offsets = [32, 0], sizes = [8, 512], strides = [1, 1]} : vector<64x512xf32> to vector<8x512xf32>
    %cst_25 = arith.constant dense<0.000000e+00> : vector<8x512xf32>
    %122 = tpu.matmul %120, %6, %cst_25 {dimension_numbers = #tpu.dot_dimension_numbers<[1], [0], [0], [1], [0, 0, 1, 1], [], []>} : vector<8x128xf32>, vector<128x512xf32>, vector<8x512xf32> -> vector<8x512xf32>
    %123 = arith.addf %121, %122 : vector<8x512xf32>
    %124 = vector.extract_strided_slice %123 {offsets = [0, 0], sizes = [8, 128], strides = [1, 1]} : vector<8x512xf32> to vector<8x128xf32>
    %125 = arith.negf %124 : vector<8x128xf32>
    %126 = math.exp %125 : vector<8x128xf32>
    %cst_26 = arith.constant 1.000000e+00 : f32
    %127 = vector.broadcast %cst_26 : f32 to vector<8x128xf32>
    %128 = arith.addf %127, %126 : vector<8x128xf32>
    %129 = arith.divf %127, %128 : vector<8x128xf32>
    %130 = vector.extract_strided_slice %123 {offsets = [0, 128], sizes = [8, 128], strides = [1, 1]} : vector<8x512xf32> to vector<8x128xf32>
    %131 = arith.negf %130 : vector<8x128xf32>
    %132 = math.exp %131 : vector<8x128xf32>
    %cst_27 = arith.constant 1.000000e+00 : f32
    %133 = vector.broadcast %cst_27 : f32 to vector<8x128xf32>
    %134 = arith.addf %133, %132 : vector<8x128xf32>
    %135 = arith.divf %133, %134 : vector<8x128xf32>
    %136 = vector.extract_strided_slice %123 {offsets = [0, 256], sizes = [8, 128], strides = [1, 1]} : vector<8x512xf32> to vector<8x128xf32>
    %137 = math.tanh %136 : vector<8x128xf32>
    %138 = vector.extract_strided_slice %123 {offsets = [0, 384], sizes = [8, 128], strides = [1, 1]} : vector<8x512xf32> to vector<8x128xf32>
    %139 = arith.negf %138 : vector<8x128xf32>
    %140 = math.exp %139 : vector<8x128xf32>
    %cst_28 = arith.constant 1.000000e+00 : f32
    %141 = vector.broadcast %cst_28 : f32 to vector<8x128xf32>
    %142 = arith.addf %141, %140 : vector<8x128xf32>
    %143 = arith.divf %141, %142 : vector<8x128xf32>
    %144 = arith.mulf %135, %118 : vector<8x128xf32>
    %145 = arith.mulf %129, %137 : vector<8x128xf32>
    %146 = arith.addf %144, %145 : vector<8x128xf32>
    %147 = math.tanh %146 : vector<8x128xf32>
    %148 = arith.mulf %143, %147 : vector<8x128xf32>
    %149 = vector.extract_strided_slice %5 {offsets = [40, 0], sizes = [8, 512], strides = [1, 1]} : vector<64x512xf32> to vector<8x512xf32>
    %cst_29 = arith.constant dense<0.000000e+00> : vector<8x512xf32>
    %150 = tpu.matmul %148, %6, %cst_29 {dimension_numbers = #tpu.dot_dimension_numbers<[1], [0], [0], [1], [0, 0, 1, 1], [], []>} : vector<8x128xf32>, vector<128x512xf32>, vector<8x512xf32> -> vector<8x512xf32>
    %151 = arith.addf %149, %150 : vector<8x512xf32>
    %152 = vector.extract_strided_slice %151 {offsets = [0, 0], sizes = [8, 128], strides = [1, 1]} : vector<8x512xf32> to vector<8x128xf32>
    %153 = arith.negf %152 : vector<8x128xf32>
    %154 = math.exp %153 : vector<8x128xf32>
    %cst_30 = arith.constant 1.000000e+00 : f32
    %155 = vector.broadcast %cst_30 : f32 to vector<8x128xf32>
    %156 = arith.addf %155, %154 : vector<8x128xf32>
    %157 = arith.divf %155, %156 : vector<8x128xf32>
    %158 = vector.extract_strided_slice %151 {offsets = [0, 128], sizes = [8, 128], strides = [1, 1]} : vector<8x512xf32> to vector<8x128xf32>
    %159 = arith.negf %158 : vector<8x128xf32>
    %160 = math.exp %159 : vector<8x128xf32>
    %cst_31 = arith.constant 1.000000e+00 : f32
    %161 = vector.broadcast %cst_31 : f32 to vector<8x128xf32>
    %162 = arith.addf %161, %160 : vector<8x128xf32>
    %163 = arith.divf %161, %162 : vector<8x128xf32>
    %164 = vector.extract_strided_slice %151 {offsets = [0, 256], sizes = [8, 128], strides = [1, 1]} : vector<8x512xf32> to vector<8x128xf32>
    %165 = math.tanh %164 : vector<8x128xf32>
    %166 = vector.extract_strided_slice %151 {offsets = [0, 384], sizes = [8, 128], strides = [1, 1]} : vector<8x512xf32> to vector<8x128xf32>
    %167 = arith.negf %166 : vector<8x128xf32>
    %168 = math.exp %167 : vector<8x128xf32>
    %cst_32 = arith.constant 1.000000e+00 : f32
    %169 = vector.broadcast %cst_32 : f32 to vector<8x128xf32>
    %170 = arith.addf %169, %168 : vector<8x128xf32>
    %171 = arith.divf %169, %170 : vector<8x128xf32>
    %172 = arith.mulf %163, %146 : vector<8x128xf32>
    %173 = arith.mulf %157, %165 : vector<8x128xf32>
    %174 = arith.addf %172, %173 : vector<8x128xf32>
    %175 = math.tanh %174 : vector<8x128xf32>
    %176 = arith.mulf %171, %175 : vector<8x128xf32>
    %177 = vector.extract_strided_slice %5 {offsets = [48, 0], sizes = [8, 512], strides = [1, 1]} : vector<64x512xf32> to vector<8x512xf32>
    %cst_33 = arith.constant dense<0.000000e+00> : vector<8x512xf32>
    %178 = tpu.matmul %176, %6, %cst_33 {dimension_numbers = #tpu.dot_dimension_numbers<[1], [0], [0], [1], [0, 0, 1, 1], [], []>} : vector<8x128xf32>, vector<128x512xf32>, vector<8x512xf32> -> vector<8x512xf32>
    %179 = arith.addf %177, %178 : vector<8x512xf32>
    %180 = vector.extract_strided_slice %179 {offsets = [0, 0], sizes = [8, 128], strides = [1, 1]} : vector<8x512xf32> to vector<8x128xf32>
    %181 = arith.negf %180 : vector<8x128xf32>
    %182 = math.exp %181 : vector<8x128xf32>
    %cst_34 = arith.constant 1.000000e+00 : f32
    %183 = vector.broadcast %cst_34 : f32 to vector<8x128xf32>
    %184 = arith.addf %183, %182 : vector<8x128xf32>
    %185 = arith.divf %183, %184 : vector<8x128xf32>
    %186 = vector.extract_strided_slice %179 {offsets = [0, 128], sizes = [8, 128], strides = [1, 1]} : vector<8x512xf32> to vector<8x128xf32>
    %187 = arith.negf %186 : vector<8x128xf32>
    %188 = math.exp %187 : vector<8x128xf32>
    %cst_35 = arith.constant 1.000000e+00 : f32
    %189 = vector.broadcast %cst_35 : f32 to vector<8x128xf32>
    %190 = arith.addf %189, %188 : vector<8x128xf32>
    %191 = arith.divf %189, %190 : vector<8x128xf32>
    %192 = vector.extract_strided_slice %179 {offsets = [0, 256], sizes = [8, 128], strides = [1, 1]} : vector<8x512xf32> to vector<8x128xf32>
    %193 = math.tanh %192 : vector<8x128xf32>
    %194 = vector.extract_strided_slice %179 {offsets = [0, 384], sizes = [8, 128], strides = [1, 1]} : vector<8x512xf32> to vector<8x128xf32>
    %195 = arith.negf %194 : vector<8x128xf32>
    %196 = math.exp %195 : vector<8x128xf32>
    %cst_36 = arith.constant 1.000000e+00 : f32
    %197 = vector.broadcast %cst_36 : f32 to vector<8x128xf32>
    %198 = arith.addf %197, %196 : vector<8x128xf32>
    %199 = arith.divf %197, %198 : vector<8x128xf32>
    %200 = arith.mulf %191, %174 : vector<8x128xf32>
    %201 = arith.mulf %185, %193 : vector<8x128xf32>
    %202 = arith.addf %200, %201 : vector<8x128xf32>
    %203 = math.tanh %202 : vector<8x128xf32>
    %204 = arith.mulf %199, %203 : vector<8x128xf32>
    %205 = vector.extract_strided_slice %5 {offsets = [56, 0], sizes = [8, 512], strides = [1, 1]} : vector<64x512xf32> to vector<8x512xf32>
    %cst_37 = arith.constant dense<0.000000e+00> : vector<8x512xf32>
    %206 = tpu.matmul %204, %6, %cst_37 {dimension_numbers = #tpu.dot_dimension_numbers<[1], [0], [0], [1], [0, 0, 1, 1], [], []>} : vector<8x128xf32>, vector<128x512xf32>, vector<8x512xf32> -> vector<8x512xf32>
    %207 = arith.addf %205, %206 : vector<8x512xf32>
    %208 = vector.extract_strided_slice %207 {offsets = [0, 0], sizes = [8, 128], strides = [1, 1]} : vector<8x512xf32> to vector<8x128xf32>
    %209 = arith.negf %208 : vector<8x128xf32>
    %210 = math.exp %209 : vector<8x128xf32>
    %cst_38 = arith.constant 1.000000e+00 : f32
    %211 = vector.broadcast %cst_38 : f32 to vector<8x128xf32>
    %212 = arith.addf %211, %210 : vector<8x128xf32>
    %213 = arith.divf %211, %212 : vector<8x128xf32>
    %214 = vector.extract_strided_slice %207 {offsets = [0, 128], sizes = [8, 128], strides = [1, 1]} : vector<8x512xf32> to vector<8x128xf32>
    %215 = arith.negf %214 : vector<8x128xf32>
    %216 = math.exp %215 : vector<8x128xf32>
    %cst_39 = arith.constant 1.000000e+00 : f32
    %217 = vector.broadcast %cst_39 : f32 to vector<8x128xf32>
    %218 = arith.addf %217, %216 : vector<8x128xf32>
    %219 = arith.divf %217, %218 : vector<8x128xf32>
    %220 = vector.extract_strided_slice %207 {offsets = [0, 256], sizes = [8, 128], strides = [1, 1]} : vector<8x512xf32> to vector<8x128xf32>
    %221 = math.tanh %220 : vector<8x128xf32>
    %222 = vector.extract_strided_slice %207 {offsets = [0, 384], sizes = [8, 128], strides = [1, 1]} : vector<8x512xf32> to vector<8x128xf32>
    %223 = arith.negf %222 : vector<8x128xf32>
    %224 = math.exp %223 : vector<8x128xf32>
    %cst_40 = arith.constant 1.000000e+00 : f32
    %225 = vector.broadcast %cst_40 : f32 to vector<8x128xf32>
    %226 = arith.addf %225, %224 : vector<8x128xf32>
    %227 = arith.divf %225, %226 : vector<8x128xf32>
    %228 = arith.mulf %219, %202 : vector<8x128xf32>
    %229 = arith.mulf %213, %221 : vector<8x128xf32>
    %230 = arith.addf %228, %229 : vector<8x128xf32>
    %231 = math.tanh %230 : vector<8x128xf32>
    %232 = arith.mulf %227, %231 : vector<8x128xf32>
    %233 = tpu.concatenate %36, %64, %92, %120, %148, %176, %204, %232 in 0 : vector<8x128xf32>, vector<8x128xf32>, vector<8x128xf32>, vector<8x128xf32>, vector<8x128xf32>, vector<8x128xf32>, vector<8x128xf32>, vector<8x128xf32> -> vector<64x128xf32>
    %c0_41 = arith.constant 0 : index
    %c0_42 = arith.constant 0 : index
    %234 = vector.load %arg4[%c0_41, %c0_42] : memref<128x512xf32, #tpu.memory_space<vmem>>, vector<128x512xf32>
    %cst_43 = arith.constant dense<0.000000e+00> : vector<64x512xf32>
    %235 = tpu.matmul %233, %234, %cst_43 {dimension_numbers = #tpu.dot_dimension_numbers<[1], [0], [0], [1], [0, 0, 1, 1], [], []>} : vector<64x128xf32>, vector<128x512xf32>, vector<64x512xf32> -> vector<64x512xf32>
    %c0_44 = arith.constant 0 : index
    %c0_45 = arith.constant 0 : index
    %236 = vector.load %arg6[%c0_44, %c0_45] : memref<1x512xf32, #tpu.memory_space<vmem>>, vector<1x512xf32>
    %237 = vector.broadcast %236 : vector<1x512xf32> to vector<64x512xf32>
    %238 = arith.addf %235, %237 : vector<64x512xf32>
    %c0_46 = arith.constant 0 : index
    %c0_47 = arith.constant 0 : index
    %239 = vector.load %arg5[%c0_46, %c0_47] : memref<128x512xf32, #tpu.memory_space<vmem>>, vector<128x512xf32>
    %cst_48 = arith.constant 0.000000e+00 : f32
    %240 = vector.broadcast %cst_48 : f32 to vector<8x128xf32>
    %cst_49 = arith.constant 0.000000e+00 : f32
    %241 = vector.broadcast %cst_49 : f32 to vector<8x128xf32>
    %242 = vector.extract_strided_slice %238 {offsets = [0, 0], sizes = [8, 512], strides = [1, 1]} : vector<64x512xf32> to vector<8x512xf32>
    %cst_50 = arith.constant dense<0.000000e+00> : vector<8x512xf32>
    %243 = tpu.matmul %240, %239, %cst_50 {dimension_numbers = #tpu.dot_dimension_numbers<[1], [0], [0], [1], [0, 0, 1, 1], [], []>} : vector<8x128xf32>, vector<128x512xf32>, vector<8x512xf32> -> vector<8x512xf32>
    %244 = arith.addf %242, %243 : vector<8x512xf32>
    %245 = vector.extract_strided_slice %244 {offsets = [0, 0], sizes = [8, 128], strides = [1, 1]} : vector<8x512xf32> to vector<8x128xf32>
    %246 = arith.negf %245 : vector<8x128xf32>
    %247 = math.exp %246 : vector<8x128xf32>
    %cst_51 = arith.constant 1.000000e+00 : f32
    %248 = vector.broadcast %cst_51 : f32 to vector<8x128xf32>
    %249 = arith.addf %248, %247 : vector<8x128xf32>
    %250 = arith.divf %248, %249 : vector<8x128xf32>
    %251 = vector.extract_strided_slice %244 {offsets = [0, 128], sizes = [8, 128], strides = [1, 1]} : vector<8x512xf32> to vector<8x128xf32>
    %252 = arith.negf %251 : vector<8x128xf32>
    %253 = math.exp %252 : vector<8x128xf32>
    %cst_52 = arith.constant 1.000000e+00 : f32
    %254 = vector.broadcast %cst_52 : f32 to vector<8x128xf32>
    %255 = arith.addf %254, %253 : vector<8x128xf32>
    %256 = arith.divf %254, %255 : vector<8x128xf32>
    %257 = vector.extract_strided_slice %244 {offsets = [0, 256], sizes = [8, 128], strides = [1, 1]} : vector<8x512xf32> to vector<8x128xf32>
    %258 = math.tanh %257 : vector<8x128xf32>
    %259 = vector.extract_strided_slice %244 {offsets = [0, 384], sizes = [8, 128], strides = [1, 1]} : vector<8x512xf32> to vector<8x128xf32>
    %260 = arith.negf %259 : vector<8x128xf32>
    %261 = math.exp %260 : vector<8x128xf32>
    %cst_53 = arith.constant 1.000000e+00 : f32
    %262 = vector.broadcast %cst_53 : f32 to vector<8x128xf32>
    %263 = arith.addf %262, %261 : vector<8x128xf32>
    %264 = arith.divf %262, %263 : vector<8x128xf32>
    %265 = arith.mulf %256, %241 : vector<8x128xf32>
    %266 = arith.mulf %250, %258 : vector<8x128xf32>
    %267 = arith.addf %265, %266 : vector<8x128xf32>
    %268 = math.tanh %267 : vector<8x128xf32>
    %269 = arith.mulf %264, %268 : vector<8x128xf32>
    %270 = vector.extract_strided_slice %238 {offsets = [8, 0], sizes = [8, 512], strides = [1, 1]} : vector<64x512xf32> to vector<8x512xf32>
    %cst_54 = arith.constant dense<0.000000e+00> : vector<8x512xf32>
    %271 = tpu.matmul %269, %239, %cst_54 {dimension_numbers = #tpu.dot_dimension_numbers<[1], [0], [0], [1], [0, 0, 1, 1], [], []>} : vector<8x128xf32>, vector<128x512xf32>, vector<8x512xf32> -> vector<8x512xf32>
    %272 = arith.addf %270, %271 : vector<8x512xf32>
    %273 = vector.extract_strided_slice %272 {offsets = [0, 0], sizes = [8, 128], strides = [1, 1]} : vector<8x512xf32> to vector<8x128xf32>
    %274 = arith.negf %273 : vector<8x128xf32>
    %275 = math.exp %274 : vector<8x128xf32>
    %cst_55 = arith.constant 1.000000e+00 : f32
    %276 = vector.broadcast %cst_55 : f32 to vector<8x128xf32>
    %277 = arith.addf %276, %275 : vector<8x128xf32>
    %278 = arith.divf %276, %277 : vector<8x128xf32>
    %279 = vector.extract_strided_slice %272 {offsets = [0, 128], sizes = [8, 128], strides = [1, 1]} : vector<8x512xf32> to vector<8x128xf32>
    %280 = arith.negf %279 : vector<8x128xf32>
    %281 = math.exp %280 : vector<8x128xf32>
    %cst_56 = arith.constant 1.000000e+00 : f32
    %282 = vector.broadcast %cst_56 : f32 to vector<8x128xf32>
    %283 = arith.addf %282, %281 : vector<8x128xf32>
    %284 = arith.divf %282, %283 : vector<8x128xf32>
    %285 = vector.extract_strided_slice %272 {offsets = [0, 256], sizes = [8, 128], strides = [1, 1]} : vector<8x512xf32> to vector<8x128xf32>
    %286 = math.tanh %285 : vector<8x128xf32>
    %287 = vector.extract_strided_slice %272 {offsets = [0, 384], sizes = [8, 128], strides = [1, 1]} : vector<8x512xf32> to vector<8x128xf32>
    %288 = arith.negf %287 : vector<8x128xf32>
    %289 = math.exp %288 : vector<8x128xf32>
    %cst_57 = arith.constant 1.000000e+00 : f32
    %290 = vector.broadcast %cst_57 : f32 to vector<8x128xf32>
    %291 = arith.addf %290, %289 : vector<8x128xf32>
    %292 = arith.divf %290, %291 : vector<8x128xf32>
    %293 = arith.mulf %284, %267 : vector<8x128xf32>
    %294 = arith.mulf %278, %286 : vector<8x128xf32>
    %295 = arith.addf %293, %294 : vector<8x128xf32>
    %296 = math.tanh %295 : vector<8x128xf32>
    %297 = arith.mulf %292, %296 : vector<8x128xf32>
    %298 = vector.extract_strided_slice %238 {offsets = [16, 0], sizes = [8, 512], strides = [1, 1]} : vector<64x512xf32> to vector<8x512xf32>
    %cst_58 = arith.constant dense<0.000000e+00> : vector<8x512xf32>
    %299 = tpu.matmul %297, %239, %cst_58 {dimension_numbers = #tpu.dot_dimension_numbers<[1], [0], [0], [1], [0, 0, 1, 1], [], []>} : vector<8x128xf32>, vector<128x512xf32>, vector<8x512xf32> -> vector<8x512xf32>
    %300 = arith.addf %298, %299 : vector<8x512xf32>
    %301 = vector.extract_strided_slice %300 {offsets = [0, 0], sizes = [8, 128], strides = [1, 1]} : vector<8x512xf32> to vector<8x128xf32>
    %302 = arith.negf %301 : vector<8x128xf32>
    %303 = math.exp %302 : vector<8x128xf32>
    %cst_59 = arith.constant 1.000000e+00 : f32
    %304 = vector.broadcast %cst_59 : f32 to vector<8x128xf32>
    %305 = arith.addf %304, %303 : vector<8x128xf32>
    %306 = arith.divf %304, %305 : vector<8x128xf32>
    %307 = vector.extract_strided_slice %300 {offsets = [0, 128], sizes = [8, 128], strides = [1, 1]} : vector<8x512xf32> to vector<8x128xf32>
    %308 = arith.negf %307 : vector<8x128xf32>
    %309 = math.exp %308 : vector<8x128xf32>
    %cst_60 = arith.constant 1.000000e+00 : f32
    %310 = vector.broadcast %cst_60 : f32 to vector<8x128xf32>
    %311 = arith.addf %310, %309 : vector<8x128xf32>
    %312 = arith.divf %310, %311 : vector<8x128xf32>
    %313 = vector.extract_strided_slice %300 {offsets = [0, 256], sizes = [8, 128], strides = [1, 1]} : vector<8x512xf32> to vector<8x128xf32>
    %314 = math.tanh %313 : vector<8x128xf32>
    %315 = vector.extract_strided_slice %300 {offsets = [0, 384], sizes = [8, 128], strides = [1, 1]} : vector<8x512xf32> to vector<8x128xf32>
    %316 = arith.negf %315 : vector<8x128xf32>
    %317 = math.exp %316 : vector<8x128xf32>
    %cst_61 = arith.constant 1.000000e+00 : f32
    %318 = vector.broadcast %cst_61 : f32 to vector<8x128xf32>
    %319 = arith.addf %318, %317 : vector<8x128xf32>
    %320 = arith.divf %318, %319 : vector<8x128xf32>
    %321 = arith.mulf %312, %295 : vector<8x128xf32>
    %322 = arith.mulf %306, %314 : vector<8x128xf32>
    %323 = arith.addf %321, %322 : vector<8x128xf32>
    %324 = math.tanh %323 : vector<8x128xf32>
    %325 = arith.mulf %320, %324 : vector<8x128xf32>
    %326 = vector.extract_strided_slice %238 {offsets = [24, 0], sizes = [8, 512], strides = [1, 1]} : vector<64x512xf32> to vector<8x512xf32>
    %cst_62 = arith.constant dense<0.000000e+00> : vector<8x512xf32>
    %327 = tpu.matmul %325, %239, %cst_62 {dimension_numbers = #tpu.dot_dimension_numbers<[1], [0], [0], [1], [0, 0, 1, 1], [], []>} : vector<8x128xf32>, vector<128x512xf32>, vector<8x512xf32> -> vector<8x512xf32>
    %328 = arith.addf %326, %327 : vector<8x512xf32>
    %329 = vector.extract_strided_slice %328 {offsets = [0, 0], sizes = [8, 128], strides = [1, 1]} : vector<8x512xf32> to vector<8x128xf32>
    %330 = arith.negf %329 : vector<8x128xf32>
    %331 = math.exp %330 : vector<8x128xf32>
    %cst_63 = arith.constant 1.000000e+00 : f32
    %332 = vector.broadcast %cst_63 : f32 to vector<8x128xf32>
    %333 = arith.addf %332, %331 : vector<8x128xf32>
    %334 = arith.divf %332, %333 : vector<8x128xf32>
    %335 = vector.extract_strided_slice %328 {offsets = [0, 128], sizes = [8, 128], strides = [1, 1]} : vector<8x512xf32> to vector<8x128xf32>
    %336 = arith.negf %335 : vector<8x128xf32>
    %337 = math.exp %336 : vector<8x128xf32>
    %cst_64 = arith.constant 1.000000e+00 : f32
    %338 = vector.broadcast %cst_64 : f32 to vector<8x128xf32>
    %339 = arith.addf %338, %337 : vector<8x128xf32>
    %340 = arith.divf %338, %339 : vector<8x128xf32>
    %341 = vector.extract_strided_slice %328 {offsets = [0, 256], sizes = [8, 128], strides = [1, 1]} : vector<8x512xf32> to vector<8x128xf32>
    %342 = math.tanh %341 : vector<8x128xf32>
    %343 = vector.extract_strided_slice %328 {offsets = [0, 384], sizes = [8, 128], strides = [1, 1]} : vector<8x512xf32> to vector<8x128xf32>
    %344 = arith.negf %343 : vector<8x128xf32>
    %345 = math.exp %344 : vector<8x128xf32>
    %cst_65 = arith.constant 1.000000e+00 : f32
    %346 = vector.broadcast %cst_65 : f32 to vector<8x128xf32>
    %347 = arith.addf %346, %345 : vector<8x128xf32>
    %348 = arith.divf %346, %347 : vector<8x128xf32>
    %349 = arith.mulf %340, %323 : vector<8x128xf32>
    %350 = arith.mulf %334, %342 : vector<8x128xf32>
    %351 = arith.addf %349, %350 : vector<8x128xf32>
    %352 = math.tanh %351 : vector<8x128xf32>
    %353 = arith.mulf %348, %352 : vector<8x128xf32>
    %354 = vector.extract_strided_slice %238 {offsets = [32, 0], sizes = [8, 512], strides = [1, 1]} : vector<64x512xf32> to vector<8x512xf32>
    %cst_66 = arith.constant dense<0.000000e+00> : vector<8x512xf32>
    %355 = tpu.matmul %353, %239, %cst_66 {dimension_numbers = #tpu.dot_dimension_numbers<[1], [0], [0], [1], [0, 0, 1, 1], [], []>} : vector<8x128xf32>, vector<128x512xf32>, vector<8x512xf32> -> vector<8x512xf32>
    %356 = arith.addf %354, %355 : vector<8x512xf32>
    %357 = vector.extract_strided_slice %356 {offsets = [0, 0], sizes = [8, 128], strides = [1, 1]} : vector<8x512xf32> to vector<8x128xf32>
    %358 = arith.negf %357 : vector<8x128xf32>
    %359 = math.exp %358 : vector<8x128xf32>
    %cst_67 = arith.constant 1.000000e+00 : f32
    %360 = vector.broadcast %cst_67 : f32 to vector<8x128xf32>
    %361 = arith.addf %360, %359 : vector<8x128xf32>
    %362 = arith.divf %360, %361 : vector<8x128xf32>
    %363 = vector.extract_strided_slice %356 {offsets = [0, 128], sizes = [8, 128], strides = [1, 1]} : vector<8x512xf32> to vector<8x128xf32>
    %364 = arith.negf %363 : vector<8x128xf32>
    %365 = math.exp %364 : vector<8x128xf32>
    %cst_68 = arith.constant 1.000000e+00 : f32
    %366 = vector.broadcast %cst_68 : f32 to vector<8x128xf32>
    %367 = arith.addf %366, %365 : vector<8x128xf32>
    %368 = arith.divf %366, %367 : vector<8x128xf32>
    %369 = vector.extract_strided_slice %356 {offsets = [0, 256], sizes = [8, 128], strides = [1, 1]} : vector<8x512xf32> to vector<8x128xf32>
    %370 = math.tanh %369 : vector<8x128xf32>
    %371 = vector.extract_strided_slice %356 {offsets = [0, 384], sizes = [8, 128], strides = [1, 1]} : vector<8x512xf32> to vector<8x128xf32>
    %372 = arith.negf %371 : vector<8x128xf32>
    %373 = math.exp %372 : vector<8x128xf32>
    %cst_69 = arith.constant 1.000000e+00 : f32
    %374 = vector.broadcast %cst_69 : f32 to vector<8x128xf32>
    %375 = arith.addf %374, %373 : vector<8x128xf32>
    %376 = arith.divf %374, %375 : vector<8x128xf32>
    %377 = arith.mulf %368, %351 : vector<8x128xf32>
    %378 = arith.mulf %362, %370 : vector<8x128xf32>
    %379 = arith.addf %377, %378 : vector<8x128xf32>
    %380 = math.tanh %379 : vector<8x128xf32>
    %381 = arith.mulf %376, %380 : vector<8x128xf32>
    %382 = vector.extract_strided_slice %238 {offsets = [40, 0], sizes = [8, 512], strides = [1, 1]} : vector<64x512xf32> to vector<8x512xf32>
    %cst_70 = arith.constant dense<0.000000e+00> : vector<8x512xf32>
    %383 = tpu.matmul %381, %239, %cst_70 {dimension_numbers = #tpu.dot_dimension_numbers<[1], [0], [0], [1], [0, 0, 1, 1], [], []>} : vector<8x128xf32>, vector<128x512xf32>, vector<8x512xf32> -> vector<8x512xf32>
    %384 = arith.addf %382, %383 : vector<8x512xf32>
    %385 = vector.extract_strided_slice %384 {offsets = [0, 0], sizes = [8, 128], strides = [1, 1]} : vector<8x512xf32> to vector<8x128xf32>
    %386 = arith.negf %385 : vector<8x128xf32>
    %387 = math.exp %386 : vector<8x128xf32>
    %cst_71 = arith.constant 1.000000e+00 : f32
    %388 = vector.broadcast %cst_71 : f32 to vector<8x128xf32>
    %389 = arith.addf %388, %387 : vector<8x128xf32>
    %390 = arith.divf %388, %389 : vector<8x128xf32>
    %391 = vector.extract_strided_slice %384 {offsets = [0, 128], sizes = [8, 128], strides = [1, 1]} : vector<8x512xf32> to vector<8x128xf32>
    %392 = arith.negf %391 : vector<8x128xf32>
    %393 = math.exp %392 : vector<8x128xf32>
    %cst_72 = arith.constant 1.000000e+00 : f32
    %394 = vector.broadcast %cst_72 : f32 to vector<8x128xf32>
    %395 = arith.addf %394, %393 : vector<8x128xf32>
    %396 = arith.divf %394, %395 : vector<8x128xf32>
    %397 = vector.extract_strided_slice %384 {offsets = [0, 256], sizes = [8, 128], strides = [1, 1]} : vector<8x512xf32> to vector<8x128xf32>
    %398 = math.tanh %397 : vector<8x128xf32>
    %399 = vector.extract_strided_slice %384 {offsets = [0, 384], sizes = [8, 128], strides = [1, 1]} : vector<8x512xf32> to vector<8x128xf32>
    %400 = arith.negf %399 : vector<8x128xf32>
    %401 = math.exp %400 : vector<8x128xf32>
    %cst_73 = arith.constant 1.000000e+00 : f32
    %402 = vector.broadcast %cst_73 : f32 to vector<8x128xf32>
    %403 = arith.addf %402, %401 : vector<8x128xf32>
    %404 = arith.divf %402, %403 : vector<8x128xf32>
    %405 = arith.mulf %396, %379 : vector<8x128xf32>
    %406 = arith.mulf %390, %398 : vector<8x128xf32>
    %407 = arith.addf %405, %406 : vector<8x128xf32>
    %408 = math.tanh %407 : vector<8x128xf32>
    %409 = arith.mulf %404, %408 : vector<8x128xf32>
    %410 = vector.extract_strided_slice %238 {offsets = [48, 0], sizes = [8, 512], strides = [1, 1]} : vector<64x512xf32> to vector<8x512xf32>
    %cst_74 = arith.constant dense<0.000000e+00> : vector<8x512xf32>
    %411 = tpu.matmul %409, %239, %cst_74 {dimension_numbers = #tpu.dot_dimension_numbers<[1], [0], [0], [1], [0, 0, 1, 1], [], []>} : vector<8x128xf32>, vector<128x512xf32>, vector<8x512xf32> -> vector<8x512xf32>
    %412 = arith.addf %410, %411 : vector<8x512xf32>
    %413 = vector.extract_strided_slice %412 {offsets = [0, 0], sizes = [8, 128], strides = [1, 1]} : vector<8x512xf32> to vector<8x128xf32>
    %414 = arith.negf %413 : vector<8x128xf32>
    %415 = math.exp %414 : vector<8x128xf32>
    %cst_75 = arith.constant 1.000000e+00 : f32
    %416 = vector.broadcast %cst_75 : f32 to vector<8x128xf32>
    %417 = arith.addf %416, %415 : vector<8x128xf32>
    %418 = arith.divf %416, %417 : vector<8x128xf32>
    %419 = vector.extract_strided_slice %412 {offsets = [0, 128], sizes = [8, 128], strides = [1, 1]} : vector<8x512xf32> to vector<8x128xf32>
    %420 = arith.negf %419 : vector<8x128xf32>
    %421 = math.exp %420 : vector<8x128xf32>
    %cst_76 = arith.constant 1.000000e+00 : f32
    %422 = vector.broadcast %cst_76 : f32 to vector<8x128xf32>
    %423 = arith.addf %422, %421 : vector<8x128xf32>
    %424 = arith.divf %422, %423 : vector<8x128xf32>
    %425 = vector.extract_strided_slice %412 {offsets = [0, 256], sizes = [8, 128], strides = [1, 1]} : vector<8x512xf32> to vector<8x128xf32>
    %426 = math.tanh %425 : vector<8x128xf32>
    %427 = vector.extract_strided_slice %412 {offsets = [0, 384], sizes = [8, 128], strides = [1, 1]} : vector<8x512xf32> to vector<8x128xf32>
    %428 = arith.negf %427 : vector<8x128xf32>
    %429 = math.exp %428 : vector<8x128xf32>
    %cst_77 = arith.constant 1.000000e+00 : f32
    %430 = vector.broadcast %cst_77 : f32 to vector<8x128xf32>
    %431 = arith.addf %430, %429 : vector<8x128xf32>
    %432 = arith.divf %430, %431 : vector<8x128xf32>
    %433 = arith.mulf %424, %407 : vector<8x128xf32>
    %434 = arith.mulf %418, %426 : vector<8x128xf32>
    %435 = arith.addf %433, %434 : vector<8x128xf32>
    %436 = math.tanh %435 : vector<8x128xf32>
    %437 = arith.mulf %432, %436 : vector<8x128xf32>
    %438 = vector.extract_strided_slice %238 {offsets = [56, 0], sizes = [8, 512], strides = [1, 1]} : vector<64x512xf32> to vector<8x512xf32>
    %cst_78 = arith.constant dense<0.000000e+00> : vector<8x512xf32>
    %439 = tpu.matmul %437, %239, %cst_78 {dimension_numbers = #tpu.dot_dimension_numbers<[1], [0], [0], [1], [0, 0, 1, 1], [], []>} : vector<8x128xf32>, vector<128x512xf32>, vector<8x512xf32> -> vector<8x512xf32>
    %440 = arith.addf %438, %439 : vector<8x512xf32>
    %441 = vector.extract_strided_slice %440 {offsets = [0, 0], sizes = [8, 128], strides = [1, 1]} : vector<8x512xf32> to vector<8x128xf32>
    %442 = arith.negf %441 : vector<8x128xf32>
    %443 = math.exp %442 : vector<8x128xf32>
    %cst_79 = arith.constant 1.000000e+00 : f32
    %444 = vector.broadcast %cst_79 : f32 to vector<8x128xf32>
    %445 = arith.addf %444, %443 : vector<8x128xf32>
    %446 = arith.divf %444, %445 : vector<8x128xf32>
    %447 = vector.extract_strided_slice %440 {offsets = [0, 128], sizes = [8, 128], strides = [1, 1]} : vector<8x512xf32> to vector<8x128xf32>
    %448 = arith.negf %447 : vector<8x128xf32>
    %449 = math.exp %448 : vector<8x128xf32>
    %cst_80 = arith.constant 1.000000e+00 : f32
    %450 = vector.broadcast %cst_80 : f32 to vector<8x128xf32>
    %451 = arith.addf %450, %449 : vector<8x128xf32>
    %452 = arith.divf %450, %451 : vector<8x128xf32>
    %453 = vector.extract_strided_slice %440 {offsets = [0, 256], sizes = [8, 128], strides = [1, 1]} : vector<8x512xf32> to vector<8x128xf32>
    %454 = math.tanh %453 : vector<8x128xf32>
    %455 = vector.extract_strided_slice %440 {offsets = [0, 384], sizes = [8, 128], strides = [1, 1]} : vector<8x512xf32> to vector<8x128xf32>
    %456 = arith.negf %455 : vector<8x128xf32>
    %457 = math.exp %456 : vector<8x128xf32>
    %cst_81 = arith.constant 1.000000e+00 : f32
    %458 = vector.broadcast %cst_81 : f32 to vector<8x128xf32>
    %459 = arith.addf %458, %457 : vector<8x128xf32>
    %460 = arith.divf %458, %459 : vector<8x128xf32>
    %461 = arith.mulf %452, %435 : vector<8x128xf32>
    %462 = arith.mulf %446, %454 : vector<8x128xf32>
    %463 = arith.addf %461, %462 : vector<8x128xf32>
    %464 = math.tanh %463 : vector<8x128xf32>
    %465 = arith.mulf %460, %464 : vector<8x128xf32>
    %c0_82 = arith.constant 0 : index
    %c0_83 = arith.constant 0 : index
    %466 = vector.load %arg7[%c0_82, %c0_83] : memref<128x1xf32, #tpu.memory_space<vmem>>, vector<128x1xf32>
    %cst_84 = arith.constant dense<0.000000e+00> : vector<8x1xf32>
    %467 = tpu.matmul %465, %466, %cst_84 {dimension_numbers = #tpu.dot_dimension_numbers<[1], [0], [0], [1], [0, 0, 1, 1], [], []>} : vector<8x128xf32>, vector<128x1xf32>, vector<8x1xf32> -> vector<8x1xf32>
    %c0_85 = arith.constant 0 : index
    %c0_86 = arith.constant 0 : index
    %468 = vector.load %arg8[%c0_85, %c0_86] : memref<1x1xf32, #tpu.memory_space<vmem>>, vector<1x1xf32>
    %469 = vector.broadcast %468 : vector<1x1xf32> to vector<8x1xf32>
    %470 = arith.addf %467, %469 : vector<8x1xf32>
    %c0_87 = arith.constant 0 : index
    %c0_88 = arith.constant 0 : index
    %471 = vector.load %arg9[%c0_87, %c0_88] : memref<8x1xf32, #tpu.memory_space<vmem>>, vector<8x1xf32>
    tpu.vector_store %arg9[%c0_87, %c0_88], %470 {strides = array<i32>} : memref<8x1xf32, #tpu.memory_space<vmem>>, vector<8x1xf32>,
    return
  }
}

</mosaic_0001>

<bundles_post_ra>
// kernel: price_prediction_forward.1
= control target key start
LH: loop header
LB: loop body
LE: loop exit
PB: predicated region body
PF: predicated region fallthrough
CT: control target
= control target key end

     0   :  { %s6458_s0 = inlined_call_operand.vmem [shape: f32[64,4], index: 0, kind: input, shape index: {}]   ;;  %s6459_s1 = inlined_call_operand.vmem [shape: f32[4,512], index: 1, kind: input, shape index: {}]   ;;  %s6460_s2 = inlined_call_operand.hbm [shape: f32[128,512], index: 2, kind: input, shape index: {}]   ;;  %s6461_s3 = inlined_call_operand.vmem [shape: f32[1,512], index: 3, kind: input, shape index: {}]   ;;  %s6462_s4 = inlined_call_operand.hbm [shape: f32[128,512], index: 4, kind: input, shape index: {}]   ;;  %s6463_s5 = inlined_call_operand.hbm [shape: f32[128,512], index: 5, kind: input, shape index: {}]   ;;  %s6464_s6 = inlined_call_operand.vmem [shape: f32[1,512], index: 6, kind: input, shape index: {}]   ;;  %s6465_s7 = inlined_call_operand.vmem [shape: f32[128,1], index: 7, kind: input, shape index: {}]   ;;  %s6466_s8 = inlined_call_operand.<no memory space> [shape: f32[1,1], index: 8, kind: input, shape index: {}]   ;;  %s6467_s9 = inlined_call_operand.vmem [shape: f32[8,1], index: 9, kind: output, shape index: {}]  }
   0x1   :  { %v14_v0 = vstv %s6466_s8 }
   0x2   :  { %15 = vst [vmem:[#allocation2] sm:$0x1] %v14_v0 }
   0x3   :  { %16 = vsyncpa [#allocation4], 0 }
   0x4   :  { %17 = vsyncpa [#allocation6], 0  ;;  %s5329_s11 = smov [#allocation5]   ;;  %s5330_s13 = smov [#allocation3]  }
   0x5   :  { %s41_s12 = sshll.u32 %s5329_s11, 4  ;;  %s27_s14 = sshll.u32 %s5330_s13, 4  ;;  %s42_s12 = int_to_ptr.vmem [resolvable:$true] %s41_s12  ;;  %s5390_s14 = int_to_ptr.vmem [resolvable:$true] %s27_s14 }
   0x6   :  { %s5259_s17 = scalar_lea.hbm %s6462_s4, 8192 }
   0x7   :  { %p5260_p0 = scmp.ne.s32.totalorder %s6462_s4, %s5259_s17  ;;  %p5263_p1 = scmp.lt.u32.totalorder %s5259_s17, %s6462_s4 }
   0x9   :  { %p5265_p2 = pnand %p5263_p1, %p5260_p0 }
   0xb   :  { %5268 = shalt.err (!%p5265_p2)
}
   0xc   :  { %s5269_s21 = scalar_lea.vmem %s42_s12, 8192  ;;  %p5274_p4 = scmp.lt.s32.totalorder %s42_s12, %s42_s12 }
   0xd   :  { %p5270_p3 = scmp.ne.s32.totalorder %s42_s12, %s5269_s21  ;;  %p5275_p5 = scmp.lt.s32.totalorder %s5269_s21, %s5269_s21 }
   0xf   :  { %p5276_p6 = por %p5275_p5, %p5274_p4 }
  0x11   :  { %p5277_p7 = pnand %p5276_p6, %p5270_p3 }
  0x13   :  { %5280 = shalt.err (!%p5277_p7)
}
  0x14   :  { %s5331_s22 = smov 512   ;;  %s5332_s23 = smov 32  }
  0x15   :  { %47 = dma.hbm_to_vmem [thread:$0]  %s6462_s4, 8192, %s42_s12, [#allocation6], %s5331_s22, %s5331_s22, %s5332_s23  }
  0x16   :  { %s5281_s28 = scalar_lea.hbm %s6460_s2, 8192 }
  0x17   :  { %p5282_p8 = scmp.ne.s32.totalorder %s6460_s2, %s5281_s28  ;;  %p5285_p9 = scmp.lt.u32.totalorder %s5281_s28, %s6460_s2 }
  0x19   :  { %p5287_p10 = pnand %p5285_p9, %p5282_p8 }
  0x1b   :  { %5290 = shalt.err (!%p5287_p10)
}
  0x1c   :  { %s5291_s13 = scalar_lea.vmem %s5390_s14, 8192  ;;  %p5296_p12 = scmp.lt.s32.totalorder %s5390_s14, %s5390_s14 }
  0x1d   :  { %p5292_p11 = scmp.ne.s32.totalorder %s5390_s14, %s5291_s13  ;;  %p5297_p13 = scmp.lt.s32.totalorder %s5291_s13, %s5291_s13 }
  0x1f   :  { %p5298_p0 = por %p5297_p13, %p5296_p12 }
  0x21   :  { %p5299_p1 = pnand %p5298_p0, %p5292_p11 }
  0x23   :  { %5302 = shalt.err (!%p5299_p1)
}
  0x24   :  { %33 = dma.hbm_to_vmem [thread:$0]  %s6460_s2, 8192, %s5390_s14, [#allocation4], %s5331_s22, %s5331_s22, %s5332_s23  }
  0x25   :  { %s5333_s15 = smov [#allocation7]   ;;  %s5303_s19 = scalar_lea.hbm %s6463_s5, 8192 }
  0x26   :  { %s53_s16 = sshll.u32 %s5333_s15, 4  ;;  %p5304_p2 = scmp.ne.s32.totalorder %s6463_s5, %s5303_s19  ;;  %s54_s16 = int_to_ptr.vmem [resolvable:$true] %s53_s16 }
  0x27   :  { %p5307_p3 = scmp.lt.u32.totalorder %s5303_s19, %s6463_s5 }
  0x29   :  { %p5309_p4 = pnand %p5307_p3, %p5304_p2 }
  0x2b   :  { %5312 = shalt.err (!%p5309_p4)
}
  0x2c   :  { %s5313_s25 = scalar_lea.vmem %s54_s16, 8192  ;;  %p5318_p6 = scmp.lt.s32.totalorder %s54_s16, %s54_s16 }
  0x2d   :  { %p5314_p5 = scmp.ne.s32.totalorder %s54_s16, %s5313_s25  ;;  %p5319_p7 = scmp.lt.s32.totalorder %s5313_s25, %s5313_s25 }
  0x2f   :  { %p5320_p8 = por %p5319_p7, %p5318_p6 }
  0x31   :  { %p5321_p9 = pnand %p5320_p8, %p5314_p5 }
  0x33   :  { %5324 = shalt.err (!%p5321_p9)
}
  0x34   :  { %59 = dma.hbm_to_vmem [thread:$0]  %s6463_s5, 8192, %s54_s16, [#allocation6], %s5331_s22, %s5331_s22, %s5332_s23  }
  0x35   :  { %5325 = dma.done.wait [#allocation4], 8192  }
  0x36   :  { %5326 = vsyncadd [#allocation4], 4294959104 }
  0x37   :  { %5327 = dma.done.wait [#allocation6], 16384  }
  0x38   :  { %5328 = vsyncadd [#allocation6], 4294950912  ;;  %v5334_v1 = vmov 0.0   ;;  %v83_v2 = vld [vmem:[%s6459_s1] sm:$0xff]  ;;  %vm136_vm0 = vcmask 1043456   ;;  %v84_v3 = vld [vmem:[%s6459_s1 + $0x8] sm:$0xff] }
  0x39   :  { %209 = vmatprep.mubr.f32.mxu0 %v5334_v1  ;;  %322 = vmatprep.mubr.f32.mxu1 %v5334_v1  ;;  %v75_v4 = vld [vmem:[%s6458_s0] sm:$0xff]  ;;  %v109_v5 = vcombine.high %v83_v2, %v83_v2  ;;  %v110_v6 = vcombine.high %v84_v3, %v84_v3  ;;  %v372_v7 = vld [vmem:[#allocation3 + $0x8] sm:$0xff]  ;;  %vm111_vm1 = vcmask 31744   ;;  %v373_v16 = vld [vmem:[#allocation3 + $0x10] sm:$0xff]  ;;  %vm5336_vm2 = vmmov 0  }
  0x3a   :  { %v376_v8 = vld [vmem:[#allocation3 + $0x28] sm:$0xff]  ;;  %v374_v9 = vld [vmem:[#allocation3 + $0x18] sm:$0xff]  ;;  %v371_v12 = vld [vmem:[#allocation3] sm:$0xff]  ;;  %vm3624_vm3 = vcmask 7168  }
  0x3b   :  { %v5453_v10 = vpack.c.bf16 %v376_v8, %v372_v7  ;;  %v378_v11 = vld [vmem:[#allocation3 + $0x38] sm:$0xff]  ;;  %v375_v13 = vld [vmem:[#allocation3 + $0x20] sm:$0xff]  ;;  %3632 = vmatprep.subr.msk.mxu0 %vm136_vm0, %v109_v5  ;;  %3642 = vmatprep.subr.msk.mxu1 %vm136_vm0, %v110_v6  ;;  %v377_v17 = vld [vmem:[#allocation3 + $0x30] sm:$0xff] }
  0x3c   :  { %v5457_v14 = vpack.c.bf16 %v378_v11, %v374_v9  ;;  %v5459_v15 = vpack.c.bf16 %v375_v13, %v371_v12  ;;  %3633 = vmatpush1.msk.msra.mxu0 %vm136_vm0, %v83_v2  ;;  %3643 = vmatpush1.msk.msra.mxu1 %vm136_vm0, %v84_v3  ;;  %v5463_v18 = vpack.c.bf16 %v377_v17, %v373_v16  ;;  %v380_v19 = vld [vmem:[#allocation3 + $0x48] sm:$0xff]  ;;  %v382_v21 = vld [vmem:[#allocation3 + $0x58] sm:$0xff]  ;;  %v379_v23 = vld [vmem:[#allocation3 + $0x40] sm:$0xff] }
  0x3d   :  { %v384_v20 = vld [vmem:[#allocation3 + $0x68] sm:$0xff]  ;;  %3634 = vmatmul.mubr.msk.f32.vlgmr.msra.gmra.mrb[0].mxu0 %vm111_vm1, %v75_v4  ;;  %3644 = vmatmul.mubr.msk.f32.vlgmr.msra.gmra.mrb[0].mxu1 %vm111_vm1, %v75_v4  ;;  %v386_v22 = vld [vmem:[#allocation3 + $0x78] sm:$0xff]  ;;  %v383_v24 = vld [vmem:[#allocation3 + $0x60] sm:$0xff] }
  0x3e   :  { %3754 = vmatprep.subr.bf16.mxu0 %v5453_v10  ;;  %3786 = vmatprep.subr.bf16.mxu1 %v5457_v14  ;;  %v76_v25 = vld [vmem:[%s6458_s0 + $0x8] sm:$0xff]  ;;  %v5472_v26 = vpack.c.bf16 %v384_v20, %v380_v19  ;;  %v5474_v27 = vpack.c.bf16 %v386_v22, %v382_v21  ;;  %v381_v28 = vld [vmem:[#allocation3 + $0x50] sm:$0xff]  ;;  %v5478_v30 = vpack.c.bf16 %v383_v24, %v379_v23  ;;  %v390_v34 = vld [vmem:[#allocation3 + $0x98] sm:$0xff] }
  0x3f   :  { %v385_v29 = vld [vmem:[#allocation3 + $0x70] sm:$0xff]  ;;  %3756 = vmatpush1.bf16.msra.mxu0 %v5459_v15  ;;  %3788 = vmatpush1.bf16.msra.mxu1 %v5463_v18  ;;  %v388_v32 = vld [vmem:[#allocation3 + $0x88] sm:$0xff]  ;;  %v394_v35 = vld [vmem:[#allocation3 + $0xb8] sm:$0xff] }
  0x40   :  { %v5480_v31 = vpack.c.bf16 %v385_v29, %v381_v28  ;;  %v392_v33 = vld [vmem:[#allocation3 + $0xa8] sm:$0xff]  ;;  %215 = vmatprep.mubr.f32.mxu0 %v5334_v1  ;;  %328 = vmatprep.mubr.f32.mxu1 %v5334_v1  ;;  %v387_v36 = vld [vmem:[#allocation3 + $0x80] sm:$0xff]  ;;  %v389_v38 = vld [vmem:[#allocation3 + $0x90] sm:$0xff]  ;;  %v5493_v42 = vpack.c.bf16 %v394_v35, %v390_v34 }
  0x41   :  { %v391_v37 = vld [vmem:[#allocation3 + $0xa0] sm:$0xff]  ;;  %3635 = vmatmul.mubr.msk.f32.gmra.mrb[2].mxu0 %vm111_vm1, %v76_v25  ;;  %3645 = vmatmul.mubr.msk.f32.gmra.mrb[2].mxu1 %vm111_vm1, %v76_v25  ;;  %v393_v39 = vld [vmem:[#allocation3 + $0xb0] sm:$0xff]  ;;  %v5491_v41 = vpack.c.bf16 %v392_v33, %v388_v32  ;;  %v396_v43 = vld [vmem:[#allocation3 + $0xc8] sm:$0xff] }
  0x42   :  { %3758 = vmatprep.subr.bf16.mxu0 %v5472_v26  ;;  %3790 = vmatprep.subr.bf16.mxu1 %v5474_v27  ;;  %v77_v40 = vld [vmem:[%s6458_s0 + $0x10] sm:$0xff]  ;;  %v5497_v45 = vpack.c.bf16 %v391_v37, %v387_v36  ;;  %v5499_v46 = vpack.c.bf16 %v393_v39, %v389_v38  ;;  %v398_v47 = vld [vmem:[#allocation3 + $0xd8] sm:$0xff]  ;;  %v395_v49 = vld [vmem:[#allocation3 + $0xc0] sm:$0xff] }
  0x43   :  { %v400_v44 = vld [vmem:[#allocation3 + $0xe8] sm:$0xff]  ;;  %3760 = vmatpush1.bf16.msra.mxu0 %v5478_v30  ;;  %3792 = vmatpush1.bf16.msra.mxu1 %v5480_v31  ;;  %v402_v48 = vld [vmem:[#allocation3 + $0xf8] sm:$0xff]  ;;  %v399_v50 = vld [vmem:[#allocation3 + $0xe0] sm:$0xff] }
  0x44   :  { %221 = vmatprep.mubr.f32.mxu0 %v5334_v1  ;;  %334 = vmatprep.mubr.f32.mxu1 %v5334_v1  ;;  %v397_v51 = vld [vmem:[#allocation3 + $0xd0] sm:$0xff]  ;;  %v5510_v54 = vpack.c.bf16 %v400_v44, %v396_v43  ;;  %v5512_v55 = vpack.c.bf16 %v402_v48, %v398_v47  ;;  %v404_v56 = vld [vmem:[#allocation3 + $0x108] sm:$0xff]  ;;  %v5516_v58 = vpack.c.bf16 %v399_v50, %v395_v49  ;;  %v406_v60 = vld [vmem:[#allocation3 + $0x118] sm:$0xff] }
  0x45   :  { %v401_v52 = vld [vmem:[#allocation3 + $0xf0] sm:$0xff]  ;;  %3636 = vmatmul.mubr.msk.f32.gmra.mrb[4].mxu0 %vm111_vm1, %v77_v40  ;;  %3646 = vmatmul.mubr.msk.f32.gmra.mrb[4].mxu1 %vm111_vm1, %v77_v40  ;;  %v408_v57 = vld [vmem:[#allocation3 + $0x128] sm:$0xff]  ;;  %v410_v61 = vld [vmem:[#allocation3 + $0x138] sm:$0xff] }
  0x46   :  { %3762 = vmatprep.subr.bf16.mxu0 %v5491_v41  ;;  %3794 = vmatprep.subr.bf16.mxu1 %v5493_v42  ;;  %v78_v53 = vld [vmem:[%s6458_s0 + $0x18] sm:$0xff]  ;;  %v5518_v59 = vpack.c.bf16 %v401_v52, %v397_v51  ;;  %v403_v62 = vld [vmem:[#allocation3 + $0x100] sm:$0xff]  ;;  %v5529_v4 = vpack.c.bf16 %v408_v57, %v404_v56  ;;  %v5531_v5 = vpack.c.bf16 %v410_v61, %v406_v60  ;;  %v412_v6 = vld [vmem:[#allocation3 + $0x148] sm:$0xff] }
  0x47   :  { %3764 = vmatpush1.bf16.msra.mxu0 %v5497_v45  ;;  %3796 = vmatpush1.bf16.msra.mxu1 %v5499_v46  ;;  %v407_v63 = vld [vmem:[#allocation3 + $0x120] sm:$0xff]  ;;  %v405_v0 = vld [vmem:[#allocation3 + $0x110] sm:$0xff]  ;;  %v416_v7 = vld [vmem:[#allocation3 + $0x168] sm:$0xff] }
  0x48   :  { %227 = vmatprep.mubr.f32.mxu0 %v5334_v1  ;;  %340 = vmatprep.mubr.f32.mxu1 %v5334_v1  ;;  %v409_v2 = vld [vmem:[#allocation3 + $0x130] sm:$0xff]  ;;  %v79_v3 = vld [vmem:[%s6458_s0 + $0x20] sm:$0xff]  ;;  %v5535_v8 = vpack.c.bf16 %v407_v63, %v403_v62  ;;  %v80_v20 = vld [vmem:[%s6458_s0 + $0x28] sm:$0xff]  ;;  %v5548_v21 = vpack.c.bf16 %v416_v7, %v412_v6  ;;  %v87_v63 = vlaneseq }
  0x49   :  { %3637 = vmatmul.mubr.msk.f32.gmra.mrb[6].mxu0 %vm111_vm1, %v78_v53  ;;  %3647 = vmatmul.mubr.msk.f32.gmra.mrb[6].mxu1 %vm111_vm1, %v78_v53  ;;  %v5537_v9 = vpack.c.bf16 %v409_v2, %v405_v0  ;;  %v414_v11 = vld [vmem:[#allocation3 + $0x158] sm:$0xff]  ;;  %v411_v13 = vld [vmem:[#allocation3 + $0x140] sm:$0xff]  ;;  %v413_v17 = vld [vmem:[#allocation3 + $0x150] sm:$0xff] }
  0x4a   :  { %3766 = vmatprep.subr.bf16.mxu0 %v5510_v54  ;;  %3798 = vmatprep.subr.bf16.mxu1 %v5512_v55  ;;  %v418_v12 = vld [vmem:[#allocation3 + $0x178] sm:$0xff]  ;;  %v415_v16 = vld [vmem:[#allocation3 + $0x160] sm:$0xff]  ;;  %v417_v19 = vld [vmem:[#allocation3 + $0x170] sm:$0xff]  ;;  %v5644_v0 = vshrl.u32 %v87_v63, 7 }
  0x4b   :  { %3768 = vmatpush1.bf16.msra.mxu0 %v5516_v58  ;;  %3800 = vmatpush1.bf16.msra.mxu1 %v5518_v59  ;;  %v5550_v22 = vpack.c.bf16 %v418_v12, %v414_v11  ;;  %v420_v23 = vld [vmem:[#allocation3 + $0x188] sm:$0xff]  ;;  %v5554_v25 = vpack.c.bf16 %v415_v16, %v411_v13  ;;  %v5556_v28 = vpack.c.bf16 %v417_v19, %v413_v17  ;;  %v422_v29 = vld [vmem:[#allocation3 + $0x198] sm:$0xff]  ;;  %v419_v33 = vld [vmem:[#allocation3 + $0x180] sm:$0xff] }
  0x4c   :  { %233 = vmatprep.mubr.f32.mxu0 %v5334_v1  ;;  %346 = vmatprep.mubr.f32.mxu1 %v5334_v1  ;;  %v424_v24 = vld [vmem:[#allocation3 + $0x1a8] sm:$0xff]  ;;  %v426_v32 = vld [vmem:[#allocation3 + $0x1b8] sm:$0xff]  ;;  %v423_v34 = vld [vmem:[#allocation3 + $0x1a0] sm:$0xff]  ;;  %v89_v2 = vsub.s32 0, %v5644_v0  ;;  %v93_v6 = vsub.s32 1, %v5644_v0  ;;  %v101_v16 = vsub.s32 3, %v5644_v0 }
  0x4d   :  { %3638 = vmatmul.mubr.msk.f32.gmra.mrb[8].mxu0 %vm111_vm1, %v79_v3  ;;  %3648 = vmatmul.mubr.msk.f32.gmra.mrb[8].mxu1 %vm111_vm1, %v79_v3  ;;  %v421_v35 = vld [vmem:[#allocation3 + $0x190] sm:$0xff]  ;;  %v5567_v38 = vpack.c.bf16 %v424_v24, %v420_v23  ;;  %v5569_v39 = vpack.c.bf16 %v426_v32, %v422_v29  ;;  %v428_v40 = vld [vmem:[#allocation3 + $0x1c8] sm:$0xff]  ;;  %v5573_v44 = vpack.c.bf16 %v423_v34, %v419_v33  ;;  %v430_v48 = vld [vmem:[#allocation3 + $0x1d8] sm:$0xff]  ;;  %v97_v33 = vsub.s32 2, %v5644_v0 }
  0x4e   :  { %3770 = vmatprep.subr.bf16.mxu0 %v5529_v4  ;;  %3802 = vmatprep.subr.bf16.mxu1 %v5531_v5  ;;  %v425_v36 = vld [vmem:[#allocation3 + $0x1b0] sm:$0xff]  ;;  %v432_v43 = vld [vmem:[#allocation3 + $0x1e8] sm:$0xff]  ;;  %v434_v49 = vld [vmem:[#allocation3 + $0x1f8] sm:$0xff] }
  0x4f   :  { %3772 = vmatpush1.bf16.msra.mxu0 %v5535_v8  ;;  %3804 = vmatpush1.bf16.msra.mxu1 %v5537_v9  ;;  %v81_v37 = vld [vmem:[%s6458_s0 + $0x30] sm:$0xff]  ;;  %v5575_v47 = vpack.c.bf16 %v425_v36, %v421_v35  ;;  %v427_v50 = vld [vmem:[#allocation3 + $0x1c0] sm:$0xff]  ;;  %v82_v56 = vld [vmem:[%s6458_s0 + $0x38] sm:$0xff]  ;;  %v5586_v57 = vpack.c.bf16 %v432_v43, %v428_v40  ;;  %v5588_v60 = vpack.c.bf16 %v434_v49, %v430_v48 }
  0x50   :  { %239 = vmatprep.mubr.f32.mxu0 %v5334_v1  ;;  %352 = vmatprep.mubr.f32.mxu1 %v5334_v1  ;;  %v431_v51 = vld [vmem:[#allocation3 + $0x1e0] sm:$0xff]  ;;  %v429_v52 = vld [vmem:[#allocation3 + $0x1d0] sm:$0xff] }
  0x51   :  { %3639 = vmatmul.mubr.msk.f32.gmra.mrb[10].mxu0 %vm111_vm1, %v80_v20  ;;  %3649 = vmatmul.mubr.msk.f32.gmra.mrb[10].mxu1 %vm111_vm1, %v80_v20  ;;  %v433_v53 = vld [vmem:[#allocation3 + $0x1f0] sm:$0xff]  ;;  %v5592_v61 = vpack.c.bf16 %v431_v51, %v427_v50  ;;  %v85_v3 = vld [vmem:[%s6461_s3] sm:$0xf] }
  0x52   :  { %3774 = vmatprep.subr.bf16.mxu0 %v5548_v21  ;;  %3806 = vmatprep.subr.bf16.mxu1 %v5550_v22  ;;  %v5594_v62 = vpack.c.bf16 %v433_v53, %v429_v52  ;;  %v5653_v7 = vrot.slane %v85_v3, %v89_v2  ;;  %v5657_v11 = vrot.slane %v85_v3, %v93_v6 }
  0x53   :  { %3776 = vmatpush1.bf16.msra.mxu0 %v5554_v25  ;;  %3808 = vmatpush1.bf16.msra.mxu1 %v5556_v28  ;;  %v5664_v32 = vrot.slane %v85_v3, %v101_v16  ;;  %v5670_v35 = vrot.slane %v85_v3, %v97_v33 }
  0x54   :  { %245 = vmatprep.mubr.f32.mxu0 %v5334_v1  ;;  %358 = vmatprep.mubr.f32.mxu1 %v5334_v1 }
  0x55   :  { %3640 = vmatmul.mubr.msk.f32.gmra.mrb[12].mxu0 %vm111_vm1, %v81_v37  ;;  %3650 = vmatmul.mubr.msk.f32.gmra.mrb[12].mxu1 %vm111_vm1, %v81_v37 }
  0x56   :  { %3778 = vmatprep.subr.bf16.mxu0 %v5567_v38  ;;  %3810 = vmatprep.subr.bf16.mxu1 %v5569_v39 }
  0x57   :  { %3780 = vmatpush1.bf16.msra.mxu0 %v5573_v44  ;;  %3812 = vmatpush1.bf16.msra.mxu1 %v5575_v47 }
  0x58   :  { %251 = vmatprep.mubr.f32.mxu0 %v5334_v1  ;;  %364 = vmatprep.mubr.f32.mxu1 %v5334_v1 }
  0x59   :  { %3641 = vmatmul.mubr.msk.f32.gmra.mrb[14].mxu0 %vm111_vm1, %v82_v56  ;;  %3651 = vmatmul.mubr.msk.f32.gmra.mrb[14].mxu1 %vm111_vm1, %v82_v56 }
  0x5a   :  { %3782 = vmatprep.subr.bf16.mxu0 %v5586_v57  ;;  %3814 = vmatprep.subr.bf16.mxu1 %v5588_v60 }
  0x5b   :  { %3784 = vmatpush1.bf16.msra.mxu0 %v5592_v61  ;;  %3816 = vmatpush1.bf16.msra.mxu1 %v5594_v62 }
  0x5c   :  { %499 = vmatprep.mubr.f32.mxu0 %v5334_v1  ;;  %570 = vmatprep.mubr.f32.mxu1 %v5334_v1 }
  0x5d   :  { %3818 = vmatprep.subr.bf16.mxu0 %v5453_v10  ;;  %3850 = vmatprep.subr.bf16.mxu1 %v5457_v14 }
  0x5e   :  { %500 = vmatmul.mubr.f32.vlgmr.msra.gmra.mrb[0].mxu0 %v5334_v1  ;;  %571 = vmatmul.mubr.f32.vlgmr.msra.gmra.mrb[0].mxu1 %v5334_v1 }
  0x5f   :  { %3820 = vmatpush1.bf16.msra.mxu0 %v5459_v15  ;;  %3852 = vmatpush1.bf16.msra.mxu1 %v5463_v18 }
  0x60   :  { %3822 = vmatprep.subr.bf16.mxu0 %v5472_v26  ;;  %3854 = vmatprep.subr.bf16.mxu1 %v5474_v27 }
  0x61   :  { %669 = vmatprep.mubr.f32.mxu0 %v5334_v1  ;;  %740 = vmatprep.mubr.f32.mxu1 %v5334_v1 }
  0x63   :  { %3824 = vmatpush1.bf16.msra.mxu0 %v5478_v30  ;;  %3856 = vmatpush1.bf16.msra.mxu1 %v5480_v31 }
  0x64   :  { %3826 = vmatprep.subr.bf16.mxu0 %v5491_v41  ;;  %3858 = vmatprep.subr.bf16.mxu1 %v5493_v42 }
  0x67   :  { %3828 = vmatpush1.bf16.msra.mxu0 %v5497_v45  ;;  %3860 = vmatpush1.bf16.msra.mxu1 %v5499_v46 }
  0x68   :  { %3830 = vmatprep.subr.bf16.mxu0 %v5510_v54  ;;  %3862 = vmatprep.subr.bf16.mxu1 %v5512_v55 }
  0x6b   :  { %3832 = vmatpush1.bf16.msra.mxu0 %v5516_v58  ;;  %3864 = vmatpush1.bf16.msra.mxu1 %v5518_v59 }
  0x6c   :  { %3834 = vmatprep.subr.bf16.mxu0 %v5529_v4  ;;  %3866 = vmatprep.subr.bf16.mxu1 %v5531_v5 }
  0x6f   :  { %3836 = vmatpush1.bf16.msra.mxu0 %v5535_v8  ;;  %3868 = vmatpush1.bf16.msra.mxu1 %v5537_v9 }
  0x70   :  { %3838 = vmatprep.subr.bf16.mxu0 %v5548_v21  ;;  %3870 = vmatprep.subr.bf16.mxu1 %v5550_v22 }
  0x73   :  { %3840 = vmatpush1.bf16.msra.mxu0 %v5554_v25  ;;  %3872 = vmatpush1.bf16.msra.mxu1 %v5556_v28 }
  0x74   :  { %3842 = vmatprep.subr.bf16.mxu0 %v5567_v38  ;;  %3874 = vmatprep.subr.bf16.mxu1 %v5569_v39 }
  0x77   :  { %3844 = vmatpush1.bf16.msra.mxu0 %v5573_v44  ;;  %3876 = vmatpush1.bf16.msra.mxu1 %v5575_v47 }
  0x78   :  { %3846 = vmatprep.subr.bf16.mxu0 %v5586_v57  ;;  %3878 = vmatprep.subr.bf16.mxu1 %v5588_v60 }
  0x7b   :  { %3848 = vmatpush1.bf16.msra.mxu0 %v5592_v61  ;;  %3880 = vmatpush1.bf16.msra.mxu1 %v5594_v62 }
  0x7c   :  { %3882 = vmatprep.subr.bf16.mxu0 %v5453_v10  ;;  %3914 = vmatprep.subr.bf16.mxu1 %v5457_v14 }
 0x131   :  { %v501_v12 = vpop.f32.mrb[0].mxu0  ;;  %v572_v13 = vpop.f32.mrb[0].mxu1 }
 0x132   :  { %v4865_v17 = vadd.f32 %v501_v12, %v5653_v7  ;;  %v503_v19 = vpop.f32.mrb[1].mxu0  ;;  %v574_v20 = vpop.f32.mrb[1].mxu1  ;;  %v4881_v37 = vadd.f32 %v572_v13, %v5670_v35 }
 0x133   :  { %v4866_v23 = vadd.f32 %v503_v19, %v5657_v11  ;;  %v4882_v34 = vadd.f32 %v574_v20, %v5664_v32 }
 0x134   :  { %v3652_v24 = vmul.f32 -1.442695, %v4865_v17 }
 0x135   :  { %v3653_v29 = vmul.f32 -1.442695, %v4866_v23  ;;  %v3654_v36 = vmul.f32 -1.442695, %v4882_v34 }
 0x136   :  { %5003 = vpow2.f32 %v3652_v24 }
 0x137   :  { %5005 = vpow2.f32 %v3653_v29 }
 0x138   :  { %5007 = vpow2.f32 %v3654_v36 }
 0x139   :  { %5009 = vtanh.f32 %v4881_v37 }
 0x140   :  { %v5004_v40 = vpop.eup %5003 }
 0x141   :  { %v5006_v43 = vpop.eup %5005  ;;  %v584_v48 = vadd.f32 1.0, %v5004_v40 }
 0x142   :  { %v590_v49 = vadd.f32 1.0, %v5006_v43  ;;  %v5008_v50 = vpop.eup %5007 }
 0x143   :  { %5011 = vrcp.f32 %v584_v48  ;;  %v5010_v51 = vpop.eup %5009  ;;  %v597_v63 = vadd.f32 1.0, %v5008_v50 }
 0x144   :  { %5013 = vrcp.f32 %v590_v49 }
 0x145   :  { %5015 = vrcp.f32 %v597_v63 }
 0x14d   :  { %v5012_v52 = vpop.eup %5011 }
 0x14e   :  { %v5014_v53 = vpop.eup %5013  ;;  %v601_v56 = vmul.f32 %v5012_v52, %v5010_v51 }
 0x14f   :  { %v600_v12 = vmul.f32 0.0, %v5014_v53  ;;  %v5016_v13 = vpop.eup %5015 }
 0x151   :  { %v5673_v3 = vadd.f32 %v601_v56, %v600_v12 }
 0x153   :  { %5017 = vtanh.f32 %v5673_v3 }
 0x15d   :  { %v5018_v17 = vpop.eup %5017 }
 0x15e   :  { %v5676_v19 = vmul.f32 %v5018_v17, %v5016_v13 }
 0x160   :  { %670 = vmatmul.mubr.f32.vlgmr.msra.gmra.mrb[2].mxu0 %v5676_v19  ;;  %741 = vmatmul.mubr.f32.vlgmr.msra.gmra.mrb[2].mxu1 %v5676_v19 }
 0x161   :  { %3884 = vmatpush1.bf16.msra.mxu0 %v5459_v15  ;;  %3916 = vmatpush1.bf16.msra.mxu1 %v5463_v18 }
 0x162   :  { %3886 = vmatprep.subr.bf16.mxu0 %v5472_v26  ;;  %3918 = vmatprep.subr.bf16.mxu1 %v5474_v27 }
 0x163   :  { %839 = vmatprep.mubr.f32.mxu0 %v5334_v1  ;;  %910 = vmatprep.mubr.f32.mxu1 %v5334_v1 }
 0x165   :  { %3888 = vmatpush1.bf16.msra.mxu0 %v5478_v30  ;;  %3920 = vmatpush1.bf16.msra.mxu1 %v5480_v31 }
 0x166   :  { %3890 = vmatprep.subr.bf16.mxu0 %v5491_v41  ;;  %3922 = vmatprep.subr.bf16.mxu1 %v5493_v42 }
 0x169   :  { %3892 = vmatpush1.bf16.msra.mxu0 %v5497_v45  ;;  %3924 = vmatpush1.bf16.msra.mxu1 %v5499_v46 }
 0x16a   :  { %3894 = vmatprep.subr.bf16.mxu0 %v5510_v54  ;;  %3926 = vmatprep.subr.bf16.mxu1 %v5512_v55 }
 0x16d   :  { %3896 = vmatpush1.bf16.msra.mxu0 %v5516_v58  ;;  %3928 = vmatpush1.bf16.msra.mxu1 %v5518_v59 }
 0x16e   :  { %3898 = vmatprep.subr.bf16.mxu0 %v5529_v4  ;;  %3930 = vmatprep.subr.bf16.mxu1 %v5531_v5 }
 0x171   :  { %3900 = vmatpush1.bf16.msra.mxu0 %v5535_v8  ;;  %3932 = vmatpush1.bf16.msra.mxu1 %v5537_v9 }
 0x172   :  { %3902 = vmatprep.subr.bf16.mxu0 %v5548_v21  ;;  %3934 = vmatprep.subr.bf16.mxu1 %v5550_v22 }
 0x175   :  { %3904 = vmatpush1.bf16.msra.mxu0 %v5554_v25  ;;  %3936 = vmatpush1.bf16.msra.mxu1 %v5556_v28 }
 0x176   :  { %3906 = vmatprep.subr.bf16.mxu0 %v5567_v38  ;;  %3938 = vmatprep.subr.bf16.mxu1 %v5569_v39 }
 0x179   :  { %3908 = vmatpush1.bf16.msra.mxu0 %v5573_v44  ;;  %3940 = vmatpush1.bf16.msra.mxu1 %v5575_v47 }
 0x17a   :  { %3910 = vmatprep.subr.bf16.mxu0 %v5586_v57  ;;  %3942 = vmatprep.subr.bf16.mxu1 %v5588_v60 }
 0x17d   :  { %3912 = vmatpush1.bf16.msra.mxu0 %v5592_v61  ;;  %3944 = vmatpush1.bf16.msra.mxu1 %v5594_v62 }
 0x17e   :  { %3946 = vmatprep.subr.bf16.mxu0 %v5453_v10  ;;  %3978 = vmatprep.subr.bf16.mxu1 %v5457_v14 }
 0x233   :  { %v671_v20 = vpop.f32.mrb[2].mxu0  ;;  %v742_v23 = vpop.f32.mrb[2].mxu1 }
 0x234   :  { %v4867_v24 = vadd.f32 %v671_v20, %v5653_v7  ;;  %v673_v29 = vpop.f32.mrb[3].mxu0  ;;  %v744_v34 = vpop.f32.mrb[3].mxu1  ;;  %v4883_v49 = vadd.f32 %v742_v23, %v5670_v35 }
 0x235   :  { %v4868_v36 = vadd.f32 %v673_v29, %v5657_v11  ;;  %v4884_v43 = vadd.f32 %v744_v34, %v5664_v32 }
 0x236   :  { %v3655_v37 = vmul.f32 -1.442695, %v4867_v24 }
 0x237   :  { %v3656_v40 = vmul.f32 -1.442695, %v4868_v36  ;;  %v3657_v48 = vmul.f32 -1.442695, %v4884_v43 }
 0x238   :  { %5019 = vpow2.f32 %v3655_v37 }
 0x239   :  { %5021 = vpow2.f32 %v3656_v40 }
 0x23a   :  { %5023 = vpow2.f32 %v3657_v48 }
 0x23b   :  { %5025 = vtanh.f32 %v4883_v49 }
 0x242   :  { %v5020_v50 = vpop.eup %5019 }
 0x243   :  { %v5022_v51 = vpop.eup %5021  ;;  %v754_v52 = vadd.f32 1.0, %v5020_v50 }
 0x244   :  { %v760_v53 = vadd.f32 1.0, %v5022_v51  ;;  %v5024_v56 = vpop.eup %5023 }
 0x245   :  { %5027 = vrcp.f32 %v754_v52  ;;  %v5026_v63 = vpop.eup %5025  ;;  %v767_v20 = vadd.f32 1.0, %v5024_v56 }
 0x246   :  { %5029 = vrcp.f32 %v760_v53 }
 0x247   :  { %5031 = vrcp.f32 %v767_v20 }
 0x24f   :  { %v5028_v12 = vpop.eup %5027 }
 0x250   :  { %v5030_v13 = vpop.eup %5029  ;;  %v771_v17 = vmul.f32 %v5028_v12, %v5026_v63 }
 0x251   :  { %v770_v24 = vmul.f32 %v5030_v13, %v5673_v3  ;;  %v5032_v23 = vpop.eup %5031 }
 0x253   :  { %v5719_v29 = vadd.f32 %v771_v17, %v770_v24 }
 0x255   :  { %5033 = vtanh.f32 %v5719_v29 }
 0x25f   :  { %v5034_v34 = vpop.eup %5033 }
 0x260   :  { %v5722_v36 = vmul.f32 %v5034_v34, %v5032_v23 }
 0x262   :  { %840 = vmatmul.mubr.f32.vlgmr.msra.gmra.mrb[4].mxu0 %v5722_v36  ;;  %911 = vmatmul.mubr.f32.vlgmr.msra.gmra.mrb[4].mxu1 %v5722_v36 }
 0x263   :  { %3948 = vmatpush1.bf16.msra.mxu0 %v5459_v15  ;;  %3980 = vmatpush1.bf16.msra.mxu1 %v5463_v18 }
 0x264   :  { %3950 = vmatprep.subr.bf16.mxu0 %v5472_v26  ;;  %3982 = vmatprep.subr.bf16.mxu1 %v5474_v27 }
 0x265   :  { %1009 = vmatprep.mubr.f32.mxu0 %v5334_v1  ;;  %1080 = vmatprep.mubr.f32.mxu1 %v5334_v1 }
 0x267   :  { %3952 = vmatpush1.bf16.msra.mxu0 %v5478_v30  ;;  %3984 = vmatpush1.bf16.msra.mxu1 %v5480_v31 }
 0x268   :  { %3954 = vmatprep.subr.bf16.mxu0 %v5491_v41  ;;  %3986 = vmatprep.subr.bf16.mxu1 %v5493_v42 }
 0x26b   :  { %3956 = vmatpush1.bf16.msra.mxu0 %v5497_v45  ;;  %3988 = vmatpush1.bf16.msra.mxu1 %v5499_v46 }
 0x26c   :  { %3958 = vmatprep.subr.bf16.mxu0 %v5510_v54  ;;  %3990 = vmatprep.subr.bf16.mxu1 %v5512_v55 }
 0x26f   :  { %3960 = vmatpush1.bf16.msra.mxu0 %v5516_v58  ;;  %3992 = vmatpush1.bf16.msra.mxu1 %v5518_v59 }
 0x270   :  { %3962 = vmatprep.subr.bf16.mxu0 %v5529_v4  ;;  %3994 = vmatprep.subr.bf16.mxu1 %v5531_v5 }
 0x273   :  { %3964 = vmatpush1.bf16.msra.mxu0 %v5535_v8  ;;  %3996 = vmatpush1.bf16.msra.mxu1 %v5537_v9 }
 0x274   :  { %3966 = vmatprep.subr.bf16.mxu0 %v5548_v21  ;;  %3998 = vmatprep.subr.bf16.mxu1 %v5550_v22 }
 0x277   :  { %3968 = vmatpush1.bf16.msra.mxu0 %v5554_v25  ;;  %4000 = vmatpush1.bf16.msra.mxu1 %v5556_v28 }
 0x278   :  { %3970 = vmatprep.subr.bf16.mxu0 %v5567_v38  ;;  %4002 = vmatprep.subr.bf16.mxu1 %v5569_v39 }
 0x27b   :  { %3972 = vmatpush1.bf16.msra.mxu0 %v5573_v44  ;;  %4004 = vmatpush1.bf16.msra.mxu1 %v5575_v47 }
 0x27c   :  { %3974 = vmatprep.subr.bf16.mxu0 %v5586_v57  ;;  %4006 = vmatprep.subr.bf16.mxu1 %v5588_v60 }
 0x27f   :  { %3976 = vmatpush1.bf16.msra.mxu0 %v5592_v61  ;;  %4008 = vmatpush1.bf16.msra.mxu1 %v5594_v62 }
 0x280   :  { %4010 = vmatprep.subr.bf16.mxu0 %v5453_v10  ;;  %4042 = vmatprep.subr.bf16.mxu1 %v5457_v14 }
 0x335   :  { %v841_v3 = vpop.f32.mrb[4].mxu0  ;;  %v912_v37 = vpop.f32.mrb[4].mxu1 }
 0x336   :  { %v4869_v40 = vadd.f32 %v841_v3, %v5653_v7  ;;  %v843_v43 = vpop.f32.mrb[5].mxu0  ;;  %v914_v48 = vpop.f32.mrb[5].mxu1  ;;  %v4885_v56 = vadd.f32 %v912_v37, %v5670_v35 }
 0x337   :  { %v4870_v49 = vadd.f32 %v843_v43, %v5657_v11  ;;  %v4886_v52 = vadd.f32 %v914_v48, %v5664_v32 }
 0x338   :  { %v3658_v50 = vmul.f32 -1.442695, %v4869_v40 }
 0x339   :  { %v3659_v51 = vmul.f32 -1.442695, %v4870_v49  ;;  %v3660_v53 = vmul.f32 -1.442695, %v4886_v52 }
 0x33a   :  { %5035 = vpow2.f32 %v3658_v50 }
 0x33b   :  { %5037 = vpow2.f32 %v3659_v51 }
 0x33c   :  { %5039 = vpow2.f32 %v3660_v53 }
 0x33d   :  { %5041 = vtanh.f32 %v4885_v56 }
 0x344   :  { %v5036_v63 = vpop.eup %5035 }
 0x345   :  { %v5038_v12 = vpop.eup %5037  ;;  %v924_v13 = vadd.f32 1.0, %v5036_v63 }
 0x346   :  { %v930_v17 = vadd.f32 1.0, %v5038_v12  ;;  %v5040_v20 = vpop.eup %5039 }
 0x347   :  { %5043 = vrcp.f32 %v924_v13  ;;  %v5042_v24 = vpop.eup %5041  ;;  %v937_v40 = vadd.f32 1.0, %v5040_v20 }
 0x348   :  { %5045 = vrcp.f32 %v930_v17 }
 0x349   :  { %5047 = vrcp.f32 %v937_v40 }
 0x351   :  { %v5044_v23 = vpop.eup %5043 }
 0x352   :  { %v5046_v34 = vpop.eup %5045  ;;  %v941_v3 = vmul.f32 %v5044_v23, %v5042_v24 }
 0x353   :  { %v940_v43 = vmul.f32 %v5046_v34, %v5719_v29  ;;  %v5048_v37 = vpop.eup %5047 }
 0x355   :  { %v5765_v48 = vadd.f32 %v941_v3, %v940_v43 }
 0x357   :  { %5049 = vtanh.f32 %v5765_v48 }
 0x361   :  { %v5050_v49 = vpop.eup %5049 }
 0x362   :  { %v5768_v50 = vmul.f32 %v5050_v49, %v5048_v37 }
 0x364   :  { %1010 = vmatmul.mubr.f32.vlgmr.msra.gmra.mrb[6].mxu0 %v5768_v50  ;;  %1081 = vmatmul.mubr.f32.vlgmr.msra.gmra.mrb[6].mxu1 %v5768_v50 }
 0x365   :  { %4012 = vmatpush1.bf16.msra.mxu0 %v5459_v15  ;;  %4044 = vmatpush1.bf16.msra.mxu1 %v5463_v18 }
 0x366   :  { %4014 = vmatprep.subr.bf16.mxu0 %v5472_v26  ;;  %4046 = vmatprep.subr.bf16.mxu1 %v5474_v27 }
 0x367   :  { %1179 = vmatprep.mubr.f32.mxu0 %v5334_v1  ;;  %1250 = vmatprep.mubr.f32.mxu1 %v5334_v1 }
 0x369   :  { %4016 = vmatpush1.bf16.msra.mxu0 %v5478_v30  ;;  %4048 = vmatpush1.bf16.msra.mxu1 %v5480_v31 }
 0x36a   :  { %4018 = vmatprep.subr.bf16.mxu0 %v5491_v41  ;;  %4050 = vmatprep.subr.bf16.mxu1 %v5493_v42 }
 0x36d   :  { %4020 = vmatpush1.bf16.msra.mxu0 %v5497_v45  ;;  %4052 = vmatpush1.bf16.msra.mxu1 %v5499_v46 }
 0x36e   :  { %4022 = vmatprep.subr.bf16.mxu0 %v5510_v54  ;;  %4054 = vmatprep.subr.bf16.mxu1 %v5512_v55 }
 0x371   :  { %4024 = vmatpush1.bf16.msra.mxu0 %v5516_v58  ;;  %4056 = vmatpush1.bf16.msra.mxu1 %v5518_v59 }
 0x372   :  { %4026 = vmatprep.subr.bf16.mxu0 %v5529_v4  ;;  %4058 = vmatprep.subr.bf16.mxu1 %v5531_v5 }
 0x375   :  { %4028 = vmatpush1.bf16.msra.mxu0 %v5535_v8  ;;  %4060 = vmatpush1.bf16.msra.mxu1 %v5537_v9 }
 0x376   :  { %4030 = vmatprep.subr.bf16.mxu0 %v5548_v21  ;;  %4062 = vmatprep.subr.bf16.mxu1 %v5550_v22 }
 0x379   :  { %4032 = vmatpush1.bf16.msra.mxu0 %v5554_v25  ;;  %4064 = vmatpush1.bf16.msra.mxu1 %v5556_v28 }
 0x37a   :  { %4034 = vmatprep.subr.bf16.mxu0 %v5567_v38  ;;  %4066 = vmatprep.subr.bf16.mxu1 %v5569_v39 }
 0x37d   :  { %4036 = vmatpush1.bf16.msra.mxu0 %v5573_v44  ;;  %4068 = vmatpush1.bf16.msra.mxu1 %v5575_v47 }
 0x37e   :  { %4038 = vmatprep.subr.bf16.mxu0 %v5586_v57  ;;  %4070 = vmatprep.subr.bf16.mxu1 %v5588_v60 }
 0x381   :  { %4040 = vmatpush1.bf16.msra.mxu0 %v5592_v61  ;;  %4072 = vmatpush1.bf16.msra.mxu1 %v5594_v62 }
 0x382   :  { %4074 = vmatprep.subr.bf16.mxu0 %v5453_v10  ;;  %4106 = vmatprep.subr.bf16.mxu1 %v5457_v14 }
 0x437   :  { %v1011_v29 = vpop.f32.mrb[6].mxu0  ;;  %v1082_v51 = vpop.f32.mrb[6].mxu1 }
 0x438   :  { %v4871_v52 = vadd.f32 %v1011_v29, %v5653_v7  ;;  %v1013_v53 = vpop.f32.mrb[7].mxu0  ;;  %v1084_v56 = vpop.f32.mrb[7].mxu1  ;;  %v4887_v24 = vadd.f32 %v1082_v51, %v5670_v35 }
 0x439   :  { %v4872_v63 = vadd.f32 %v1013_v53, %v5657_v11  ;;  %v4888_v17 = vadd.f32 %v1084_v56, %v5664_v32 }
 0x43a   :  { %v3661_v12 = vmul.f32 -1.442695, %v4871_v52 }
 0x43b   :  { %v3662_v13 = vmul.f32 -1.442695, %v4872_v63  ;;  %v3663_v20 = vmul.f32 -1.442695, %v4888_v17 }
 0x43c   :  { %5051 = vpow2.f32 %v3661_v12 }
 0x43d   :  { %5053 = vpow2.f32 %v3662_v13 }
 0x43e   :  { %5055 = vpow2.f32 %v3663_v20 }
 0x43f   :  { %5057 = vtanh.f32 %v4887_v24 }
 0x446   :  { %v5052_v23 = vpop.eup %5051 }
 0x447   :  { %v5054_v34 = vpop.eup %5053  ;;  %v1094_v3 = vadd.f32 1.0, %v5052_v23 }
 0x448   :  { %v1100_v40 = vadd.f32 1.0, %v5054_v34  ;;  %v5056_v43 = vpop.eup %5055 }
 0x449   :  { %5059 = vrcp.f32 %v1094_v3  ;;  %v5058_v37 = vpop.eup %5057  ;;  %v1107_v53 = vadd.f32 1.0, %v5056_v43 }
 0x44a   :  { %5061 = vrcp.f32 %v1100_v40 }
 0x44b   :  { %5063 = vrcp.f32 %v1107_v53 }
 0x453   :  { %v5060_v49 = vpop.eup %5059 }
 0x454   :  { %v5062_v29 = vpop.eup %5061  ;;  %v1111_v52 = vmul.f32 %v5060_v49, %v5058_v37 }
 0x455   :  { %v1110_v63 = vmul.f32 %v5062_v29, %v5765_v48  ;;  %v5064_v51 = vpop.eup %5063 }
 0x457   :  { %v5811_v56 = vadd.f32 %v1111_v52, %v1110_v63 }
 0x459   :  { %5065 = vtanh.f32 %v5811_v56 }
 0x463   :  { %v5066_v12 = vpop.eup %5065 }
 0x464   :  { %v5814_v13 = vmul.f32 %v5066_v12, %v5064_v51 }
 0x466   :  { %1180 = vmatmul.mubr.f32.vlgmr.msra.gmra.mrb[8].mxu0 %v5814_v13  ;;  %1251 = vmatmul.mubr.f32.vlgmr.msra.gmra.mrb[8].mxu1 %v5814_v13 }
 0x467   :  { %4076 = vmatpush1.bf16.msra.mxu0 %v5459_v15  ;;  %4108 = vmatpush1.bf16.msra.mxu1 %v5463_v18 }
 0x468   :  { %4078 = vmatprep.subr.bf16.mxu0 %v5472_v26  ;;  %4110 = vmatprep.subr.bf16.mxu1 %v5474_v27 }
 0x469   :  { %1349 = vmatprep.mubr.f32.mxu0 %v5334_v1  ;;  %1420 = vmatprep.mubr.f32.mxu1 %v5334_v1 }
 0x46b   :  { %4080 = vmatpush1.bf16.msra.mxu0 %v5478_v30  ;;  %4112 = vmatpush1.bf16.msra.mxu1 %v5480_v31 }
 0x46c   :  { %4082 = vmatprep.subr.bf16.mxu0 %v5491_v41  ;;  %4114 = vmatprep.subr.bf16.mxu1 %v5493_v42 }
 0x46f   :  { %4084 = vmatpush1.bf16.msra.mxu0 %v5497_v45  ;;  %4116 = vmatpush1.bf16.msra.mxu1 %v5499_v46 }
 0x470   :  { %4086 = vmatprep.subr.bf16.mxu0 %v5510_v54  ;;  %4118 = vmatprep.subr.bf16.mxu1 %v5512_v55 }
 0x473   :  { %4088 = vmatpush1.bf16.msra.mxu0 %v5516_v58  ;;  %4120 = vmatpush1.bf16.msra.mxu1 %v5518_v59 }
 0x474   :  { %4090 = vmatprep.subr.bf16.mxu0 %v5529_v4  ;;  %4122 = vmatprep.subr.bf16.mxu1 %v5531_v5 }
 0x477   :  { %4092 = vmatpush1.bf16.msra.mxu0 %v5535_v8  ;;  %4124 = vmatpush1.bf16.msra.mxu1 %v5537_v9 }
 0x478   :  { %4094 = vmatprep.subr.bf16.mxu0 %v5548_v21  ;;  %4126 = vmatprep.subr.bf16.mxu1 %v5550_v22 }
 0x47b   :  { %4096 = vmatpush1.bf16.msra.mxu0 %v5554_v25  ;;  %4128 = vmatpush1.bf16.msra.mxu1 %v5556_v28 }
 0x47c   :  { %4098 = vmatprep.subr.bf16.mxu0 %v5567_v38  ;;  %4130 = vmatprep.subr.bf16.mxu1 %v5569_v39 }
 0x47f   :  { %4100 = vmatpush1.bf16.msra.mxu0 %v5573_v44  ;;  %4132 = vmatpush1.bf16.msra.mxu1 %v5575_v47 }
 0x480   :  { %4102 = vmatprep.subr.bf16.mxu0 %v5586_v57  ;;  %4134 = vmatprep.subr.bf16.mxu1 %v5588_v60 }
 0x483   :  { %4104 = vmatpush1.bf16.msra.mxu0 %v5592_v61  ;;  %4136 = vmatpush1.bf16.msra.mxu1 %v5594_v62 }
 0x484   :  { %4138 = vmatprep.subr.bf16.mxu0 %v5453_v10  ;;  %4170 = vmatprep.subr.bf16.mxu1 %v5457_v14 }
 0x539   :  { %v1181_v48 = vpop.f32.mrb[8].mxu0  ;;  %v1252_v17 = vpop.f32.mrb[8].mxu1 }
 0x53a   :  { %v4873_v20 = vadd.f32 %v1181_v48, %v5653_v7  ;;  %v1183_v24 = vpop.f32.mrb[9].mxu0  ;;  %v1254_v23 = vpop.f32.mrb[9].mxu1  ;;  %v4889_v49 = vadd.f32 %v1252_v17, %v5670_v35 }
 0x53b   :  { %v4874_v34 = vadd.f32 %v1183_v24, %v5657_v11  ;;  %v4890_v43 = vadd.f32 %v1254_v23, %v5664_v32 }
 0x53c   :  { %v3664_v3 = vmul.f32 -1.442695, %v4873_v20 }
 0x53d   :  { %v3665_v40 = vmul.f32 -1.442695, %v4874_v34  ;;  %v3666_v37 = vmul.f32 -1.442695, %v4890_v43 }
 0x53e   :  { %5067 = vpow2.f32 %v3664_v3 }
 0x53f   :  { %5069 = vpow2.f32 %v3665_v40 }
 0x540   :  { %5071 = vpow2.f32 %v3666_v37 }
 0x541   :  { %5073 = vtanh.f32 %v4889_v49 }
 0x548   :  { %v5068_v29 = vpop.eup %5067 }
 0x549   :  { %v5070_v52 = vpop.eup %5069  ;;  %v1264_v53 = vadd.f32 1.0, %v5068_v29 }
 0x54a   :  { %v1270_v63 = vadd.f32 1.0, %v5070_v52  ;;  %v5072_v51 = vpop.eup %5071 }
 0x54b   :  { %5075 = vrcp.f32 %v1264_v53  ;;  %v5074_v12 = vpop.eup %5073  ;;  %v1277_v34 = vadd.f32 1.0, %v5072_v51 }
 0x54c   :  { %5077 = vrcp.f32 %v1270_v63 }
 0x54d   :  { %5079 = vrcp.f32 %v1277_v34 }
 0x555   :  { %v5076_v48 = vpop.eup %5075 }
 0x556   :  { %v5078_v20 = vpop.eup %5077  ;;  %v1281_v24 = vmul.f32 %v5076_v48, %v5074_v12 }
 0x557   :  { %v1280_v3 = vmul.f32 %v5078_v20, %v5811_v56  ;;  %v5080_v17 = vpop.eup %5079 }
 0x559   :  { %v5857_v23 = vadd.f32 %v1281_v24, %v1280_v3 }
 0x55b   :  { %5081 = vtanh.f32 %v5857_v23 }
 0x565   :  { %v5082_v40 = vpop.eup %5081 }
 0x566   :  { %v5860_v43 = vmul.f32 %v5082_v40, %v5080_v17 }
 0x568   :  { %1350 = vmatmul.mubr.f32.vlgmr.msra.gmra.mrb[10].mxu0 %v5860_v43  ;;  %1421 = vmatmul.mubr.f32.vlgmr.msra.gmra.mrb[10].mxu1 %v5860_v43 }
 0x569   :  { %4140 = vmatpush1.bf16.msra.mxu0 %v5459_v15  ;;  %4172 = vmatpush1.bf16.msra.mxu1 %v5463_v18 }
 0x56a   :  { %4142 = vmatprep.subr.bf16.mxu0 %v5472_v26  ;;  %4174 = vmatprep.subr.bf16.mxu1 %v5474_v27 }
 0x56b   :  { %1519 = vmatprep.mubr.f32.mxu0 %v5334_v1  ;;  %1590 = vmatprep.mubr.f32.mxu1 %v5334_v1 }
 0x56d   :  { %4144 = vmatpush1.bf16.msra.mxu0 %v5478_v30  ;;  %4176 = vmatpush1.bf16.msra.mxu1 %v5480_v31 }
 0x56e   :  { %4146 = vmatprep.subr.bf16.mxu0 %v5491_v41  ;;  %4178 = vmatprep.subr.bf16.mxu1 %v5493_v42 }
 0x571   :  { %4148 = vmatpush1.bf16.msra.mxu0 %v5497_v45  ;;  %4180 = vmatpush1.bf16.msra.mxu1 %v5499_v46 }
 0x572   :  { %4150 = vmatprep.subr.bf16.mxu0 %v5510_v54  ;;  %4182 = vmatprep.subr.bf16.mxu1 %v5512_v55 }
 0x575   :  { %4152 = vmatpush1.bf16.msra.mxu0 %v5516_v58  ;;  %4184 = vmatpush1.bf16.msra.mxu1 %v5518_v59 }
 0x576   :  { %4154 = vmatprep.subr.bf16.mxu0 %v5529_v4  ;;  %4186 = vmatprep.subr.bf16.mxu1 %v5531_v5 }
 0x579   :  { %4156 = vmatpush1.bf16.msra.mxu0 %v5535_v8  ;;  %4188 = vmatpush1.bf16.msra.mxu1 %v5537_v9 }
 0x57a   :  { %4158 = vmatprep.subr.bf16.mxu0 %v5548_v21  ;;  %4190 = vmatprep.subr.bf16.mxu1 %v5550_v22 }
 0x57d   :  { %4160 = vmatpush1.bf16.msra.mxu0 %v5554_v25  ;;  %4192 = vmatpush1.bf16.msra.mxu1 %v5556_v28 }
 0x57e   :  { %4162 = vmatprep.subr.bf16.mxu0 %v5567_v38  ;;  %4194 = vmatprep.subr.bf16.mxu1 %v5569_v39 }
 0x581   :  { %4164 = vmatpush1.bf16.msra.mxu0 %v5573_v44  ;;  %4196 = vmatpush1.bf16.msra.mxu1 %v5575_v47 }
 0x582   :  { %4166 = vmatprep.subr.bf16.mxu0 %v5586_v57  ;;  %4198 = vmatprep.subr.bf16.mxu1 %v5588_v60 }
 0x585   :  { %4168 = vmatpush1.bf16.msra.mxu0 %v5592_v61  ;;  %4200 = vmatpush1.bf16.msra.mxu1 %v5594_v62 }
 0x586   :  { %4202 = vmatprep.subr.bf16.mxu0 %v5453_v10  ;;  %4234 = vmatprep.subr.bf16.mxu1 %v5457_v14 }
 0x63b   :  { %v1351_v56 = vpop.f32.mrb[10].mxu0  ;;  %v1422_v37 = vpop.f32.mrb[10].mxu1 }
 0x63c   :  { %v4875_v49 = vadd.f32 %v1351_v56, %v5653_v7  ;;  %v1353_v29 = vpop.f32.mrb[11].mxu0  ;;  %v1424_v52 = vpop.f32.mrb[11].mxu1  ;;  %v4891_v20 = vadd.f32 %v1422_v37, %v5670_v35 }
 0x63d   :  { %v4876_v53 = vadd.f32 %v1353_v29, %v5657_v11  ;;  %v4892_v12 = vadd.f32 %v1424_v52, %v5664_v32 }
 0x63e   :  { %v3667_v63 = vmul.f32 -1.442695, %v4875_v49 }
 0x63f   :  { %v3668_v51 = vmul.f32 -1.442695, %v4876_v53  ;;  %v3669_v48 = vmul.f32 -1.442695, %v4892_v12  ;;  %v1797_v12 = vld [vmem:[#allocation5 + $0x10] sm:$0xff] }
 0x640   :  { %5083 = vpow2.f32 %v3667_v63 }
 0x641   :  { %5085 = vpow2.f32 %v3668_v51 }
 0x642   :  { %5087 = vpow2.f32 %v3669_v48  ;;  %v1801_v48 = vld [vmem:[#allocation5 + $0x30] sm:$0xff] }
 0x643   :  { %5089 = vtanh.f32 %v4891_v20  ;;  %v1804_v20 = vld [vmem:[#allocation5 + $0x48] sm:$0xff] }
 0x64a   :  { %v5084_v10 = vpop.eup %5083 }
 0x64b   :  { %v5086_v24 = vpop.eup %5085  ;;  %v1434_v14 = vadd.f32 1.0, %v5084_v10  ;;  %v1808_v10 = vld [vmem:[#allocation5 + $0x68] sm:$0xff] }
 0x64c   :  { %v1440_v34 = vadd.f32 1.0, %v5086_v24  ;;  %v5088_v3 = vpop.eup %5087  ;;  %v1806_v24 = vld [vmem:[#allocation5 + $0x58] sm:$0xff] }
 0x64d   :  { %5091 = vrcp.f32 %v1434_v14  ;;  %v5090_v17 = vpop.eup %5089  ;;  %v1447_v29 = vadd.f32 1.0, %v5088_v3  ;;  %v1810_v14 = vld [vmem:[#allocation5 + $0x78] sm:$0xff] }
 0x64e   :  { %5093 = vrcp.f32 %v1440_v34 }
 0x64f   :  { %5095 = vrcp.f32 %v1447_v29 }
 0x657   :  { %v5092_v40 = vpop.eup %5091 }
 0x658   :  { %v5094_v56 = vpop.eup %5093  ;;  %v1451_v49 = vmul.f32 %v5092_v40, %v5090_v17  ;;  %v4299_v40 = vpack.c.bf16 %v1801_v48, %v1797_v12  ;;  %v1827_v12 = vld [vmem:[#allocation5 + $0x100] sm:$0xff] }
 0x659   :  { %v1450_v53 = vmul.f32 %v5094_v56, %v5857_v23  ;;  %v5096_v37 = vpop.eup %5095  ;;  %v1799_v23 = vld [vmem:[#allocation5 + $0x20] sm:$0xff] }
 0x65a   :  { %v1803_v56 = vld [vmem:[#allocation5 + $0x40] sm:$0xff] }
 0x65b   :  { %v5903_v52 = vadd.f32 %v1451_v49, %v1450_v53  ;;  %v1807_v49 = vld [vmem:[#allocation5 + $0x60] sm:$0xff]  ;;  %v4269_v53 = vpack.c.bf16 %v1808_v10, %v1804_v20 }
 0x65c   :  { %v1831_v48 = vld [vmem:[#allocation5 + $0x120] sm:$0xff] }
 0x65d   :  { %5097 = vtanh.f32 %v5903_v52 }
 0x667   :  { %v5098_v63 = vpop.eup %5097 }
 0x668   :  { %v5906_v51 = vmul.f32 %v5098_v63, %v5096_v37  ;;  %v1805_v37 = vld [vmem:[#allocation5 + $0x50] sm:$0xff] }
 0x669   :  { %v1809_v63 = vld [vmem:[#allocation5 + $0x70] sm:$0xff] }
 0x66a   :  { %1520 = vmatmul.mubr.f32.vlgmr.msra.gmra.mrb[12].mxu0 %v5906_v51  ;;  %1591 = vmatmul.mubr.f32.vlgmr.msra.gmra.mrb[12].mxu1 %v5906_v51 }
 0x66b   :  { %4204 = vmatpush1.bf16.msra.mxu0 %v5459_v15  ;;  %4236 = vmatpush1.bf16.msra.mxu1 %v5463_v18  ;;  %v1796_v15 = vld [vmem:[#allocation5 + $0x8] sm:$0xff] }
 0x66c   :  { %4206 = vmatprep.subr.bf16.mxu0 %v5472_v26  ;;  %4238 = vmatprep.subr.bf16.mxu1 %v5474_v27  ;;  %v1800_v18 = vld [vmem:[#allocation5 + $0x28] sm:$0xff]  ;;  %v1798_v26 = vld [vmem:[#allocation5 + $0x18] sm:$0xff] }
 0x66d   :  { %1689 = vmatprep.mubr.f32.mxu0 %v5334_v1  ;;  %1760 = vmatprep.mubr.f32.mxu1 %v5334_v1  ;;  %v4265_v27 = vpack.c.bf16 %v1800_v18, %v1796_v15  ;;  %v1812_v15 = vld [vmem:[#allocation5 + $0x88] sm:$0xff] }
 0x66e   :  { %v1816_v18 = vld [vmem:[#allocation5 + $0xa8] sm:$0xff] }
 0x66f   :  { %4208 = vmatpush1.bf16.msra.mxu0 %v5478_v30  ;;  %4240 = vmatpush1.bf16.msra.mxu1 %v5480_v31  ;;  %v1802_v30 = vld [vmem:[#allocation5 + $0x38] sm:$0xff] }
 0x670   :  { %4210 = vmatprep.subr.bf16.mxu0 %v5491_v41  ;;  %4242 = vmatprep.subr.bf16.mxu1 %v5493_v42  ;;  %v4297_v31 = vpack.c.bf16 %v1802_v30, %v1798_v26  ;;  %v1814_v26 = vld [vmem:[#allocation5 + $0x98] sm:$0xff]  ;;  %v4271_v30 = vpack.c.bf16 %v1807_v49, %v1803_v56  ;;  %v4283_v56 = vpack.c.bf16 %v1831_v48, %v1827_v12  ;;  %v2109_v48 = vld [vmem:[#allocation7 + $0x10] sm:$0xff] }
 0x673   :  { %4212 = vmatpush1.bf16.msra.mxu0 %v5497_v45  ;;  %4244 = vmatpush1.bf16.msra.mxu1 %v5499_v46 }
 0x674   :  { %4214 = vmatprep.subr.bf16.mxu0 %v5510_v54  ;;  %4246 = vmatprep.subr.bf16.mxu1 %v5512_v55 }
 0x677   :  { %4216 = vmatpush1.bf16.msra.mxu0 %v5516_v58  ;;  %4248 = vmatpush1.bf16.msra.mxu1 %v5518_v59 }
 0x678   :  { %4218 = vmatprep.subr.bf16.mxu0 %v5529_v4  ;;  %4250 = vmatprep.subr.bf16.mxu1 %v5531_v5 }
 0x67b   :  { %4220 = vmatpush1.bf16.msra.mxu0 %v5535_v8  ;;  %4252 = vmatpush1.bf16.msra.mxu1 %v5537_v9 }
 0x67c   :  { %4222 = vmatprep.subr.bf16.mxu0 %v5548_v21  ;;  %4254 = vmatprep.subr.bf16.mxu1 %v5550_v22 }
 0x67f   :  { %4224 = vmatpush1.bf16.msra.mxu0 %v5554_v25  ;;  %4256 = vmatpush1.bf16.msra.mxu1 %v5556_v28 }
 0x680   :  { %4226 = vmatprep.subr.bf16.mxu0 %v5567_v38  ;;  %4258 = vmatprep.subr.bf16.mxu1 %v5569_v39 }
 0x683   :  { %4228 = vmatpush1.bf16.msra.mxu0 %v5573_v44  ;;  %4260 = vmatpush1.bf16.msra.mxu1 %v5575_v47 }
 0x684   :  { %4230 = vmatprep.subr.bf16.mxu0 %v5586_v57  ;;  %4262 = vmatprep.subr.bf16.mxu1 %v5588_v60 }
 0x687   :  { %4232 = vmatpush1.bf16.msra.mxu0 %v5592_v61  ;;  %4264 = vmatpush1.bf16.msra.mxu1 %v5594_v62  ;;  %v1795_v62 = vld [vmem:[#allocation5] sm:$0xff] }
 0x688   :  { %4266 = vmatprep.subr.bf16.mxu0 %v4265_v27  ;;  %4298 = vmatprep.subr.bf16.mxu1 %v4297_v31  ;;  %v4267_v17 = vpack.c.bf16 %v1799_v23, %v1795_v62  ;;  %v1818_v27 = vld [vmem:[#allocation5 + $0xb8] sm:$0xff]  ;;  %v4303_v31 = vpack.c.bf16 %v1809_v63, %v1805_v37 }
 0x73d   :  { %v1521_v41 = vpop.f32.mrb[12].mxu0  ;;  %v1592_v42 = vpop.f32.mrb[12].mxu1 }
 0x73e   :  { %v4877_v45 = vadd.f32 %v1521_v41, %v5653_v7  ;;  %v1523_v46 = vpop.f32.mrb[13].mxu0  ;;  %v1594_v54 = vpop.f32.mrb[13].mxu1  ;;  %v4893_v8 = vadd.f32 %v1592_v42, %v5670_v35  ;;  %v1811_v41 = vld [vmem:[#allocation5 + $0x80] sm:$0xff] }
 0x73f   :  { %v4878_v55 = vadd.f32 %v1523_v46, %v5657_v11  ;;  %v4894_v4 = vadd.f32 %v1594_v54, %v5664_v32  ;;  %v1815_v42 = vld [vmem:[#allocation5 + $0xa0] sm:$0xff]  ;;  %v4305_v46 = vpack.c.bf16 %v1818_v27, %v1814_v26  ;;  %v1813_v54 = vld [vmem:[#allocation5 + $0x90] sm:$0xff]  ;;  %v1844_v26 = vld [vmem:[#allocation5 + $0x188] sm:$0xff] }
 0x740   :  { %v3670_v58 = vmul.f32 -1.442695, %v4877_v45  ;;  %v4273_v45 = vpack.c.bf16 %v1816_v18, %v1812_v15  ;;  %v1837_v15 = vld [vmem:[#allocation5 + $0x150] sm:$0xff]  ;;  %v1848_v27 = vld [vmem:[#allocation5 + $0x1a8] sm:$0xff] }
 0x741   :  { %v3671_v59 = vmul.f32 -1.442695, %v4878_v55  ;;  %v3672_v5 = vmul.f32 -1.442695, %v4894_v4  ;;  %v1817_v55 = vld [vmem:[#allocation5 + $0xb0] sm:$0xff]  ;;  %v1822_v4 = vld [vmem:[#allocation5 + $0xd8] sm:$0xff] }
 0x742   :  { %5099 = vpow2.f32 %v3670_v58  ;;  %v1820_v58 = vld [vmem:[#allocation5 + $0xc8] sm:$0xff]  ;;  %v1841_v18 = vld [vmem:[#allocation5 + $0x170] sm:$0xff] }
 0x743   :  { %5101 = vpow2.f32 %v3671_v59  ;;  %v1824_v59 = vld [vmem:[#allocation5 + $0xe8] sm:$0xff] }
 0x744   :  { %5103 = vpow2.f32 %v3672_v5  ;;  %v1826_v5 = vld [vmem:[#allocation5 + $0xf8] sm:$0xff] }
 0x745   :  { %5105 = vtanh.f32 %v4893_v8  ;;  %v4275_v8 = vpack.c.bf16 %v1815_v42, %v1811_v41  ;;  %v4319_v42 = vpack.c.bf16 %v1841_v18, %v1837_v15  ;;  %v2128_v15 = vld [vmem:[#allocation7 + $0xa8] sm:$0xff]  ;;  %v2126_v18 = vld [vmem:[#allocation7 + $0x98] sm:$0xff] }
 0x74c   :  { %v5100_v9 = vpop.eup %5099 }
 0x74d   :  { %v5102_v21 = vpop.eup %5101  ;;  %v1604_v22 = vadd.f32 1.0, %v5100_v9  ;;  %v4307_v9 = vpack.c.bf16 %v1817_v55, %v1813_v54  ;;  %v4289_v54 = vpack.c.bf16 %v1848_v27, %v1844_v26  ;;  %v2130_v27 = vld [vmem:[#allocation7 + $0xb8] sm:$0xff] }
 0x74e   :  { %v1610_v25 = vadd.f32 1.0, %v5102_v21  ;;  %v5104_v28 = vpop.eup %5103  ;;  %v1819_v21 = vld [vmem:[#allocation5 + $0xc0] sm:$0xff] }
 0x74f   :  { %5107 = vrcp.f32 %v1604_v22  ;;  %v5106_v38 = vpop.eup %5105  ;;  %v1617_v57 = vadd.f32 1.0, %v5104_v28  ;;  %v1823_v22 = vld [vmem:[#allocation5 + $0xe0] sm:$0xff]  ;;  %v4309_v28 = vpack.c.bf16 %v1826_v5, %v1822_v4  ;;  %v1852_v4 = vld [vmem:[#allocation5 + $0x1c8] sm:$0xff] }
 0x750   :  { %5109 = vrcp.f32 %v1610_v25  ;;  %v4277_v25 = vpack.c.bf16 %v1824_v59, %v1820_v58  ;;  %v4279_v62 = vpack.c.bf16 %v1823_v22, %v1819_v21  ;;  %v1845_v58 = vld [vmem:[#allocation5 + $0x190] sm:$0xff]  ;;  %v1856_v5 = vld [vmem:[#allocation5 + $0x1e8] sm:$0xff] }
 0x751   :  { %5111 = vrcp.f32 %v1617_v57  ;;  %v1830_v57 = vld [vmem:[#allocation5 + $0x118] sm:$0xff]  ;;  %v1849_v59 = vld [vmem:[#allocation5 + $0x1b0] sm:$0xff] }
 0x752   :  { %v4323_v22 = vpack.c.bf16 %v1849_v59, %v1845_v58  ;;  %v2136_v58 = vld [vmem:[#allocation7 + $0xe8] sm:$0xff]  ;;  %v2134_v59 = vld [vmem:[#allocation7 + $0xd8] sm:$0xff] }
 0x759   :  { %v5108_v39 = vpop.eup %5107 }
 0x75a   :  { %v5110_v44 = vpop.eup %5109  ;;  %v1621_v47 = vmul.f32 %v5108_v39, %v5106_v38  ;;  %v1821_v38 = vld [vmem:[#allocation5 + $0xd0] sm:$0xff] }
 0x75b   :  { %v1620_v60 = vmul.f32 %v5110_v44, %v5903_v52  ;;  %v5112_v34 = vpop.eup %5111  ;;  %v4301_v52 = vpack.c.bf16 %v1810_v14, %v1806_v24  ;;  %v1825_v39 = vld [vmem:[#allocation5 + $0xf0] sm:$0xff]  ;;  %v1828_v44 = vld [vmem:[#allocation5 + $0x108] sm:$0xff] }
 0x75c   :  { %v4311_v23 = vpack.c.bf16 %v1825_v39, %v1821_v38  ;;  %v1829_v24 = vld [vmem:[#allocation5 + $0x110] sm:$0xff]  ;;  %v1855_v39 = vld [vmem:[#allocation5 + $0x1e0] sm:$0xff] }
 0x75d   :  { %v5947_v61 = vadd.f32 %v1621_v47, %v1620_v60  ;;  %v1832_v47 = vld [vmem:[#allocation5 + $0x128] sm:$0xff]  ;;  %v1834_v60 = vld [vmem:[#allocation5 + $0x138] sm:$0xff]  ;;  %v1833_v14 = vld [vmem:[#allocation5 + $0x130] sm:$0xff] }
 0x75e   :  { %v4281_v20 = vpack.c.bf16 %v1832_v47, %v1828_v44  ;;  %v4313_v10 = vpack.c.bf16 %v1834_v60, %v1830_v57  ;;  %v4315_v49 = vpack.c.bf16 %v1833_v14, %v1829_v24  ;;  %v1853_v44 = vld [vmem:[#allocation5 + $0x1d0] sm:$0xff]  ;;  %v2120_v24 = vld [vmem:[#allocation7 + $0x68] sm:$0xff]  ;;  %v2118_v14 = vld [vmem:[#allocation7 + $0x58] sm:$0xff] }
 0x75f   :  { %5113 = vtanh.f32 %v5947_v61  ;;  %v1857_v47 = vld [vmem:[#allocation5 + $0x1f0] sm:$0xff] }
 0x760   :  { %v4327_v60 = vpack.c.bf16 %v1857_v47, %v1853_v44  ;;  %v2144_v44 = vld [vmem:[#allocation7 + $0x128] sm:$0xff]  ;;  %v2142_v47 = vld [vmem:[#allocation7 + $0x118] sm:$0xff] }
 0x769   :  { %v5114_v3 = vpop.eup %5113 }
 0x76a   :  { %v5950_v29 = vmul.f32 %v5114_v3, %v5112_v34  ;;  %v1836_v34 = vld [vmem:[#allocation5 + $0x148] sm:$0xff] }
 0x76b   :  { %v1840_v3 = vld [vmem:[#allocation5 + $0x168] sm:$0xff] }
 0x76c   :  { %1690 = vmatmul.mubr.f32.vlgmr.msra.gmra.mrb[14].mxu0 %v5950_v29  ;;  %1761 = vmatmul.mubr.f32.vlgmr.msra.gmra.mrb[14].mxu1 %v5950_v29  ;;  %v4285_v37 = vpack.c.bf16 %v1840_v3, %v1836_v34  ;;  %v2122_v3 = vld [vmem:[#allocation7 + $0x78] sm:$0xff] }
 0x76d   :  { %4268 = vmatpush1.bf16.msra.mxu0 %v4267_v17  ;;  %4300 = vmatpush1.bf16.msra.mxu1 %v4299_v40  ;;  %v1838_v17 = vld [vmem:[#allocation5 + $0x158] sm:$0xff] }
 0x76e   :  { %4270 = vmatprep.subr.bf16.mxu0 %v4269_v53  ;;  %4302 = vmatprep.subr.bf16.mxu1 %v4301_v52  ;;  %v1842_v40 = vld [vmem:[#allocation5 + $0x178] sm:$0xff]  ;;  %v1835_v53 = vld [vmem:[#allocation5 + $0x140] sm:$0xff] }
 0x76f   :  { %1945 = vmatprep.mubr.f32.mxu0 %v5334_v1  ;;  %2058 = vmatprep.mubr.f32.mxu1 %v5334_v1  ;;  %v1839_v52 = vld [vmem:[#allocation5 + $0x160] sm:$0xff]  ;;  %v4317_v63 = vpack.c.bf16 %v1842_v40, %v1838_v17 }
 0x770   :  { %v4287_v41 = vpack.c.bf16 %v1839_v52, %v1835_v53  ;;  %v2115_v17 = vld [vmem:[#allocation7 + $0x40] sm:$0xff]  ;;  %v2117_v53 = vld [vmem:[#allocation7 + $0x50] sm:$0xff] }
 0x771   :  { %4272 = vmatpush1.bf16.msra.mxu0 %v4271_v30  ;;  %4304 = vmatpush1.bf16.msra.mxu1 %v4303_v31  ;;  %v1846_v30 = vld [vmem:[#allocation5 + $0x198] sm:$0xff]  ;;  %v2119_v40 = vld [vmem:[#allocation7 + $0x60] sm:$0xff]  ;;  %v2121_v52 = vld [vmem:[#allocation7 + $0x70] sm:$0xff] }
 0x772   :  { %4274 = vmatprep.subr.bf16.mxu0 %v4273_v45  ;;  %4306 = vmatprep.subr.bf16.mxu1 %v4305_v46  ;;  %v1850_v31 = vld [vmem:[#allocation5 + $0x1b8] sm:$0xff]  ;;  %v1843_v45 = vld [vmem:[#allocation5 + $0x180] sm:$0xff] }
 0x773   :  { %v1847_v46 = vld [vmem:[#allocation5 + $0x1a0] sm:$0xff]  ;;  %v4321_v55 = vpack.c.bf16 %v1850_v31, %v1846_v30 }
 0x774   :  { %v4291_v21 = vpack.c.bf16 %v1847_v46, %v1843_v45  ;;  %v2123_v30 = vld [vmem:[#allocation7 + $0x80] sm:$0xff]  ;;  %v2125_v45 = vld [vmem:[#allocation7 + $0x90] sm:$0xff] }
 0x775   :  { %4276 = vmatpush1.bf16.msra.mxu0 %v4275_v8  ;;  %4308 = vmatpush1.bf16.msra.mxu1 %v4307_v9  ;;  %v1854_v8 = vld [vmem:[#allocation5 + $0x1d8] sm:$0xff]  ;;  %v2127_v31 = vld [vmem:[#allocation7 + $0xa0] sm:$0xff]  ;;  %v2129_v46 = vld [vmem:[#allocation7 + $0xb0] sm:$0xff] }
 0x776   :  { %4278 = vmatprep.subr.bf16.mxu0 %v4277_v25  ;;  %4310 = vmatprep.subr.bf16.mxu1 %v4309_v28  ;;  %v1858_v9 = vld [vmem:[#allocation5 + $0x1f8] sm:$0xff]  ;;  %v1851_v25 = vld [vmem:[#allocation5 + $0x1c0] sm:$0xff]  ;;  %v4293_v28 = vpack.c.bf16 %v1856_v5, %v1852_v4 }
 0x777   :  { %v4325_v38 = vpack.c.bf16 %v1858_v9, %v1854_v8  ;;  %v4295_v57 = vpack.c.bf16 %v1855_v39, %v1851_v25  ;;  %v2138_v5 = vld [vmem:[#allocation7 + $0xf8] sm:$0xff]  ;;  %v2131_v8 = vld [vmem:[#allocation7 + $0xc0] sm:$0xff]  ;;  %v2133_v25 = vld [vmem:[#allocation7 + $0xd0] sm:$0xff] }
 0x778   :  { %v2135_v9 = vld [vmem:[#allocation7 + $0xe0] sm:$0xff] }
 0x779   :  { %4280 = vmatpush1.bf16.msra.mxu0 %v4279_v62  ;;  %4312 = vmatpush1.bf16.msra.mxu1 %v4311_v23  ;;  %v2107_v62 = vld [vmem:[#allocation7] sm:$0xff] }
 0x77a   :  { %4282 = vmatprep.subr.bf16.mxu0 %v4281_v20  ;;  %4314 = vmatprep.subr.bf16.mxu1 %v4313_v10  ;;  %v2113_v20 = vld [vmem:[#allocation7 + $0x30] sm:$0xff]  ;;  %v2116_v10 = vld [vmem:[#allocation7 + $0x48] sm:$0xff] }
 0x77b   :  { %v5996_v34 = vpack.c.bf16 %v2120_v24, %v2116_v10 }
 0x77d   :  { %4284 = vmatpush1.bf16.msra.mxu0 %v4283_v56  ;;  %4316 = vmatpush1.bf16.msra.mxu1 %v4315_v49  ;;  %v5998_v56 = vpack.c.bf16 %v2122_v3, %v2118_v14  ;;  %v6000_v49 = vpack.c.bf16 %v2119_v40, %v2115_v17  ;;  %v2150_v14 = vld [vmem:[#allocation7 + $0x158] sm:$0xff]  ;;  %v2147_v17 = vld [vmem:[#allocation7 + $0x140] sm:$0xff] }
 0x77e   :  { %4286 = vmatprep.subr.bf16.mxu0 %v4285_v37  ;;  %4318 = vmatprep.subr.bf16.mxu1 %v4317_v63  ;;  %v6003_v37 = vpack.c.bf16 %v2121_v52, %v2117_v53  ;;  %v2124_v63 = vld [vmem:[#allocation7 + $0x88] sm:$0xff]  ;;  %v2154_v3 = vld [vmem:[#allocation7 + $0x178] sm:$0xff]  ;;  %v2151_v53 = vld [vmem:[#allocation7 + $0x160] sm:$0xff] }
 0x77f   :  { %v6008_v26 = vpack.c.bf16 %v2128_v15, %v2124_v63  ;;  %v6044_v40 = vpack.c.bf16 %v2154_v3, %v2150_v14  ;;  %v2149_v52 = vld [vmem:[#allocation7 + $0x150] sm:$0xff]  ;;  %v6047_v15 = vpack.c.bf16 %v2151_v53, %v2147_v17 }
 0x780   :  { %v2153_v63 = vld [vmem:[#allocation7 + $0x170] sm:$0xff] }
 0x781   :  { %4288 = vmatpush1.bf16.msra.mxu0 %v4287_v41  ;;  %4320 = vmatpush1.bf16.msra.mxu1 %v4319_v42  ;;  %v6010_v41 = vpack.c.bf16 %v2130_v27, %v2126_v18  ;;  %v6012_v42 = vpack.c.bf16 %v2127_v31, %v2123_v30  ;;  %v2156_v18 = vld [vmem:[#allocation7 + $0x188] sm:$0xff]  ;;  %v2158_v30 = vld [vmem:[#allocation7 + $0x198] sm:$0xff]  ;;  %v6051_v31 = vpack.c.bf16 %v2153_v63, %v2149_v52 }
 0x782   :  { %4290 = vmatprep.subr.bf16.mxu0 %v4289_v54  ;;  %4322 = vmatprep.subr.bf16.mxu1 %v4321_v55  ;;  %v6015_v54 = vpack.c.bf16 %v2129_v46, %v2125_v45  ;;  %v2132_v55 = vld [vmem:[#allocation7 + $0xc8] sm:$0xff]  ;;  %v2162_v46 = vld [vmem:[#allocation7 + $0x1b8] sm:$0xff] }
 0x783   :  { %v6020_v4 = vpack.c.bf16 %v2136_v58, %v2132_v55  ;;  %v2160_v27 = vld [vmem:[#allocation7 + $0x1a8] sm:$0xff]  ;;  %v2155_v55 = vld [vmem:[#allocation7 + $0x180] sm:$0xff] }
 0x784   :  { %v6053_v45 = vpack.c.bf16 %v2160_v27, %v2156_v18  ;;  %v2159_v58 = vld [vmem:[#allocation7 + $0x1a0] sm:$0xff] }
 0x785   :  { %4292 = vmatpush1.bf16.msra.mxu0 %v4291_v21  ;;  %4324 = vmatpush1.bf16.msra.mxu1 %v4323_v22  ;;  %v6022_v21 = vpack.c.bf16 %v2138_v5, %v2134_v59  ;;  %v6024_v22 = vpack.c.bf16 %v2135_v9, %v2131_v8  ;;  %v6056_v59 = vpack.c.bf16 %v2162_v46, %v2158_v30  ;;  %v2157_v5 = vld [vmem:[#allocation7 + $0x190] sm:$0xff] }
 0x786   :  { %4294 = vmatprep.subr.bf16.mxu0 %v4293_v28  ;;  %4326 = vmatprep.subr.bf16.mxu1 %v4325_v38  ;;  %v2137_v28 = vld [vmem:[#allocation7 + $0xf0] sm:$0xff]  ;;  %v2140_v38 = vld [vmem:[#allocation7 + $0x108] sm:$0xff]  ;;  %v6059_v9 = vpack.c.bf16 %v2159_v58, %v2155_v55 }
 0x787   :  { %v6027_v39 = vpack.c.bf16 %v2137_v28, %v2133_v25  ;;  %v2161_v8 = vld [vmem:[#allocation7 + $0x1b0] sm:$0xff]  ;;  %v2164_v28 = vld [vmem:[#allocation7 + $0x1c8] sm:$0xff] }
 0x788   :  { %v6063_v25 = vpack.c.bf16 %v2161_v8, %v2157_v5 }
 0x789   :  { %4296 = vmatpush1.bf16.msra.mxu0 %v4295_v57  ;;  %4328 = vmatpush1.bf16.msra.mxu1 %v4327_v60  ;;  %v2146_v57 = vld [vmem:[#allocation7 + $0x138] sm:$0xff]  ;;  %v6031_v60 = vpack.c.bf16 %v2144_v44, %v2140_v38  ;;  %v2168_v38 = vld [vmem:[#allocation7 + $0x1e8] sm:$0xff] }
 0x78a   :  { %v2166_v44 = vld [vmem:[#allocation7 + $0x1d8] sm:$0xff] }
 0x78c   :  { %1946 = vmatmul.mubr.f32.vlgmr.msra.gmra.mrb[16].mxu0 %v5676_v19  ;;  %2059 = vmatmul.mubr.f32.vlgmr.msra.gmra.mrb[16].mxu1 %v5676_v19  ;;  %v2108_v19 = vld [vmem:[#allocation7 + $0x8] sm:$0xff] }
 0x78d   :  { %1951 = vmatprep.mubr.f32.mxu0 %v5334_v1  ;;  %2064 = vmatprep.mubr.f32.mxu1 %v5334_v1 }
 0x790   :  { %1952 = vmatmul.mubr.f32.gmra.mrb[18].mxu0 %v5722_v36  ;;  %2065 = vmatmul.mubr.f32.gmra.mrb[18].mxu1 %v5722_v36  ;;  %v2112_v36 = vld [vmem:[#allocation7 + $0x28] sm:$0xff] }
 0x791   :  { %1957 = vmatprep.mubr.f32.mxu0 %v5334_v1  ;;  %2070 = vmatprep.mubr.f32.mxu1 %v5334_v1 }
 0x794   :  { %1958 = vmatmul.mubr.f32.gmra.mrb[20].mxu0 %v5768_v50  ;;  %2071 = vmatmul.mubr.f32.gmra.mrb[20].mxu1 %v5768_v50  ;;  %v2110_v50 = vld [vmem:[#allocation7 + $0x18] sm:$0xff] }
 0x795   :  { %1963 = vmatprep.mubr.f32.mxu0 %v5334_v1  ;;  %2076 = vmatprep.mubr.f32.mxu1 %v5334_v1 }
 0x798   :  { %1964 = vmatmul.mubr.f32.gmra.mrb[22].mxu0 %v5814_v13  ;;  %2077 = vmatmul.mubr.f32.gmra.mrb[22].mxu1 %v5814_v13  ;;  %v5984_v13 = vpack.c.bf16 %v2112_v36, %v2108_v19  ;;  %v6033_v19 = vpack.c.bf16 %v2146_v57, %v2142_v47  ;;  %v2139_v36 = vld [vmem:[#allocation7 + $0x100] sm:$0xff]  ;;  %v6068_v47 = vpack.c.bf16 %v2168_v38, %v2164_v28  ;;  %v2170_v57 = vld [vmem:[#allocation7 + $0x1f8] sm:$0xff] }
 0x799   :  { %1969 = vmatprep.mubr.f32.mxu0 %v5334_v1  ;;  %2082 = vmatprep.mubr.f32.mxu1 %v5334_v1 }
 0x79a   :  { %4330 = vmatprep.subr.bf16.mxu0 %v5984_v13 }
 0x79c   :  { %1970 = vmatmul.mubr.f32.gmra.mrb[24].mxu0 %v5860_v43  ;;  %2083 = vmatmul.mubr.f32.gmra.mrb[24].mxu1 %v5860_v43  ;;  %v2114_v43 = vld [vmem:[#allocation7 + $0x38] sm:$0xff] }
 0x79d   :  { %1975 = vmatprep.mubr.f32.mxu0 %v5334_v1  ;;  %2088 = vmatprep.mubr.f32.mxu1 %v5334_v1  ;;  %v5986_v23 = vpack.c.bf16 %v2114_v43, %v2110_v50  ;;  %v2143_v50 = vld [vmem:[#allocation7 + $0x120] sm:$0xff]  ;;  %v2141_v43 = vld [vmem:[#allocation7 + $0x110] sm:$0xff] }
 0x79f   :  { %4362 = vmatprep.subr.bf16.mxu1 %v5986_v23 }
 0x7a0   :  { %1976 = vmatmul.mubr.f32.gmra.mrb[26].mxu0 %v5906_v51  ;;  %2089 = vmatmul.mubr.f32.gmra.mrb[26].mxu1 %v5906_v51  ;;  %v2111_v51 = vld [vmem:[#allocation7 + $0x20] sm:$0xff] }
 0x7a1   :  { %1981 = vmatprep.mubr.f32.mxu0 %v5334_v1  ;;  %2094 = vmatprep.mubr.f32.mxu1 %v5334_v1  ;;  %v5988_v12 = vpack.c.bf16 %v2111_v51, %v2107_v62  ;;  %v6036_v62 = vpack.c.bf16 %v2143_v50, %v2139_v36  ;;  %v2145_v51 = vld [vmem:[#allocation7 + $0x130] sm:$0xff]  ;;  %v2163_v36 = vld [vmem:[#allocation7 + $0x1c0] sm:$0xff] }
 0x7a2   :  { %v6040_v10 = vpack.c.bf16 %v2145_v51, %v2141_v43  ;;  %v2167_v50 = vld [vmem:[#allocation7 + $0x1e0] sm:$0xff]  ;;  %v6070_v43 = vpack.c.bf16 %v2170_v57, %v2166_v44 }
 0x7a3   :  { %4332 = vmatpush1.bf16.msra.mxu0 %v5988_v12  ;;  %v6072_v51 = vpack.c.bf16 %v2167_v50, %v2163_v36 }
 0x7a4   :  { %1982 = vmatmul.mubr.f32.gmra.mrb[28].mxu0 %v5950_v29  ;;  %2095 = vmatmul.mubr.f32.gmra.mrb[28].mxu1 %v5950_v29  ;;  %v5991_v29 = vpack.c.bf16 %v2113_v20, %v2109_v48  ;;  %v2148_v48 = vld [vmem:[#allocation7 + $0x148] sm:$0xff] }
 0x7a5   :  { %1987 = vmatprep.mubr.f32.mxu0 %v5334_v1  ;;  %2100 = vmatprep.mubr.f32.mxu1 %v5334_v1  ;;  %v2152_v20 = vld [vmem:[#allocation7 + $0x168] sm:$0xff] }
 0x7a6   :  { %4364 = vmatpush1.bf16.msra.mxu1 %v5991_v29  ;;  %4334 = vmatprep.subr.bf16.mxu0 %v5996_v34  ;;  %v6042_v24 = vpack.c.bf16 %v2152_v20, %v2148_v48  ;;  %v2165_v48 = vld [vmem:[#allocation7 + $0x1d0] sm:$0xff] }
 0x7a7   :  { %4366 = vmatprep.subr.bf16.mxu1 %v5998_v56  ;;  %4336 = vmatpush1.bf16.msra.mxu0 %v6000_v49  ;;  %v2169_v20 = vld [vmem:[#allocation7 + $0x1f0] sm:$0xff] }
 0x7a8   :  { %4338 = vmatprep.subr.bf16.mxu0 %v6008_v26  ;;  %v6075_v14 = vpack.c.bf16 %v2169_v20, %v2165_v48 }
 0x7aa   :  { %4368 = vmatpush1.bf16.msra.mxu1 %v6003_v37 }
 0x7ab   :  { %4370 = vmatprep.subr.bf16.mxu1 %v6010_v41  ;;  %4340 = vmatpush1.bf16.msra.mxu0 %v6012_v42 }
 0x7ac   :  { %4342 = vmatprep.subr.bf16.mxu0 %v6020_v4 }
 0x7ae   :  { %4372 = vmatpush1.bf16.msra.mxu1 %v6015_v54 }
 0x7af   :  { %4374 = vmatprep.subr.bf16.mxu1 %v6022_v21  ;;  %4344 = vmatpush1.bf16.msra.mxu0 %v6024_v22 }
 0x7b0   :  { %4346 = vmatprep.subr.bf16.mxu0 %v6031_v60 }
 0x7b2   :  { %4376 = vmatpush1.bf16.msra.mxu1 %v6027_v39 }
 0x7b3   :  { %4378 = vmatprep.subr.bf16.mxu1 %v6033_v19  ;;  %4348 = vmatpush1.bf16.msra.mxu0 %v6036_v62 }
 0x7b4   :  { %4350 = vmatprep.subr.bf16.mxu0 %v6042_v24 }
 0x7b6   :  { %4380 = vmatpush1.bf16.msra.mxu1 %v6040_v10 }
 0x7b7   :  { %4382 = vmatprep.subr.bf16.mxu1 %v6044_v40  ;;  %4352 = vmatpush1.bf16.msra.mxu0 %v6047_v15 }
 0x7b8   :  { %4354 = vmatprep.subr.bf16.mxu0 %v6053_v45 }
 0x7ba   :  { %4384 = vmatpush1.bf16.msra.mxu1 %v6051_v31 }
 0x7bb   :  { %4386 = vmatprep.subr.bf16.mxu1 %v6056_v59  ;;  %4356 = vmatpush1.bf16.msra.mxu0 %v6059_v9 }
 0x7bc   :  { %4358 = vmatprep.subr.bf16.mxu0 %v6068_v47 }
 0x7be   :  { %4388 = vmatpush1.bf16.msra.mxu1 %v6063_v25 }
 0x7bf   :  { %4390 = vmatprep.subr.bf16.mxu1 %v6070_v43  ;;  %4360 = vmatpush1.bf16.msra.mxu0 %v6072_v51 }
 0x7c0   :  { %4394 = vmatprep.subr.bf16.mxu0 %v5984_v13 }
 0x7c2   :  { %4392 = vmatpush1.bf16.msra.mxu1 %v6075_v14 }
 0x7c3   :  { %4426 = vmatprep.subr.bf16.mxu1 %v5986_v23 }
 0x83f   :  { %v1691_v3 = vpop.f32.mrb[14].mxu0  ;;  %v1762_v17 = vpop.f32.mrb[14].mxu1 }
 0x840   :  { %v4879_v53 = vadd.f32 %v1691_v3, %v5653_v7  ;;  %v1693_v52 = vpop.f32.mrb[15].mxu0  ;;  %v1764_v63 = vpop.f32.mrb[15].mxu1  ;;  %v4895_v58 = vadd.f32 %v1762_v17, %v5670_v35 }
 0x841   :  { %v4880_v18 = vadd.f32 %v1693_v52, %v5657_v11  ;;  %v4896_v46 = vadd.f32 %v1764_v63, %v5664_v32 }
 0x842   :  { %v3673_v27 = vmul.f32 -1.442695, %v4879_v53 }
 0x843   :  { %v3674_v30 = vmul.f32 -1.442695, %v4880_v18  ;;  %v3675_v55 = vmul.f32 -1.442695, %v4896_v46 }
 0x844   :  { %5115 = vpow2.f32 %v3673_v27 }
 0x845   :  { %5117 = vpow2.f32 %v3674_v30 }
 0x846   :  { %5119 = vpow2.f32 %v3675_v55 }
 0x847   :  { %5121 = vtanh.f32 %v4895_v58 }
 0x84e   :  { %v5116_v5 = vpop.eup %5115 }
 0x84f   :  { %v5118_v8 = vpop.eup %5117  ;;  %v1774_v28 = vadd.f32 1.0, %v5116_v5 }
 0x850   :  { %v1780_v38 = vadd.f32 1.0, %v5118_v8  ;;  %v5120_v7 = vpop.eup %5119 }
 0x851   :  { %5123 = vrcp.f32 %v1774_v28  ;;  %v5122_v44 = vpop.eup %5121  ;;  %v1787_v50 = vadd.f32 1.0, %v5120_v7 }
 0x852   :  { %5125 = vrcp.f32 %v1780_v38 }
 0x853   :  { %5127 = vrcp.f32 %v1787_v50 }
 0x85b   :  { %v5124_v11 = vpop.eup %5123 }
 0x85c   :  { %v5126_v57 = vpop.eup %5125  ;;  %v1791_v36 = vmul.f32 %v5124_v11, %v5122_v44 }
 0x85d   :  { %v1790_v48 = vmul.f32 %v5126_v57, %v5947_v61  ;;  %v5128_v35 = vpop.eup %5127  ;;  %v1859_v61 = vld [vmem:[%s6464_s6] sm:$0xf] }
 0x85e   :  { %v6130_v17 = vrot.slane %v1859_v61, %v89_v2  ;;  %v6134_v53 = vrot.slane %v1859_v61, %v93_v6  ;;  %v6140_v5 = vrot.slane %v1859_v61, %v101_v16  ;;  %v6145_v6 = vrot.slane %v1859_v61, %v97_v33 }
 0x85f   :  { %v1792_v32 = vadd.f32 %v1791_v36, %v1790_v48 }
 0x861   :  { %5129 = vtanh.f32 %v1792_v32 }
 0x86b   :  { %v5130_v20 = vpop.eup %5129 }
 0x86c   :  { %v1794_v3 = vmul.f32 %v5130_v20, %v5128_v35 }
 0x86e   :  { %1988 = vmatmul.mubr.f32.gmra.mrb[30].mxu0 %v1794_v3  ;;  %2101 = vmatmul.mubr.f32.gmra.mrb[30].mxu1 %v1794_v3 }
 0x86f   :  { %2235 = vmatprep.mubr.f32.mxu0 %v5334_v1  ;;  %2306 = vmatprep.mubr.f32.mxu1 %v5334_v1 }
 0x872   :  { %2236 = vmatmul.mubr.f32.vlgmr.msra.gmra.mrb[16].mxu0 %v5334_v1  ;;  %2307 = vmatmul.mubr.f32.vlgmr.msra.gmra.mrb[16].mxu1 %v5334_v1 }
 0x873   :  { %4396 = vmatpush1.bf16.msra.mxu0 %v5988_v12  ;;  %4428 = vmatpush1.bf16.msra.mxu1 %v5991_v29 }
 0x874   :  { %4398 = vmatprep.subr.bf16.mxu0 %v5996_v34  ;;  %4430 = vmatprep.subr.bf16.mxu1 %v5998_v56 }
 0x875   :  { %2405 = vmatprep.mubr.f32.mxu0 %v5334_v1  ;;  %2476 = vmatprep.mubr.f32.mxu1 %v5334_v1 }
 0x877   :  { %4400 = vmatpush1.bf16.msra.mxu0 %v6000_v49  ;;  %4432 = vmatpush1.bf16.msra.mxu1 %v6003_v37 }
 0x878   :  { %4402 = vmatprep.subr.bf16.mxu0 %v6008_v26  ;;  %4434 = vmatprep.subr.bf16.mxu1 %v6010_v41 }
 0x87b   :  { %4404 = vmatpush1.bf16.msra.mxu0 %v6012_v42  ;;  %4436 = vmatpush1.bf16.msra.mxu1 %v6015_v54 }
 0x87c   :  { %4406 = vmatprep.subr.bf16.mxu0 %v6020_v4  ;;  %4438 = vmatprep.subr.bf16.mxu1 %v6022_v21 }
 0x87f   :  { %4408 = vmatpush1.bf16.msra.mxu0 %v6024_v22  ;;  %4440 = vmatpush1.bf16.msra.mxu1 %v6027_v39 }
 0x880   :  { %4410 = vmatprep.subr.bf16.mxu0 %v6031_v60  ;;  %4442 = vmatprep.subr.bf16.mxu1 %v6033_v19 }
 0x883   :  { %4412 = vmatpush1.bf16.msra.mxu0 %v6036_v62  ;;  %4444 = vmatpush1.bf16.msra.mxu1 %v6040_v10 }
 0x884   :  { %4414 = vmatprep.subr.bf16.mxu0 %v6042_v24  ;;  %4446 = vmatprep.subr.bf16.mxu1 %v6044_v40 }
 0x887   :  { %4416 = vmatpush1.bf16.msra.mxu0 %v6047_v15  ;;  %4448 = vmatpush1.bf16.msra.mxu1 %v6051_v31 }
 0x888   :  { %4418 = vmatprep.subr.bf16.mxu0 %v6053_v45  ;;  %4450 = vmatprep.subr.bf16.mxu1 %v6056_v59 }
 0x88b   :  { %4420 = vmatpush1.bf16.msra.mxu0 %v6059_v9  ;;  %4452 = vmatpush1.bf16.msra.mxu1 %v6063_v25 }
 0x88c   :  { %4422 = vmatprep.subr.bf16.mxu0 %v6068_v47  ;;  %4454 = vmatprep.subr.bf16.mxu1 %v6070_v43 }
 0x88f   :  { %4424 = vmatpush1.bf16.msra.mxu0 %v6072_v51  ;;  %4456 = vmatpush1.bf16.msra.mxu1 %v6075_v14 }
 0x890   :  { %4458 = vmatprep.subr.bf16.mxu0 %v5984_v13  ;;  %4490 = vmatprep.subr.bf16.mxu1 %v5986_v23 }
 0x945   :  { %v2237_v52 = vpop.f32.mrb[16].mxu0  ;;  %v2308_v63 = vpop.f32.mrb[16].mxu1 }
 0x946   :  { %v4897_v18 = vadd.f32 %v2237_v52, %v6130_v17  ;;  %v2239_v27 = vpop.f32.mrb[17].mxu0  ;;  %v2310_v30 = vpop.f32.mrb[17].mxu1  ;;  %v4913_v28 = vadd.f32 %v2308_v63, %v6145_v6 }
 0x947   :  { %v4898_v46 = vadd.f32 %v2239_v27, %v6134_v53  ;;  %v4914_v2 = vadd.f32 %v2310_v30, %v6140_v5 }
 0x948   :  { %v3676_v55 = vmul.f32 -1.442695, %v4897_v18 }
 0x949   :  { %v3677_v58 = vmul.f32 -1.442695, %v4898_v46  ;;  %v3678_v8 = vmul.f32 -1.442695, %v4914_v2 }
 0x94a   :  { %5131 = vpow2.f32 %v3676_v55 }
 0x94b   :  { %5133 = vpow2.f32 %v3677_v58 }
 0x94c   :  { %5135 = vpow2.f32 %v3678_v8 }
 0x94d   :  { %5137 = vtanh.f32 %v4913_v28 }
 0x954   :  { %v5132_v38 = vpop.eup %5131 }
 0x955   :  { %v5134_v7 = vpop.eup %5133  ;;  %v2320_v44 = vadd.f32 1.0, %v5132_v38 }
 0x956   :  { %v2326_v11 = vadd.f32 1.0, %v5134_v7  ;;  %v5136_v16 = vpop.eup %5135 }
 0x957   :  { %5139 = vrcp.f32 %v2320_v44  ;;  %v5138_v57 = vpop.eup %5137  ;;  %v2333_v32 = vadd.f32 1.0, %v5136_v16 }
 0x958   :  { %5141 = vrcp.f32 %v2326_v11 }
 0x959   :  { %5143 = vrcp.f32 %v2333_v32 }
 0x961   :  { %v5140_v36 = vpop.eup %5139 }
 0x962   :  { %v5142_v50 = vpop.eup %5141  ;;  %v2337_v48 = vmul.f32 %v5140_v36, %v5138_v57 }
 0x963   :  { %v2336_v0 = vmul.f32 0.0, %v5142_v50  ;;  %v5144_v35 = vpop.eup %5143 }
 0x965   :  { %v6148_v33 = vadd.f32 %v2337_v48, %v2336_v0 }
 0x967   :  { %5145 = vtanh.f32 %v6148_v33 }
 0x971   :  { %v5146_v20 = vpop.eup %5145 }
 0x972   :  { %v2340_v3 = vmul.f32 %v5146_v20, %v5144_v35 }
 0x974   :  { %2406 = vmatmul.mubr.f32.vlgmr.msra.gmra.mrb[18].mxu0 %v2340_v3  ;;  %2477 = vmatmul.mubr.f32.vlgmr.msra.gmra.mrb[18].mxu1 %v2340_v3 }
 0x975   :  { %4460 = vmatpush1.bf16.msra.mxu0 %v5988_v12  ;;  %4492 = vmatpush1.bf16.msra.mxu1 %v5991_v29 }
 0x976   :  { %4462 = vmatprep.subr.bf16.mxu0 %v5996_v34  ;;  %4494 = vmatprep.subr.bf16.mxu1 %v5998_v56 }
 0x977   :  { %2575 = vmatprep.mubr.f32.mxu0 %v5334_v1  ;;  %2646 = vmatprep.mubr.f32.mxu1 %v5334_v1 }
 0x979   :  { %4464 = vmatpush1.bf16.msra.mxu0 %v6000_v49  ;;  %4496 = vmatpush1.bf16.msra.mxu1 %v6003_v37 }
 0x97a   :  { %4466 = vmatprep.subr.bf16.mxu0 %v6008_v26  ;;  %4498 = vmatprep.subr.bf16.mxu1 %v6010_v41 }
 0x97d   :  { %4468 = vmatpush1.bf16.msra.mxu0 %v6012_v42  ;;  %4500 = vmatpush1.bf16.msra.mxu1 %v6015_v54 }
 0x97e   :  { %4470 = vmatprep.subr.bf16.mxu0 %v6020_v4  ;;  %4502 = vmatprep.subr.bf16.mxu1 %v6022_v21 }
 0x981   :  { %4472 = vmatpush1.bf16.msra.mxu0 %v6024_v22  ;;  %4504 = vmatpush1.bf16.msra.mxu1 %v6027_v39 }
 0x982   :  { %4474 = vmatprep.subr.bf16.mxu0 %v6031_v60  ;;  %4506 = vmatprep.subr.bf16.mxu1 %v6033_v19 }
 0x985   :  { %4476 = vmatpush1.bf16.msra.mxu0 %v6036_v62  ;;  %4508 = vmatpush1.bf16.msra.mxu1 %v6040_v10 }
 0x986   :  { %4478 = vmatprep.subr.bf16.mxu0 %v6042_v24  ;;  %4510 = vmatprep.subr.bf16.mxu1 %v6044_v40 }
 0x989   :  { %4480 = vmatpush1.bf16.msra.mxu0 %v6047_v15  ;;  %4512 = vmatpush1.bf16.msra.mxu1 %v6051_v31 }
 0x98a   :  { %4482 = vmatprep.subr.bf16.mxu0 %v6053_v45  ;;  %4514 = vmatprep.subr.bf16.mxu1 %v6056_v59 }
 0x98d   :  { %4484 = vmatpush1.bf16.msra.mxu0 %v6059_v9  ;;  %4516 = vmatpush1.bf16.msra.mxu1 %v6063_v25 }
 0x98e   :  { %4486 = vmatprep.subr.bf16.mxu0 %v6068_v47  ;;  %4518 = vmatprep.subr.bf16.mxu1 %v6070_v43 }
 0x991   :  { %4488 = vmatpush1.bf16.msra.mxu0 %v6072_v51  ;;  %4520 = vmatpush1.bf16.msra.mxu1 %v6075_v14 }
 0x992   :  { %4522 = vmatprep.subr.bf16.mxu0 %v5984_v13  ;;  %4554 = vmatprep.subr.bf16.mxu1 %v5986_v23 }
 0xa47   :  { %v2407_v61 = vpop.f32.mrb[18].mxu0  ;;  %v2478_v52 = vpop.f32.mrb[18].mxu1 }
 0xa48   :  { %v4899_v63 = vadd.f32 %v2407_v61, %v6130_v17  ;;  %v2409_v18 = vpop.f32.mrb[19].mxu0  ;;  %v2480_v27 = vpop.f32.mrb[19].mxu1  ;;  %v4915_v8 = vadd.f32 %v2478_v52, %v6145_v6 }
 0xa49   :  { %v4900_v30 = vadd.f32 %v2409_v18, %v6134_v53  ;;  %v4916_v58 = vadd.f32 %v2480_v27, %v6140_v5 }
 0xa4a   :  { %v3679_v46 = vmul.f32 -1.442695, %v4899_v63 }
 0xa4b   :  { %v3680_v55 = vmul.f32 -1.442695, %v4900_v30  ;;  %v3681_v2 = vmul.f32 -1.442695, %v4916_v58 }
 0xa4c   :  { %5147 = vpow2.f32 %v3679_v46 }
 0xa4d   :  { %5149 = vpow2.f32 %v3680_v55 }
 0xa4e   :  { %5151 = vpow2.f32 %v3681_v2 }
 0xa4f   :  { %5153 = vtanh.f32 %v4915_v8 }
 0xa56   :  { %v5148_v28 = vpop.eup %5147 }
 0xa57   :  { %v5150_v38 = vpop.eup %5149  ;;  %v2490_v7 = vadd.f32 1.0, %v5148_v28 }
 0xa58   :  { %v2496_v44 = vadd.f32 1.0, %v5150_v38  ;;  %v5152_v11 = vpop.eup %5151 }
 0xa59   :  { %5155 = vrcp.f32 %v2490_v7  ;;  %v5154_v16 = vpop.eup %5153  ;;  %v2503_v48 = vadd.f32 1.0, %v5152_v11 }
 0xa5a   :  { %5157 = vrcp.f32 %v2496_v44 }
 0xa5b   :  { %5159 = vrcp.f32 %v2503_v48 }
 0xa63   :  { %v5156_v57 = vpop.eup %5155 }
 0xa64   :  { %v5158_v36 = vpop.eup %5157  ;;  %v2507_v50 = vmul.f32 %v5156_v57, %v5154_v16 }
 0xa65   :  { %v2506_v32 = vmul.f32 %v5158_v36, %v6148_v33  ;;  %v5160_v35 = vpop.eup %5159 }
 0xa67   :  { %v6190_v0 = vadd.f32 %v2507_v50, %v2506_v32 }
 0xa69   :  { %5161 = vtanh.f32 %v6190_v0 }
 0xa73   :  { %v5162_v20 = vpop.eup %5161 }
 0xa74   :  { %v2510_v3 = vmul.f32 %v5162_v20, %v5160_v35 }
 0xa76   :  { %2576 = vmatmul.mubr.f32.vlgmr.msra.gmra.mrb[20].mxu0 %v2510_v3  ;;  %2647 = vmatmul.mubr.f32.vlgmr.msra.gmra.mrb[20].mxu1 %v2510_v3 }
 0xa77   :  { %4524 = vmatpush1.bf16.msra.mxu0 %v5988_v12  ;;  %4556 = vmatpush1.bf16.msra.mxu1 %v5991_v29 }
 0xa78   :  { %4526 = vmatprep.subr.bf16.mxu0 %v5996_v34  ;;  %4558 = vmatprep.subr.bf16.mxu1 %v5998_v56 }
 0xa79   :  { %2745 = vmatprep.mubr.f32.mxu0 %v5334_v1  ;;  %2816 = vmatprep.mubr.f32.mxu1 %v5334_v1 }
 0xa7b   :  { %4528 = vmatpush1.bf16.msra.mxu0 %v6000_v49  ;;  %4560 = vmatpush1.bf16.msra.mxu1 %v6003_v37 }
 0xa7c   :  { %4530 = vmatprep.subr.bf16.mxu0 %v6008_v26  ;;  %4562 = vmatprep.subr.bf16.mxu1 %v6010_v41 }
 0xa7f   :  { %4532 = vmatpush1.bf16.msra.mxu0 %v6012_v42  ;;  %4564 = vmatpush1.bf16.msra.mxu1 %v6015_v54 }
 0xa80   :  { %4534 = vmatprep.subr.bf16.mxu0 %v6020_v4  ;;  %4566 = vmatprep.subr.bf16.mxu1 %v6022_v21 }
 0xa83   :  { %4536 = vmatpush1.bf16.msra.mxu0 %v6024_v22  ;;  %4568 = vmatpush1.bf16.msra.mxu1 %v6027_v39 }
 0xa84   :  { %4538 = vmatprep.subr.bf16.mxu0 %v6031_v60  ;;  %4570 = vmatprep.subr.bf16.mxu1 %v6033_v19 }
 0xa87   :  { %4540 = vmatpush1.bf16.msra.mxu0 %v6036_v62  ;;  %4572 = vmatpush1.bf16.msra.mxu1 %v6040_v10 }
 0xa88   :  { %4542 = vmatprep.subr.bf16.mxu0 %v6042_v24  ;;  %4574 = vmatprep.subr.bf16.mxu1 %v6044_v40 }
 0xa8b   :  { %4544 = vmatpush1.bf16.msra.mxu0 %v6047_v15  ;;  %4576 = vmatpush1.bf16.msra.mxu1 %v6051_v31 }
 0xa8c   :  { %4546 = vmatprep.subr.bf16.mxu0 %v6053_v45  ;;  %4578 = vmatprep.subr.bf16.mxu1 %v6056_v59 }
 0xa8f   :  { %4548 = vmatpush1.bf16.msra.mxu0 %v6059_v9  ;;  %4580 = vmatpush1.bf16.msra.mxu1 %v6063_v25 }
 0xa90   :  { %4550 = vmatprep.subr.bf16.mxu0 %v6068_v47  ;;  %4582 = vmatprep.subr.bf16.mxu1 %v6070_v43 }
 0xa93   :  { %4552 = vmatpush1.bf16.msra.mxu0 %v6072_v51  ;;  %4584 = vmatpush1.bf16.msra.mxu1 %v6075_v14 }
 0xa94   :  { %4586 = vmatprep.subr.bf16.mxu0 %v5984_v13  ;;  %4618 = vmatprep.subr.bf16.mxu1 %v5986_v23 }
 0xb49   :  { %v2577_v33 = vpop.f32.mrb[20].mxu0  ;;  %v2648_v61 = vpop.f32.mrb[20].mxu1 }
 0xb4a   :  { %v4901_v52 = vadd.f32 %v2577_v33, %v6130_v17  ;;  %v2579_v63 = vpop.f32.mrb[21].mxu0  ;;  %v2650_v18 = vpop.f32.mrb[21].mxu1  ;;  %v4917_v2 = vadd.f32 %v2648_v61, %v6145_v6 }
 0xb4b   :  { %v4902_v27 = vadd.f32 %v2579_v63, %v6134_v53  ;;  %v4918_v55 = vadd.f32 %v2650_v18, %v6140_v5 }
 0xb4c   :  { %v3682_v30 = vmul.f32 -1.442695, %v4901_v52 }
 0xb4d   :  { %v3683_v46 = vmul.f32 -1.442695, %v4902_v27  ;;  %v3684_v58 = vmul.f32 -1.442695, %v4918_v55 }
 0xb4e   :  { %5163 = vpow2.f32 %v3682_v30 }
 0xb4f   :  { %5165 = vpow2.f32 %v3683_v46 }
 0xb50   :  { %5167 = vpow2.f32 %v3684_v58 }
 0xb51   :  { %5169 = vtanh.f32 %v4917_v2 }
 0xb58   :  { %v5164_v8 = vpop.eup %5163 }
 0xb59   :  { %v5166_v28 = vpop.eup %5165  ;;  %v2660_v38 = vadd.f32 1.0, %v5164_v8 }
 0xb5a   :  { %v2666_v7 = vadd.f32 1.0, %v5166_v28  ;;  %v5168_v44 = vpop.eup %5167 }
 0xb5b   :  { %5171 = vrcp.f32 %v2660_v38  ;;  %v5170_v11 = vpop.eup %5169  ;;  %v2673_v50 = vadd.f32 1.0, %v5168_v44 }
 0xb5c   :  { %5173 = vrcp.f32 %v2666_v7 }
 0xb5d   :  { %5175 = vrcp.f32 %v2673_v50 }
 0xb65   :  { %v5172_v16 = vpop.eup %5171 }
 0xb66   :  { %v5174_v57 = vpop.eup %5173  ;;  %v2677_v36 = vmul.f32 %v5172_v16, %v5170_v11 }
 0xb67   :  { %v2676_v48 = vmul.f32 %v5174_v57, %v6190_v0  ;;  %v5176_v35 = vpop.eup %5175 }
 0xb69   :  { %v6232_v32 = vadd.f32 %v2677_v36, %v2676_v48 }
 0xb6b   :  { %5177 = vtanh.f32 %v6232_v32 }
 0xb75   :  { %v5178_v20 = vpop.eup %5177 }
 0xb76   :  { %v2680_v3 = vmul.f32 %v5178_v20, %v5176_v35 }
 0xb78   :  { %2746 = vmatmul.mubr.f32.vlgmr.msra.gmra.mrb[22].mxu0 %v2680_v3  ;;  %2817 = vmatmul.mubr.f32.vlgmr.msra.gmra.mrb[22].mxu1 %v2680_v3 }
 0xb79   :  { %4588 = vmatpush1.bf16.msra.mxu0 %v5988_v12  ;;  %4620 = vmatpush1.bf16.msra.mxu1 %v5991_v29 }
 0xb7a   :  { %4590 = vmatprep.subr.bf16.mxu0 %v5996_v34  ;;  %4622 = vmatprep.subr.bf16.mxu1 %v5998_v56 }
 0xb7b   :  { %2915 = vmatprep.mubr.f32.mxu0 %v5334_v1  ;;  %2986 = vmatprep.mubr.f32.mxu1 %v5334_v1 }
 0xb7d   :  { %4592 = vmatpush1.bf16.msra.mxu0 %v6000_v49  ;;  %4624 = vmatpush1.bf16.msra.mxu1 %v6003_v37 }
 0xb7e   :  { %4594 = vmatprep.subr.bf16.mxu0 %v6008_v26  ;;  %4626 = vmatprep.subr.bf16.mxu1 %v6010_v41 }
 0xb81   :  { %4596 = vmatpush1.bf16.msra.mxu0 %v6012_v42  ;;  %4628 = vmatpush1.bf16.msra.mxu1 %v6015_v54 }
 0xb82   :  { %4598 = vmatprep.subr.bf16.mxu0 %v6020_v4  ;;  %4630 = vmatprep.subr.bf16.mxu1 %v6022_v21 }
 0xb85   :  { %4600 = vmatpush1.bf16.msra.mxu0 %v6024_v22  ;;  %4632 = vmatpush1.bf16.msra.mxu1 %v6027_v39 }
 0xb86   :  { %4602 = vmatprep.subr.bf16.mxu0 %v6031_v60  ;;  %4634 = vmatprep.subr.bf16.mxu1 %v6033_v19 }
 0xb89   :  { %4604 = vmatpush1.bf16.msra.mxu0 %v6036_v62  ;;  %4636 = vmatpush1.bf16.msra.mxu1 %v6040_v10 }
 0xb8a   :  { %4606 = vmatprep.subr.bf16.mxu0 %v6042_v24  ;;  %4638 = vmatprep.subr.bf16.mxu1 %v6044_v40 }
 0xb8d   :  { %4608 = vmatpush1.bf16.msra.mxu0 %v6047_v15  ;;  %4640 = vmatpush1.bf16.msra.mxu1 %v6051_v31 }
 0xb8e   :  { %4610 = vmatprep.subr.bf16.mxu0 %v6053_v45  ;;  %4642 = vmatprep.subr.bf16.mxu1 %v6056_v59 }
 0xb91   :  { %4612 = vmatpush1.bf16.msra.mxu0 %v6059_v9  ;;  %4644 = vmatpush1.bf16.msra.mxu1 %v6063_v25 }
 0xb92   :  { %4614 = vmatprep.subr.bf16.mxu0 %v6068_v47  ;;  %4646 = vmatprep.subr.bf16.mxu1 %v6070_v43 }
 0xb95   :  { %4616 = vmatpush1.bf16.msra.mxu0 %v6072_v51  ;;  %4648 = vmatpush1.bf16.msra.mxu1 %v6075_v14 }
 0xb96   :  { %4650 = vmatprep.subr.bf16.mxu0 %v5984_v13  ;;  %4682 = vmatprep.subr.bf16.mxu1 %v5986_v23 }
 0xc4b   :  { %v2747_v0 = vpop.f32.mrb[22].mxu0  ;;  %v2818_v33 = vpop.f32.mrb[22].mxu1 }
 0xc4c   :  { %v4903_v61 = vadd.f32 %v2747_v0, %v6130_v17  ;;  %v2749_v52 = vpop.f32.mrb[23].mxu0  ;;  %v2820_v63 = vpop.f32.mrb[23].mxu1  ;;  %v4919_v58 = vadd.f32 %v2818_v33, %v6145_v6 }
 0xc4d   :  { %v4904_v18 = vadd.f32 %v2749_v52, %v6134_v53  ;;  %v4920_v46 = vadd.f32 %v2820_v63, %v6140_v5 }
 0xc4e   :  { %v3685_v27 = vmul.f32 -1.442695, %v4903_v61 }
 0xc4f   :  { %v3686_v30 = vmul.f32 -1.442695, %v4904_v18  ;;  %v3687_v55 = vmul.f32 -1.442695, %v4920_v46 }
 0xc50   :  { %5179 = vpow2.f32 %v3685_v27 }
 0xc51   :  { %5181 = vpow2.f32 %v3686_v30 }
 0xc52   :  { %5183 = vpow2.f32 %v3687_v55 }
 0xc53   :  { %5185 = vtanh.f32 %v4919_v58 }
 0xc5a   :  { %v5180_v2 = vpop.eup %5179 }
 0xc5b   :  { %v5182_v8 = vpop.eup %5181  ;;  %v2830_v28 = vadd.f32 1.0, %v5180_v2 }
 0xc5c   :  { %v2836_v38 = vadd.f32 1.0, %v5182_v8  ;;  %v5184_v7 = vpop.eup %5183 }
 0xc5d   :  { %5187 = vrcp.f32 %v2830_v28  ;;  %v5186_v44 = vpop.eup %5185  ;;  %v2843_v36 = vadd.f32 1.0, %v5184_v7 }
 0xc5e   :  { %5189 = vrcp.f32 %v2836_v38 }
 0xc5f   :  { %5191 = vrcp.f32 %v2843_v36 }
 0xc67   :  { %v5188_v11 = vpop.eup %5187 }
 0xc68   :  { %v5190_v16 = vpop.eup %5189  ;;  %v2847_v57 = vmul.f32 %v5188_v11, %v5186_v44 }
 0xc69   :  { %v2846_v50 = vmul.f32 %v5190_v16, %v6232_v32  ;;  %v5192_v35 = vpop.eup %5191 }
 0xc6b   :  { %v6274_v48 = vadd.f32 %v2847_v57, %v2846_v50 }
 0xc6d   :  { %5193 = vtanh.f32 %v6274_v48 }
 0xc77   :  { %v5194_v20 = vpop.eup %5193 }
 0xc78   :  { %v2850_v3 = vmul.f32 %v5194_v20, %v5192_v35 }
 0xc7a   :  { %2916 = vmatmul.mubr.f32.vlgmr.msra.gmra.mrb[24].mxu0 %v2850_v3  ;;  %2987 = vmatmul.mubr.f32.vlgmr.msra.gmra.mrb[24].mxu1 %v2850_v3 }
 0xc7b   :  { %4652 = vmatpush1.bf16.msra.mxu0 %v5988_v12  ;;  %4684 = vmatpush1.bf16.msra.mxu1 %v5991_v29 }
 0xc7c   :  { %4654 = vmatprep.subr.bf16.mxu0 %v5996_v34  ;;  %4686 = vmatprep.subr.bf16.mxu1 %v5998_v56 }
 0xc7d   :  { %3085 = vmatprep.mubr.f32.mxu0 %v5334_v1  ;;  %3156 = vmatprep.mubr.f32.mxu1 %v5334_v1 }
 0xc7f   :  { %4656 = vmatpush1.bf16.msra.mxu0 %v6000_v49  ;;  %4688 = vmatpush1.bf16.msra.mxu1 %v6003_v37 }
 0xc80   :  { %4658 = vmatprep.subr.bf16.mxu0 %v6008_v26  ;;  %4690 = vmatprep.subr.bf16.mxu1 %v6010_v41 }
 0xc83   :  { %4660 = vmatpush1.bf16.msra.mxu0 %v6012_v42  ;;  %4692 = vmatpush1.bf16.msra.mxu1 %v6015_v54 }
 0xc84   :  { %4662 = vmatprep.subr.bf16.mxu0 %v6020_v4  ;;  %4694 = vmatprep.subr.bf16.mxu1 %v6022_v21 }
 0xc87   :  { %4664 = vmatpush1.bf16.msra.mxu0 %v6024_v22  ;;  %4696 = vmatpush1.bf16.msra.mxu1 %v6027_v39 }
 0xc88   :  { %4666 = vmatprep.subr.bf16.mxu0 %v6031_v60  ;;  %4698 = vmatprep.subr.bf16.mxu1 %v6033_v19 }
 0xc8b   :  { %4668 = vmatpush1.bf16.msra.mxu0 %v6036_v62  ;;  %4700 = vmatpush1.bf16.msra.mxu1 %v6040_v10 }
 0xc8c   :  { %4670 = vmatprep.subr.bf16.mxu0 %v6042_v24  ;;  %4702 = vmatprep.subr.bf16.mxu1 %v6044_v40 }
 0xc8f   :  { %4672 = vmatpush1.bf16.msra.mxu0 %v6047_v15  ;;  %4704 = vmatpush1.bf16.msra.mxu1 %v6051_v31 }
 0xc90   :  { %4674 = vmatprep.subr.bf16.mxu0 %v6053_v45  ;;  %4706 = vmatprep.subr.bf16.mxu1 %v6056_v59 }
 0xc93   :  { %4676 = vmatpush1.bf16.msra.mxu0 %v6059_v9  ;;  %4708 = vmatpush1.bf16.msra.mxu1 %v6063_v25 }
 0xc94   :  { %4678 = vmatprep.subr.bf16.mxu0 %v6068_v47  ;;  %4710 = vmatprep.subr.bf16.mxu1 %v6070_v43 }
 0xc97   :  { %4680 = vmatpush1.bf16.msra.mxu0 %v6072_v51  ;;  %4712 = vmatpush1.bf16.msra.mxu1 %v6075_v14 }
 0xc98   :  { %4714 = vmatprep.subr.bf16.mxu0 %v5984_v13  ;;  %4746 = vmatprep.subr.bf16.mxu1 %v5986_v23 }
 0xd4d   :  { %v2917_v32 = vpop.f32.mrb[24].mxu0  ;;  %v2988_v0 = vpop.f32.mrb[24].mxu1 }
 0xd4e   :  { %v4905_v33 = vadd.f32 %v2917_v32, %v6130_v17  ;;  %v2919_v61 = vpop.f32.mrb[25].mxu0  ;;  %v2990_v52 = vpop.f32.mrb[25].mxu1  ;;  %v4921_v55 = vadd.f32 %v2988_v0, %v6145_v6 }
 0xd4f   :  { %v4906_v63 = vadd.f32 %v2919_v61, %v6134_v53  ;;  %v4922_v30 = vadd.f32 %v2990_v52, %v6140_v5 }
 0xd50   :  { %v3688_v18 = vmul.f32 -1.442695, %v4905_v33 }
 0xd51   :  { %v3689_v27 = vmul.f32 -1.442695, %v4906_v63  ;;  %v3690_v46 = vmul.f32 -1.442695, %v4922_v30 }
 0xd52   :  { %5195 = vpow2.f32 %v3688_v18 }
 0xd53   :  { %5197 = vpow2.f32 %v3689_v27 }
 0xd54   :  { %5199 = vpow2.f32 %v3690_v46 }
 0xd55   :  { %5201 = vtanh.f32 %v4921_v55 }
 0xd5c   :  { %v5196_v58 = vpop.eup %5195 }
 0xd5d   :  { %v5198_v2 = vpop.eup %5197  ;;  %v3000_v8 = vadd.f32 1.0, %v5196_v58 }
 0xd5e   :  { %v3006_v28 = vadd.f32 1.0, %v5198_v2  ;;  %v5200_v38 = vpop.eup %5199 }
 0xd5f   :  { %5203 = vrcp.f32 %v3000_v8  ;;  %v5202_v7 = vpop.eup %5201  ;;  %v3013_v57 = vadd.f32 1.0, %v5200_v38 }
 0xd60   :  { %5205 = vrcp.f32 %v3006_v28 }
 0xd61   :  { %5207 = vrcp.f32 %v3013_v57 }
 0xd69   :  { %v5204_v44 = vpop.eup %5203 }
 0xd6a   :  { %v5206_v11 = vpop.eup %5205  ;;  %v3017_v16 = vmul.f32 %v5204_v44, %v5202_v7 }
 0xd6b   :  { %v3016_v36 = vmul.f32 %v5206_v11, %v6274_v48  ;;  %v5208_v35 = vpop.eup %5207 }
 0xd6d   :  { %v6316_v50 = vadd.f32 %v3017_v16, %v3016_v36 }
 0xd6f   :  { %5209 = vtanh.f32 %v6316_v50 }
 0xd79   :  { %v5210_v20 = vpop.eup %5209 }
 0xd7a   :  { %v3020_v3 = vmul.f32 %v5210_v20, %v5208_v35  ;;  %v3534_v20 = vld [vmem:[%s6465_s7 + $0x18] sm:$0xff] }
 0xd7c   :  { %3086 = vmatmul.mubr.f32.vlgmr.msra.gmra.mrb[26].mxu0 %v3020_v3  ;;  %3157 = vmatmul.mubr.f32.vlgmr.msra.gmra.mrb[26].mxu1 %v3020_v3 }
 0xd7d   :  { %4716 = vmatpush1.bf16.msra.mxu0 %v5988_v12  ;;  %4748 = vmatpush1.bf16.msra.mxu1 %v5991_v29 }
 0xd7e   :  { %4718 = vmatprep.subr.bf16.mxu0 %v5996_v34  ;;  %4750 = vmatprep.subr.bf16.mxu1 %v5998_v56 }
 0xd7f   :  { %3255 = vmatprep.mubr.f32.mxu0 %v5334_v1  ;;  %3326 = vmatprep.mubr.f32.mxu1 %v5334_v1 }
 0xd81   :  { %4720 = vmatpush1.bf16.msra.mxu0 %v6000_v49  ;;  %4752 = vmatpush1.bf16.msra.mxu1 %v6003_v37 }
 0xd82   :  { %4722 = vmatprep.subr.bf16.mxu0 %v6008_v26  ;;  %4754 = vmatprep.subr.bf16.mxu1 %v6010_v41 }
 0xd85   :  { %4724 = vmatpush1.bf16.msra.mxu0 %v6012_v42  ;;  %4756 = vmatpush1.bf16.msra.mxu1 %v6015_v54 }
 0xd86   :  { %4726 = vmatprep.subr.bf16.mxu0 %v6020_v4  ;;  %4758 = vmatprep.subr.bf16.mxu1 %v6022_v21 }
 0xd89   :  { %4728 = vmatpush1.bf16.msra.mxu0 %v6024_v22  ;;  %4760 = vmatpush1.bf16.msra.mxu1 %v6027_v39 }
 0xd8a   :  { %4730 = vmatprep.subr.bf16.mxu0 %v6031_v60  ;;  %4762 = vmatprep.subr.bf16.mxu1 %v6033_v19 }
 0xd8d   :  { %4732 = vmatpush1.bf16.msra.mxu0 %v6036_v62  ;;  %4764 = vmatpush1.bf16.msra.mxu1 %v6040_v10 }
 0xd8e   :  { %4734 = vmatprep.subr.bf16.mxu0 %v6042_v24  ;;  %4766 = vmatprep.subr.bf16.mxu1 %v6044_v40 }
 0xd91   :  { %4736 = vmatpush1.bf16.msra.mxu0 %v6047_v15  ;;  %4768 = vmatpush1.bf16.msra.mxu1 %v6051_v31 }
 0xd92   :  { %4738 = vmatprep.subr.bf16.mxu0 %v6053_v45  ;;  %4770 = vmatprep.subr.bf16.mxu1 %v6056_v59 }
 0xd95   :  { %4740 = vmatpush1.bf16.msra.mxu0 %v6059_v9  ;;  %4772 = vmatpush1.bf16.msra.mxu1 %v6063_v25 }
 0xd96   :  { %4742 = vmatprep.subr.bf16.mxu0 %v6068_v47  ;;  %4774 = vmatprep.subr.bf16.mxu1 %v6070_v43 }
 0xd99   :  { %4744 = vmatpush1.bf16.msra.mxu0 %v6072_v51  ;;  %4776 = vmatpush1.bf16.msra.mxu1 %v6075_v14 }
 0xd9a   :  { %4778 = vmatprep.subr.bf16.mxu0 %v5984_v13  ;;  %4810 = vmatprep.subr.bf16.mxu1 %v5986_v23 }
 0xe4f   :  { %v3087_v48 = vpop.f32.mrb[26].mxu0  ;;  %v3158_v32 = vpop.f32.mrb[26].mxu1 }
 0xe50   :  { %v4907_v0 = vadd.f32 %v3087_v48, %v6130_v17  ;;  %v3089_v33 = vpop.f32.mrb[27].mxu0  ;;  %v3160_v61 = vpop.f32.mrb[27].mxu1  ;;  %v4923_v46 = vadd.f32 %v3158_v32, %v6145_v6  ;;  %v3535_v48 = vld [vmem:[%s6465_s7 + $0x20] sm:$0xff]  ;;  %v3536_v32 = vld [vmem:[%s6465_s7 + $0x28] sm:$0xff] }
 0xe51   :  { %v4908_v52 = vadd.f32 %v3089_v33, %v6134_v53  ;;  %v4924_v27 = vadd.f32 %v3160_v61, %v6140_v5  ;;  %v3537_v33 = vld [vmem:[%s6465_s7 + $0x30] sm:$0xff]  ;;  %v3538_v61 = vld [vmem:[%s6465_s7 + $0x38] sm:$0xff] }
 0xe52   :  { %v3691_v63 = vmul.f32 -1.442695, %v4907_v0  ;;  %v4848_v0 = vpack.c.bf16 %v3536_v32, %v3535_v48 }
 0xe53   :  { %v3692_v18 = vmul.f32 -1.442695, %v4908_v52  ;;  %v3693_v30 = vmul.f32 -1.442695, %v4924_v27  ;;  %v4851_v52 = vpack.c.bf16 %v3538_v61, %v3537_v33 }
 0xe54   :  { %5211 = vpow2.f32 %v3691_v63  ;;  %v3539_v63 = vld [vmem:[%s6465_s7 + $0x40] sm:$0xff] }
 0xe55   :  { %5213 = vpow2.f32 %v3692_v18  ;;  %v3540_v18 = vld [vmem:[%s6465_s7 + $0x48] sm:$0xff] }
 0xe56   :  { %5215 = vpow2.f32 %v3693_v30  ;;  %v4854_v27 = vpack.c.bf16 %v3540_v18, %v3539_v63  ;;  %v3541_v30 = vld [vmem:[%s6465_s7 + $0x50] sm:$0xff] }
 0xe57   :  { %5217 = vtanh.f32 %v4923_v46  ;;  %v3542_v46 = vld [vmem:[%s6465_s7 + $0x58] sm:$0xff] }
 0xe5e   :  { %v5212_v13 = vpop.eup %5211 }
 0xe5f   :  { %v5214_v55 = vpop.eup %5213  ;;  %v3170_v23 = vadd.f32 1.0, %v5212_v13  ;;  %v3543_v13 = vld [vmem:[%s6465_s7 + $0x60] sm:$0xff] }
 0xe60   :  { %v3176_v58 = vadd.f32 1.0, %v5214_v55  ;;  %v5216_v2 = vpop.eup %5215  ;;  %v4857_v55 = vpack.c.bf16 %v3542_v46, %v3541_v30 }
 0xe61   :  { %5219 = vrcp.f32 %v3170_v23  ;;  %v5218_v8 = vpop.eup %5217  ;;  %v3183_v44 = vadd.f32 1.0, %v5216_v2  ;;  %v3544_v23 = vld [vmem:[%s6465_s7 + $0x68] sm:$0xff]  ;;  %v3545_v2 = vld [vmem:[%s6465_s7 + $0x70] sm:$0xff] }
 0xe62   :  { %5221 = vrcp.f32 %v3176_v58  ;;  %v4860_v58 = vpack.c.bf16 %v3544_v23, %v3543_v13 }
 0xe63   :  { %5223 = vrcp.f32 %v3183_v44 }
 0xe6b   :  { %v5220_v28 = vpop.eup %5219 }
 0xe6c   :  { %v5222_v38 = vpop.eup %5221  ;;  %v3187_v7 = vmul.f32 %v5220_v28, %v5218_v8  ;;  %v3546_v8 = vld [vmem:[%s6465_s7 + $0x78] sm:$0xff] }
 0xe6d   :  { %v3186_v11 = vmul.f32 %v5222_v38, %v6316_v50  ;;  %v5224_v57 = vpop.eup %5223  ;;  %v3533_v50 = vld [vmem:[%s6465_s7 + $0x10] sm:$0xff]  ;;  %v4863_v28 = vpack.c.bf16 %v3546_v8, %v3545_v2 }
 0xe6e   :  { %v4845_v3 = vpack.c.bf16 %v3534_v20, %v3533_v50 }
 0xe6f   :  { %v6358_v16 = vadd.f32 %v3187_v7, %v3186_v11 }
 0xe71   :  { %5225 = vtanh.f32 %v6358_v16 }
 0xe7b   :  { %v5226_v36 = vpop.eup %5225 }
 0xe7c   :  { %v3190_v35 = vmul.f32 %v5226_v36, %v5224_v57 }
 0xe7e   :  { %3256 = vmatmul.mubr.f32.vlgmr.msra.gmra.mrb[28].mxu0 %v3190_v35  ;;  %3327 = vmatmul.mubr.f32.vlgmr.msra.gmra.mrb[28].mxu1 %v3190_v35 }
 0xe7f   :  { %4780 = vmatpush1.bf16.msra.mxu0 %v5988_v12  ;;  %4812 = vmatpush1.bf16.msra.mxu1 %v5991_v29 }
 0xe80   :  { %4782 = vmatprep.subr.bf16.mxu0 %v5996_v34  ;;  %4814 = vmatprep.subr.bf16.mxu1 %v5998_v56 }
 0xe81   :  { %3425 = vmatprep.mubr.f32.mxu0 %v5334_v1  ;;  %3496 = vmatprep.mubr.f32.mxu1 %v5334_v1 }
 0xe83   :  { %4784 = vmatpush1.bf16.msra.mxu0 %v6000_v49  ;;  %4816 = vmatpush1.bf16.msra.mxu1 %v6003_v37 }
 0xe84   :  { %4786 = vmatprep.subr.bf16.mxu0 %v6008_v26  ;;  %4818 = vmatprep.subr.bf16.mxu1 %v6010_v41 }
 0xe87   :  { %4788 = vmatpush1.bf16.msra.mxu0 %v6012_v42  ;;  %4820 = vmatpush1.bf16.msra.mxu1 %v6015_v54 }
 0xe88   :  { %4790 = vmatprep.subr.bf16.mxu0 %v6020_v4  ;;  %4822 = vmatprep.subr.bf16.mxu1 %v6022_v21 }
 0xe8b   :  { %4792 = vmatpush1.bf16.msra.mxu0 %v6024_v22  ;;  %4824 = vmatpush1.bf16.msra.mxu1 %v6027_v39 }
 0xe8c   :  { %4794 = vmatprep.subr.bf16.mxu0 %v6031_v60  ;;  %4826 = vmatprep.subr.bf16.mxu1 %v6033_v19 }
 0xe8f   :  { %4796 = vmatpush1.bf16.msra.mxu0 %v6036_v62  ;;  %4828 = vmatpush1.bf16.msra.mxu1 %v6040_v10 }
 0xe90   :  { %4798 = vmatprep.subr.bf16.mxu0 %v6042_v24  ;;  %4830 = vmatprep.subr.bf16.mxu1 %v6044_v40 }
 0xe93   :  { %4800 = vmatpush1.bf16.msra.mxu0 %v6047_v15  ;;  %4832 = vmatpush1.bf16.msra.mxu1 %v6051_v31 }
 0xe94   :  { %4802 = vmatprep.subr.bf16.mxu0 %v6053_v45  ;;  %4834 = vmatprep.subr.bf16.mxu1 %v6056_v59 }
 0xe97   :  { %4804 = vmatpush1.bf16.msra.mxu0 %v6059_v9  ;;  %4836 = vmatpush1.bf16.msra.mxu1 %v6063_v25 }
 0xe98   :  { %4806 = vmatprep.subr.bf16.mxu0 %v6068_v47  ;;  %4838 = vmatprep.subr.bf16.mxu1 %v6070_v43  ;;  %v3531_v47 = vld [vmem:[%s6465_s7] sm:$0xff]  ;;  %v3532_v43 = vld [vmem:[%s6465_s7 + $0x8] sm:$0xff] }
 0xe9b   :  { %4808 = vmatpush1.bf16.msra.mxu0 %v6072_v51  ;;  %4840 = vmatpush1.bf16.msra.mxu1 %v6075_v14  ;;  %v4842_v51 = vpack.c.bf16 %v3532_v43, %v3531_v47  ;;  %v5335_v14 = vmov 0.0|0.0  }
 0xe9c   :  { %4841 = vmatprep.subr.bf16.mxu0 %v5335_v14 }
 0xf51   :  { %v3257_v12 = vpop.f32.mrb[28].mxu0  ;;  %v3328_v29 = vpop.f32.mrb[28].mxu1 }
 0xf52   :  { %v4909_v34 = vadd.f32 %v3257_v12, %v6130_v17  ;;  %v3259_v56 = vpop.f32.mrb[29].mxu0  ;;  %v3330_v49 = vpop.f32.mrb[29].mxu1  ;;  %v4925_v4 = vadd.f32 %v3328_v29, %v6145_v6 }
 0xf53   :  { %v4910_v37 = vadd.f32 %v3259_v56, %v6134_v53  ;;  %v4926_v42 = vadd.f32 %v3330_v49, %v6140_v5 }
 0xf54   :  { %v3694_v26 = vmul.f32 -1.442695, %v4909_v34 }
 0xf55   :  { %v3695_v41 = vmul.f32 -1.442695, %v4910_v37  ;;  %v3696_v54 = vmul.f32 -1.442695, %v4926_v42 }
 0xf56   :  { %5227 = vpow2.f32 %v3694_v26 }
 0xf57   :  { %5229 = vpow2.f32 %v3695_v41 }
 0xf58   :  { %5231 = vpow2.f32 %v3696_v54 }
 0xf59   :  { %5233 = vtanh.f32 %v4925_v4 }
 0xf60   :  { %v5228_v21 = vpop.eup %5227 }
 0xf61   :  { %v5230_v22 = vpop.eup %5229  ;;  %v3340_v39 = vadd.f32 1.0, %v5228_v21 }
 0xf62   :  { %v3346_v60 = vadd.f32 1.0, %v5230_v22  ;;  %v5232_v19 = vpop.eup %5231 }
 0xf63   :  { %5235 = vrcp.f32 %v3340_v39  ;;  %v5234_v62 = vpop.eup %5233  ;;  %v3353_v15 = vadd.f32 1.0, %v5232_v19  ;;  %v3700_v39 = vld [vmem:[#allocation2] ss:$0 sm:$0xff] }
 0xf64   :  { %5237 = vrcp.f32 %v3346_v60 }
 0xf65   :  { %5239 = vrcp.f32 %v3353_v15 }
 0xf6d   :  { %v5236_v10 = vpop.eup %5235 }
 0xf6e   :  { %v5238_v24 = vpop.eup %5237  ;;  %v3357_v40 = vmul.f32 %v5236_v10, %v5234_v62 }
 0xf6f   :  { %v3356_v31 = vmul.f32 %v5238_v24, %v6358_v16  ;;  %v5240_v59 = vpop.eup %5239 }
 0xf71   :  { %v6398_v45 = vadd.f32 %v3357_v40, %v3356_v31 }
 0xf73   :  { %5241 = vtanh.f32 %v6398_v45 }
 0xf7d   :  { %v5242_v9 = vpop.eup %5241 }
 0xf7e   :  { %v3360_v25 = vmul.f32 %v5242_v9, %v5240_v59 }
 0xf80   :  { %3426 = vmatmul.mubr.f32.vlgmr.msra.gmra.mrb[30].mxu0 %v3360_v25  ;;  %3497 = vmatmul.mubr.f32.vlgmr.msra.gmra.mrb[30].mxu1 %v3360_v25 }
 0xf81   :  { %4843 = vmatpush3.bf16.msra.mxu0 %v4842_v51  ;;  %3750 = vmatprep.mubr.msk.f32.mxu0 %vm5336_vm2, %v5334_v1 }
 0xf82   :  { %4844 = vmatprep.subr.bf16.mxu0 %v5335_v14 }
 0xf85   :  { %4846 = vmatpush3.bf16.msra.mxu0 %v4845_v3 }
 0xf86   :  { %4847 = vmatprep.subr.bf16.mxu0 %v5335_v14 }
 0xf89   :  { %4849 = vmatpush3.bf16.msra.mxu0 %v4848_v0 }
 0xf8a   :  { %4850 = vmatprep.subr.bf16.mxu0 %v5335_v14 }
 0xf8d   :  { %4852 = vmatpush3.bf16.msra.mxu0 %v4851_v52 }
 0xf8e   :  { %4853 = vmatprep.subr.bf16.mxu0 %v5335_v14 }
 0xf91   :  { %4855 = vmatpush3.bf16.msra.mxu0 %v4854_v27 }
 0xf92   :  { %4856 = vmatprep.subr.bf16.mxu0 %v5335_v14 }
 0xf95   :  { %4858 = vmatpush3.bf16.msra.mxu0 %v4857_v55 }
 0xf96   :  { %4859 = vmatprep.subr.bf16.mxu0 %v5335_v14 }
 0xf99   :  { %4861 = vmatpush3.bf16.msra.mxu0 %v4860_v58 }
 0xf9a   :  { %4862 = vmatprep.subr.bf16.mxu0 %v5335_v14 }
 0xf9d   :  { %4864 = vmatpush3.bf16.msra.mxu0 %v4863_v28 }
0x1053   :  { %v3427_v38 = vpop.f32.mrb[30].mxu0  ;;  %v3498_v7 = vpop.f32.mrb[30].mxu1 }
0x1054   :  { %v4911_v44 = vadd.f32 %v3427_v38, %v6130_v17  ;;  %v3429_v1 = vpop.f32.mrb[31].mxu0  ;;  %v3500_v11 = vpop.f32.mrb[31].mxu1  ;;  %v4927_v29 = vadd.f32 %v3498_v7, %v6145_v6 }
0x1055   :  { %v4912_v16 = vadd.f32 %v3429_v1, %v6134_v53  ;;  %v4928_v35 = vadd.f32 %v3500_v11, %v6140_v5 }
0x1056   :  { %v3697_v57 = vmul.f32 -1.442695, %v4911_v44 }
0x1057   :  { %v3698_v36 = vmul.f32 -1.442695, %v4912_v16  ;;  %v3699_v12 = vmul.f32 -1.442695, %v4928_v35 }
0x1058   :  { %5243 = vpow2.f32 %v3697_v57 }
0x1059   :  { %5245 = vpow2.f32 %v3698_v36 }
0x105a   :  { %5247 = vpow2.f32 %v3699_v12 }
0x105b   :  { %5249 = vtanh.f32 %v4927_v29 }
0x1062   :  { %v5244_v34 = vpop.eup %5243 }
0x1063   :  { %v5246_v56 = vpop.eup %5245  ;;  %v3510_v49 = vadd.f32 1.0, %v5244_v34 }
0x1064   :  { %v3516_v37 = vadd.f32 1.0, %v5246_v56  ;;  %v5248_v17 = vpop.eup %5247 }
0x1065   :  { %5251 = vrcp.f32 %v3510_v49  ;;  %v5250_v26 = vpop.eup %5249  ;;  %v3523_v54 = vadd.f32 1.0, %v5248_v17 }
0x1066   :  { %5253 = vrcp.f32 %v3516_v37 }
0x1067   :  { %5255 = vrcp.f32 %v3523_v54 }
0x106f   :  { %v5252_v53 = vpop.eup %5251 }
0x1070   :  { %v5254_v41 = vpop.eup %5253  ;;  %v3527_v42 = vmul.f32 %v5252_v53, %v5250_v26 }
0x1071   :  { %v3526_v4 = vmul.f32 %v5254_v41, %v6398_v45  ;;  %v5256_v6 = vpop.eup %5255 }
0x1073   :  { %v3528_v5 = vadd.f32 %v3527_v42, %v3526_v4 }
0x1075   :  { %5257 = vtanh.f32 %v3528_v5 }
0x107f   :  { %v5258_v21 = vpop.eup %5257 }
0x1080   :  { %v3530_v22 = vmul.f32 %v5258_v21, %v5256_v6 }
0x1082   :  { %3751 = vmatmul.mubr.f32.vlgmr.msra.gmra.mrb[32].mxu0 %v3530_v22 }
0x1155   :  { %v3620_v60 = vpop.f32.mrb[32].mxu0 }
0x1156   :  { %v3621_v19 = vadd.f32 %v3700_v39, %v3620_v60  ;;  %v3752_v62 = vpop.f32.mrb[33].mxu0 }
0x1158   :  { %3625 = vst.msk [vmem:[%s6467_s9] sm:$0xff] %vm3624_vm3, %v3621_v19 }
0x1159   :  { %3630 = vsyncpa [#allocation4], 1 }
0x115a   :  { %3631 = vsyncpa [#allocation6], 1 }

</bundles_post_ra>
